<compile_context>
chip_gen: v6e
topology: v6e:2x2x1
jax: 0.10.0
libtpu: 0.0.40
codegen_flags: <defaults>
</compile_context>

<pallas_src>
import functools

import jax
import jax.numpy as jnp
from jax.experimental import pallas as pl
from jax.experimental.pallas import tpu as pltpu


# ----------------------------------------------------------------------------
# Fused per-ViT kernel: grid over transformer layers, residual stream in VMEM
# scratch, per-layer weight slabs streamed via BlockSpecs.
# ----------------------------------------------------------------------------
def _vit_fused_kernel(
    tokens_ref,        # [B*S, C*P*P] f32   (row b*S is zeros -> CLS slot)
    tok_add_ref,       # [B*S, D]     f32   (cls+pos for CLS rows, pos+conv_bias else)
    patch_w_ref,       # [C*P*P, D]   bf16
    ln1_g_ref, ln1_b_ref,              # [1, 1, D] f32   (layer l slab)
    wq_ref, bq_ref,                    # [1, nh, D, Dh] bf16, [1, nh, 1, Dh] f32
    wk_ref, bk_ref,
    wv_ref, bv_ref,
    wo_ref, bo_ref,                    # [1, nh, Dh, D] bf16, [1, 1, D] f32
    ln2_g_ref, ln2_b_ref,              # [1, 1, D] f32
    fc1_w_ref, fc1_b_ref,              # [1, D, F] bf16, [1, 1, F] f32
    fc2_w_ref, fc2_b_ref,              # [1, F, D] bf16, [1, 1, D] f32
    lnf_g_ref, lnf_b_ref,              # [1, D] f32
    cf1_w_ref, cf1_b_ref,              # [D, D//2] bf16, [1, D//2] f32
    cf2_w_ref, cf2_b_ref,              # [D//2, NC] bf16, [1, NC] f32
    logits_ref,                        # out: [B, NC] f32
    h_ref,                             # scratch: [B*S, D] f32 residual stream
    *, B, S, D, nh, eps,
):
    Dh = D // nh
    scale = 1.0 / float(Dh) ** 0.5
    bf16 = jnp.bfloat16

    def mm(a, b):
        # bf16 MXU operands, f32 accumulation.
        return jnp.dot(a.astype(bf16), b.astype(bf16),
                       preferred_element_type=jnp.float32)

    def bmm(eq, a, b):
        # canonical leading-batch-dim batched matmul (bf16 operands, f32 acc).
        return jnp.einsum(eq, a.astype(bf16), b.astype(bf16),
                          preferred_element_type=jnp.float32)

    def layer_norm(x, g, b):
        mu = jnp.mean(x, axis=-1, keepdims=True)
        var = jnp.mean(jnp.square(x - mu), axis=-1, keepdims=True)
        return (x - mu) * jax.lax.rsqrt(var + eps) * g + b

    def gelu_tanh(x):
        c = 0.7978845608028654  # sqrt(2/pi)
        return 0.5 * x * (1.0 + jnp.tanh(c * (x + 0.044715 * x * x * x)))

    l = pl.program_id(0)

    # --- patch embedding + CLS/pos (first grid step only) ------------------
    @pl.when(l == 0)
    def _():
        h_ref[...] = mm(tokens_ref[...], patch_w_ref[...]) + tok_add_ref[...]

    # --- transformer layer l (weights for layer l streamed into VMEM) ------
    h = h_ref[...]                                              # [BS, D] f32

    # attention block (pre-LN), per-image + head-batched
    hn = layer_norm(h, ln1_g_ref[0], ln1_b_ref[0])              # [BS, D]
    wq, wk, wv = wq_ref[0], wk_ref[0], wv_ref[0]                # [nh, D, Dh] bf16
    bq, bk, bv = bq_ref[0], bk_ref[0], bv_ref[0]                # [nh, 1, Dh] f32
    wo = wo_ref[0]                                              # [nh, Dh, D] bf16

    attn_rows = []
    for b in range(B):                                          # per-image attention
        hn_img = hn[b * S:(b + 1) * S, :]                       # [S, D]
        hn_h = jnp.broadcast_to(hn_img[None].astype(bf16), (nh, S, D))
        q = bmm('hsd,hdk->hsk', hn_h, wq) + bq                  # [nh, S, Dh]
        k = bmm('hsd,hdk->hsk', hn_h, wk) + bk
        v = bmm('hsd,hdk->hsk', hn_h, wv) + bv
        s = bmm('hqd,hkd->hqk', q, k) * scale                   # [nh, S, S]
        m = jnp.max(s, axis=-1, keepdims=True)
        p = jnp.exp(s - m)
        denom = jnp.sum(p, axis=-1, keepdims=True)
        probs = p * pl.reciprocal(denom, approx=True)
        ctx = bmm('hqk,hkd->hqd', probs, v)                     # [nh, S, Dh]
        # head-merge + output projection: sum_h ctx_h @ Wo[h-rows]
        o = bmm('hsd,hde->hse', ctx, wo)                        # [nh, S, D]
        attn_rows.append(jnp.sum(o, axis=0))                    # [S, D]
    h = h + jnp.concatenate(attn_rows, axis=0) + bo_ref[0]

    # MLP block (pre-LN), tanh-GELU fused after fc1
    hn2 = layer_norm(h, ln2_g_ref[0], ln2_b_ref[0])
    mid = gelu_tanh(mm(hn2, fc1_w_ref[0]) + fc1_b_ref[0])
    h = h + mm(mid, fc2_w_ref[0]) + fc2_b_ref[0]
    h_ref[...] = h

    # --- final LN (CLS rows only) + classifier head (last grid step only) --
    @pl.when(l == pl.num_programs(0) - 1)
    def _():
        cls_rows = jnp.concatenate([h[b * S:b * S + 1, :] for b in range(B)],
                                   axis=0)                      # [B, D]
        cls_n = layer_norm(cls_rows, lnf_g_ref[...], lnf_b_ref[...])
        z = gelu_tanh(mm(cls_n, cf1_w_ref[...]) + cf1_b_ref[...])
        logits_ref[...] = mm(z, cf2_w_ref[...]) + cf2_b_ref[...]


def vit_forward(params, x, cfg, num_classes):
    """One MedicalViT forward = ONE pallas_call with a grid over layers."""
    B, C, H, W = x.shape
    P, D, nh, L, F = cfg["patch"], cfg["hidden"], cfg["heads"], cfg["layers"], cfg["mlp"]
    hp, wp = H // P, W // P
    Np = hp * wp
    S = Np + 1
    BS = B * S
    Cpp = C * P * P

    # ---- plain-JAX glue: im2col + CLS slot + additive token table (tiny) ----
    patches = x.reshape(B, C, hp, P, wp, P).transpose(0, 2, 4, 1, 3, 5).reshape(B, Np, Cpp)
    tokens = jnp.concatenate([jnp.zeros((B, 1, Cpp), x.dtype), patches], axis=1)
    tokens = tokens.reshape(BS, Cpp)

    pos = params["pos"][0]                                        # [S, D]
    tok_add = jnp.concatenate(
        [params["cls"].reshape(1, D) + pos[:1],
         pos[1:] + params["patch_b"][None, :]], axis=0)           # [S, D]
    tok_add = jnp.tile(tok_add, (B, 1))                           # [BS, D]

    def full_spec(arr):
        zeros = (0,) * arr.ndim
        return pl.BlockSpec(arr.shape, lambda l, z=zeros: z)

    def layer_spec(arr):
        tail = arr.shape[1:]
        zeros = (0,) * (arr.ndim - 1)
        return pl.BlockSpec((1,) + tail, lambda l, z=zeros: (l,) + z)

    p = params
    operands = [
        (tokens, False), (tok_add, False), (p["patch_w"], False),
        (p["ln1_g"], True), (p["ln1_b"], True),
        (p["wq"], True), (p["bq"], True),
        (p["wk"], True), (p["bk"], True),
        (p["wv"], True), (p["bv"], True),
        (p["wo"], True), (p["bo"], True),
        (p["ln2_g"], True), (p["ln2_b"], True),
        (p["fc1_w"], True), (p["fc1_b"], True),
        (p["fc2_w"], True), (p["fc2_b"], True),
        (p["lnf_g"], False), (p["lnf_b"], False),
        (p["cf1_w"], False), (p["cf1_b"], False),
        (p["cf2_w"], False), (p["cf2_b"], False),
    ]
    args = [a for a, _ in operands]
    in_specs = [layer_spec(a) if per_layer else full_spec(a) for a, per_layer in operands]

    # VMEM budget sized from the actual resident footprint (with headroom for
    # double-buffered per-layer slabs and in-kernel f32 intermediates).
    arg_bytes = sum(int(a.size) * a.dtype.itemsize for a in args)
    act_bytes = 8 * BS * max(Cpp, 4 * D, F) * 4
    vmem_limit = int(min(100 * 1024 * 1024,
                         max(16 * 1024 * 1024,
                             2 * (arg_bytes + act_bytes + B * num_classes * 4))))

    kernel = functools.partial(_vit_fused_kernel,
                               B=B, S=S, D=D, nh=nh, eps=1e-12)
    return pl.pallas_call(
        kernel,
        out_shape=jax.ShapeDtypeStruct((B, num_classes), jnp.float32),
        grid=(L,),
        in_specs=in_specs,
        out_specs=pl.BlockSpec((B, num_classes), lambda l: (0, 0)),
        scratch_shapes=[pltpu.VMEM((BS, D), jnp.float32)],
        compiler_params=pltpu.CompilerParams(
            dimension_semantics=("arbitrary",),
            vmem_limit_bytes=vmem_limit),
    )(*args)


def ensemble_forward(ens, x):
    preds = [vit_forward(p, x, cfg, ens["num_classes"])
             for p, cfg in zip(ens["models"], ens["cfgs"])]
    combined = jnp.concatenate(preds, axis=1)          # torch.cat(predictions, dim=1)
    # ~200-FLOP fusion Linear: plain jnp/XLA (a dedicated pallas_call is pure
    # launch + DMA-setup overhead at this size).
    return combined @ ens["fusion_w"] + ens["fusion_b"]


# ----------------------------------------------------------------------------
# Deterministic parameter construction (stacked [L, ...] slabs, head-major
# attention weights, bf16 MXU operands; biases / LN params stay f32).
# ----------------------------------------------------------------------------
def _lin_init(key, din, dout, scale=0.02):
    w = scale * jax.random.normal(key, (din, dout), jnp.float32)
    b = jnp.zeros((dout,), jnp.float32)
    return w, b


def make_vit_params(key, cfg, num_classes):
    C, P, D = cfg["chans"], cfg["patch"], cfg["hidden"]
    L, F, S, nh = cfg["layers"], cfg["mlp"], cfg["num_tokens"], cfg["heads"]
    Dh = D // nh
    keys = jax.random.split(key, 8 + L)

    pw, pb = _lin_init(keys[0], C * P * P, D)
    cf1w, cf1b = _lin_init(keys[3], D, D // 2)
    cf2w, cf2b = _lin_init(keys[4], D // 2, num_classes)

    acc = {k: [] for k in ("ln1_g", "ln1_b", "wq", "bq", "wk", "bk", "wv", "bv",
                           "wo", "bo", "ln2_g", "ln2_b",
                           "fc1_w", "fc1_b", "fc2_w", "fc2_b")}
    for i in range(L):
        lk = jax.random.split(keys[8 + i], 6)
        qw, qb = _lin_init(lk[0], D, D)
        kw, kb = _lin_init(lk[1], D, D)
        vw, vb = _lin_init(lk[2], D, D)
        ow, ob = _lin_init(lk[3], D, D)
        f1w, f1b = _lin_init(lk[4], D, F)
        f2w, f2b = _lin_init(lk[5], F, D)
        # Head-major layouts so the kernel never slices Dh-wide activation columns.
        acc["wq"].append(qw.reshape(D, nh, Dh).transpose(1, 0, 2))   # [nh, D, Dh]
        acc["wk"].append(kw.reshape(D, nh, Dh).transpose(1, 0, 2))
        acc["wv"].append(vw.reshape(D, nh, Dh).transpose(1, 0, 2))
        acc["bq"].append(qb.reshape(nh, 1, Dh))
        acc["bk"].append(kb.reshape(nh, 1, Dh))
        acc["bv"].append(vb.reshape(nh, 1, Dh))
        acc["wo"].append(ow.reshape(nh, Dh, D))                      # head-major rows
        acc["bo"].append(ob[None, :])
        acc["fc1_w"].append(f1w); acc["fc1_b"].append(f1b[None, :])
        acc["fc2_w"].append(f2w); acc["fc2_b"].append(f2b[None, :])
        acc["ln1_g"].append(jnp.ones((1, D), jnp.float32))
        acc["ln1_b"].append(jnp.zeros((1, D), jnp.float32))
        acc["ln2_g"].append(jnp.ones((1, D), jnp.float32))
        acc["ln2_b"].append(jnp.zeros((1, D), jnp.float32))

    params = {k: jnp.stack(v) for k, v in acc.items()}
    params.update(
        patch_w=pw, patch_b=pb,
        cls=0.02 * jax.random.normal(keys[1], (1, 1, D), jnp.float32),
        pos=0.02 * jax.random.normal(keys[2], (1, S, D), jnp.float32),
        lnf_g=jnp.ones((1, D), jnp.float32), lnf_b=jnp.zeros((1, D), jnp.float32),
        cf1_w=cf1w, cf1_b=cf1b[None, :],
        cf2_w=cf2w, cf2_b=cf2b[None, :],
    )
    # bf16 MXU operands (f32 accumulation in-kernel).
    for name in ("patch_w", "wq", "wk", "wv", "wo", "fc1_w", "fc2_w", "cf1_w", "cf2_w"):
        params[name] = params[name].astype(jnp.bfloat16)
    return params


# ----------------------------------------------------------------------------
if __name__ == "__main__":
    key = jax.random.PRNGKey(0)
    kx, k0, k1, kf = jax.random.split(key, 4)

    B, C, IMG, P = 2, 3, 32, 16          # small synthetic shapes (4 patches + CLS = 5 tokens)
    NUM_CLASSES = 7
    num_tokens = (IMG // P) ** 2 + 1

    # two "ViT sizes" (scaled-down base / large) for the ensemble
    cfg0 = dict(chans=C, patch=P, hidden=32, layers=2, heads=2, mlp=64, num_tokens=num_tokens)
    cfg1 = dict(chans=C, patch=P, hidden=48, layers=2, heads=3, mlp=96, num_tokens=num_tokens)

    p0 = make_vit_params(k0, cfg0, NUM_CLASSES)
    p1 = make_vit_params(k1, cfg1, NUM_CLASSES)
    fusion_w = 0.02 * jax.random.normal(kf, (2 * NUM_CLASSES, NUM_CLASSES), jnp.float32)
    fusion_b = jnp.zeros((NUM_CLASSES,), jnp.float32)

    ens = dict(models=[p0, p1], cfgs=[cfg0, cfg1], num_classes=NUM_CLASSES,
               fusion_w=fusion_w, fusion_b=fusion_b)

    x = jax.random.normal(kx, (B, C, IMG, IMG), jnp.float32)   # NCHW, like PyTorch

    fwd = jax.jit(lambda inp: ensemble_forward(ens, inp))
    out = jax.block_until_ready(fwd(x))

    assert out.shape == (B, NUM_CLASSES), out.shape
    assert bool(jnp.all(jnp.isfinite(out)))
    print("KERNEL_OK")
</pallas_src>

<mosaic_0001>
module attributes {stable_mosaic.version = 11 : i64} {
  func.func @_vit_fused_kernel(%arg0: i32, %arg1: memref<10x768xf32, #tpu.memory_space<vmem>>, %arg2: memref<10x48xf32, #tpu.memory_space<vmem>>, %arg3: memref<768x48xbf16, #tpu.memory_space<vmem>>, %arg4: memref<1x1x48xf32, #tpu.memory_space<vmem>>, %arg5: memref<1x1x48xf32, #tpu.memory_space<vmem>>, %arg6: memref<1x3x48x16xbf16, #tpu.memory_space<vmem>>, %arg7: memref<1x3x1x16xf32, #tpu.memory_space<vmem>>, %arg8: memref<1x3x48x16xbf16, #tpu.memory_space<vmem>>, %arg9: memref<1x3x1x16xf32, #tpu.memory_space<vmem>>, %arg10: memref<1x3x48x16xbf16, #tpu.memory_space<vmem>>, %arg11: memref<1x3x1x16xf32, #tpu.memory_space<vmem>>, %arg12: memref<1x3x16x48xbf16, #tpu.memory_space<vmem>>, %arg13: memref<1x1x48xf32, #tpu.memory_space<vmem>>, %arg14: memref<1x1x48xf32, #tpu.memory_space<vmem>>, %arg15: memref<1x1x48xf32, #tpu.memory_space<vmem>>, %arg16: memref<1x48x96xbf16, #tpu.memory_space<vmem>>, %arg17: memref<1x1x96xf32, #tpu.memory_space<vmem>>, %arg18: memref<1x96x48xbf16, #tpu.memory_space<vmem>>, %arg19: memref<1x1x48xf32, #tpu.memory_space<vmem>>, %arg20: memref<1x48xf32, #tpu.memory_space<vmem>>, %arg21: memref<1x48xf32, #tpu.memory_space<vmem>>, %arg22: memref<48x24xbf16, #tpu.memory_space<vmem>>, %arg23: memref<1x24xf32, #tpu.memory_space<vmem>>, %arg24: memref<24x7xbf16, #tpu.memory_space<vmem>>, %arg25: memref<1x7xf32, #tpu.memory_space<vmem>>, %arg26: memref<2x7xf32, #tpu.memory_space<vmem>>, %arg27: memref<10x48xf32, #tpu.memory_space<vmem>>) attributes {dimension_semantics = [#tpu.dimension_semantics<arbitrary>], iteration_bounds = array<i64: 2>, scalar_prefetch = 0 : i64, scratch_operands = 1 : i64, tpu.core_type = #tpu.core_type<tc>, window_params = [{pipeline_mode = #tpu.pipeline_mode<synchronous>, transform_indices = @transform_0, window_bounds = array<i64: 10, 768>}, {pipeline_mode = #tpu.pipeline_mode<synchronous>, transform_indices = @transform_1, window_bounds = array<i64: 10, 48>}, {pipeline_mode = #tpu.pipeline_mode<synchronous>, transform_indices = @transform_2, window_bounds = array<i64: 768, 48>}, {transform_indices = @transform_3, window_bounds = array<i64: 1, 1, 48>}, {transform_indices = @transform_4, window_bounds = array<i64: 1, 1, 48>}, {transform_indices = @transform_5, window_bounds = array<i64: 1, 3, 48, 16>}, {transform_indices = @transform_6, window_bounds = array<i64: 1, 3, 1, 16>}, {transform_indices = @transform_7, window_bounds = array<i64: 1, 3, 48, 16>}, {transform_indices = @transform_8, window_bounds = array<i64: 1, 3, 1, 16>}, {transform_indices = @transform_9, window_bounds = array<i64: 1, 3, 48, 16>}, {transform_indices = @transform_10, window_bounds = array<i64: 1, 3, 1, 16>}, {transform_indices = @transform_11, window_bounds = array<i64: 1, 3, 16, 48>}, {transform_indices = @transform_12, window_bounds = array<i64: 1, 1, 48>}, {transform_indices = @transform_13, window_bounds = array<i64: 1, 1, 48>}, {transform_indices = @transform_14, window_bounds = array<i64: 1, 1, 48>}, {transform_indices = @transform_15, window_bounds = array<i64: 1, 48, 96>}, {transform_indices = @transform_16, window_bounds = array<i64: 1, 1, 96>}, {transform_indices = @transform_17, window_bounds = array<i64: 1, 96, 48>}, {transform_indices = @transform_18, window_bounds = array<i64: 1, 1, 48>}, {pipeline_mode = #tpu.pipeline_mode<synchronous>, transform_indices = @transform_19, window_bounds = array<i64: 1, 48>}, {pipeline_mode = #tpu.pipeline_mode<synchronous>, transform_indices = @transform_20, window_bounds = array<i64: 1, 48>}, {pipeline_mode = #tpu.pipeline_mode<synchronous>, transform_indices = @transform_21, window_bounds = array<i64: 48, 24>}, {pipeline_mode = #tpu.pipeline_mode<synchronous>, transform_indices = @transform_22, window_bounds = array<i64: 1, 24>}, {pipeline_mode = #tpu.pipeline_mode<synchronous>, transform_indices = @transform_23, window_bounds = array<i64: 24, 7>}, {pipeline_mode = #tpu.pipeline_mode<synchronous>, transform_indices = @transform_24, window_bounds = array<i64: 1, 7>}, {pipeline_mode = #tpu.pipeline_mode<synchronous>, transform_indices = @transform_25, window_bounds = array<i64: 2, 7>}]} {
    %c0_i32 = arith.constant 0 : i32
    %0 = arith.cmpi eq, %arg0, %c0_i32 : i32
    %1 = arith.extui %0 : i1 to i32
    %c0_i32_0 = arith.constant 0 : i32
    %2 = arith.cmpi ne, %1, %c0_i32_0 : i32
    scf.if %2 {
      %c0_95 = arith.constant 0 : index
      %c0_96 = arith.constant 0 : index
      %180 = vector.load %arg1[%c0_95, %c0_96] : memref<10x768xf32, #tpu.memory_space<vmem>>, vector<10x768xf32>
      %c0_97 = arith.constant 0 : index
      %c0_98 = arith.constant 0 : index
      %181 = vector.load %arg3[%c0_97, %c0_98] : memref<768x48xbf16, #tpu.memory_space<vmem>>, vector<768x48xbf16>
      %182 = arith.truncf %180 : vector<10x768xf32> to vector<10x768xbf16>
      %cst_99 = arith.constant dense<0.000000e+00> : vector<10x48xf32>
      %183 = tpu.matmul %182, %181, %cst_99 {dimension_numbers = #tpu.dot_dimension_numbers<[1], [0], [0], [1], [0, 0, 1, 1], [], []>} : vector<10x768xbf16>, vector<768x48xbf16>, vector<10x48xf32> -> vector<10x48xf32>
      %c0_100 = arith.constant 0 : index
      %c0_101 = arith.constant 0 : index
      %184 = vector.load %arg2[%c0_100, %c0_101] : memref<10x48xf32, #tpu.memory_space<vmem>>, vector<10x48xf32>
      %185 = arith.addf %183, %184 : vector<10x48xf32>
      %c0_102 = arith.constant 0 : index
      %c0_103 = arith.constant 0 : index
      %186 = vector.load %arg27[%c0_102, %c0_103] : memref<10x48xf32, #tpu.memory_space<vmem>>, vector<10x48xf32>
      tpu.vector_store %arg27[%c0_102, %c0_103], %185 {strides = array<i32>} : memref<10x48xf32, #tpu.memory_space<vmem>>, vector<10x48xf32>,
    } else {
    }
    %c0 = arith.constant 0 : index
    %c0_1 = arith.constant 0 : index
    %3 = vector.load %arg27[%c0, %c0_1] : memref<10x48xf32, #tpu.memory_space<vmem>>, vector<10x48xf32>
    %c0_2 = arith.constant 0 : index
    %c0_3 = arith.constant 0 : index
    %c0_4 = arith.constant 0 : index
    %4 = vector.load %arg4[%c0_2, %c0_3, %c0_4] : memref<1x1x48xf32, #tpu.memory_space<vmem>>, vector<1x1x48xf32>
    %5 = vector.shape_cast %4 : vector<1x1x48xf32> to vector<1x48xf32>
    %c0_5 = arith.constant 0 : index
    %c0_6 = arith.constant 0 : index
    %c0_7 = arith.constant 0 : index
    %6 = vector.load %arg5[%c0_5, %c0_6, %c0_7] : memref<1x1x48xf32, #tpu.memory_space<vmem>>, vector<1x1x48xf32>
    %7 = vector.shape_cast %6 : vector<1x1x48xf32> to vector<1x48xf32>
    %cst = arith.constant dense<0.000000e+00> : vector<10xf32>
    %8 = vector.multi_reduction <add>, %3, %cst [1] : vector<10x48xf32> to vector<10xf32>
    %9 = vector.shape_cast %8 : vector<10xf32> to vector<10x1xf32>
    %cst_8 = arith.constant 4.800000e+01 : f32
    %10 = vector.broadcast %cst_8 : f32 to vector<10x1xf32>
    %11 = arith.divf %9, %10 : vector<10x1xf32>
    %12 = vector.broadcast %11 : vector<10x1xf32> to vector<10x48xf32>
    %13 = arith.subf %3, %12 : vector<10x48xf32>
    %14 = arith.mulf %13, %13 : vector<10x48xf32>
    %cst_9 = arith.constant dense<0.000000e+00> : vector<10xf32>
    %15 = vector.multi_reduction <add>, %14, %cst_9 [1] : vector<10x48xf32> to vector<10xf32>
    %16 = vector.shape_cast %15 : vector<10xf32> to vector<10x1xf32>
    %cst_10 = arith.constant 4.800000e+01 : f32
    %17 = vector.broadcast %cst_10 : f32 to vector<10x1xf32>
    %18 = arith.divf %16, %17 : vector<10x1xf32>
    %19 = vector.broadcast %11 : vector<10x1xf32> to vector<10x48xf32>
    %20 = arith.subf %3, %19 : vector<10x48xf32>
    %cst_11 = arith.constant 9.99999996E-13 : f32
    %21 = vector.broadcast %cst_11 : f32 to vector<10x1xf32>
    %22 = arith.addf %18, %21 : vector<10x1xf32>
    %23 = math.rsqrt %22 : vector<10x1xf32>
    %24 = vector.broadcast %23 : vector<10x1xf32> to vector<10x48xf32>
    %25 = arith.mulf %20, %24 : vector<10x48xf32>
    %26 = vector.broadcast %5 : vector<1x48xf32> to vector<10x48xf32>
    %27 = arith.mulf %25, %26 : vector<10x48xf32>
    %28 = vector.broadcast %7 : vector<1x48xf32> to vector<10x48xf32>
    %29 = arith.addf %27, %28 : vector<10x48xf32>
    %c0_12 = arith.constant 0 : index
    %c0_13 = arith.constant 0 : index
    %c0_14 = arith.constant 0 : index
    %c0_15 = arith.constant 0 : index
    %30 = vector.load %arg6[%c0_12, %c0_13, %c0_14, %c0_15] : memref<1x3x48x16xbf16, #tpu.memory_space<vmem>>, vector<1x3x48x16xbf16>
    %31 = vector.shape_cast %30 : vector<1x3x48x16xbf16> to vector<3x48x16xbf16>
    %c0_16 = arith.constant 0 : index
    %c0_17 = arith.constant 0 : index
    %c0_18 = arith.constant 0 : index
    %c0_19 = arith.constant 0 : index
    %32 = vector.load %arg8[%c0_16, %c0_17, %c0_18, %c0_19] : memref<1x3x48x16xbf16, #tpu.memory_space<vmem>>, vector<1x3x48x16xbf16>
    %33 = vector.shape_cast %32 : vector<1x3x48x16xbf16> to vector<3x48x16xbf16>
    %c0_20 = arith.constant 0 : index
    %c0_21 = arith.constant 0 : index
    %c0_22 = arith.constant 0 : index
    %c0_23 = arith.constant 0 : index
    %34 = vector.load %arg10[%c0_20, %c0_21, %c0_22, %c0_23] : memref<1x3x48x16xbf16, #tpu.memory_space<vmem>>, vector<1x3x48x16xbf16>
    %35 = vector.shape_cast %34 : vector<1x3x48x16xbf16> to vector<3x48x16xbf16>
    %c0_24 = arith.constant 0 : index
    %c0_25 = arith.constant 0 : index
    %c0_26 = arith.constant 0 : index
    %c0_27 = arith.constant 0 : index
    %36 = vector.load %arg7[%c0_24, %c0_25, %c0_26, %c0_27] : memref<1x3x1x16xf32, #tpu.memory_space<vmem>>, vector<1x3x1x16xf32>
    %37 = vector.shape_cast %36 : vector<1x3x1x16xf32> to vector<3x1x16xf32>
    %c0_28 = arith.constant 0 : index
    %c0_29 = arith.constant 0 : index
    %c0_30 = arith.constant 0 : index
    %c0_31 = arith.constant 0 : index
    %38 = vector.load %arg9[%c0_28, %c0_29, %c0_30, %c0_31] : memref<1x3x1x16xf32, #tpu.memory_space<vmem>>, vector<1x3x1x16xf32>
    %39 = vector.shape_cast %38 : vector<1x3x1x16xf32> to vector<3x1x16xf32>
    %c0_32 = arith.constant 0 : index
    %c0_33 = arith.constant 0 : index
    %c0_34 = arith.constant 0 : index
    %c0_35 = arith.constant 0 : index
    %40 = vector.load %arg11[%c0_32, %c0_33, %c0_34, %c0_35] : memref<1x3x1x16xf32, #tpu.memory_space<vmem>>, vector<1x3x1x16xf32>
    %41 = vector.shape_cast %40 : vector<1x3x1x16xf32> to vector<3x1x16xf32>
    %c0_36 = arith.constant 0 : index
    %c0_37 = arith.constant 0 : index
    %c0_38 = arith.constant 0 : index
    %c0_39 = arith.constant 0 : index
    %42 = vector.load %arg12[%c0_36, %c0_37, %c0_38, %c0_39] : memref<1x3x16x48xbf16, #tpu.memory_space<vmem>>, vector<1x3x16x48xbf16>
    %43 = vector.shape_cast %42 : vector<1x3x16x48xbf16> to vector<3x16x48xbf16>
    %44 = vector.extract_strided_slice %29 {offsets = [0, 0], sizes = [5, 48], strides = [1, 1]} : vector<10x48xf32> to vector<5x48xf32>
    %45 = vector.shape_cast %44 : vector<5x48xf32> to vector<1x5x48xf32>
    %46 = arith.truncf %45 : vector<1x5x48xf32> to vector<1x5x48xbf16>
    %47 = vector.shape_cast %46 : vector<1x5x48xbf16> to vector<1x5x48xbf16>
    %48 = vector.broadcast %47 : vector<1x5x48xbf16> to vector<3x5x48xbf16>
    "tpu.trace_start"() <{level = 10 : i32, message = "hsd,hdk->hsk"}> : () -> ()
    %cst_40 = arith.constant dense<0.000000e+00> : vector<3x5x16xf32>
    %49 = tpu.matmul %48, %31, %cst_40 {dimension_numbers = #tpu.dot_dimension_numbers<[2], [1], [1], [2], [0, 0, 0, 1, 1, 2], [0], [0]>} : vector<3x5x48xbf16>, vector<3x48x16xbf16>, vector<3x5x16xf32> -> vector<3x5x16xf32>
    "tpu.trace_stop"() : () -> ()
    %50 = vector.broadcast %37 : vector<3x1x16xf32> to vector<3x5x16xf32>
    %51 = arith.addf %49, %50 : vector<3x5x16xf32>
    "tpu.trace_start"() <{level = 10 : i32, message = "hsd,hdk->hsk"}> : () -> ()
    %cst_41 = arith.constant dense<0.000000e+00> : vector<3x5x16xf32>
    %52 = tpu.matmul %48, %33, %cst_41 {dimension_numbers = #tpu.dot_dimension_numbers<[2], [1], [1], [2], [0, 0, 0, 1, 1, 2], [0], [0]>} : vector<3x5x48xbf16>, vector<3x48x16xbf16>, vector<3x5x16xf32> -> vector<3x5x16xf32>
    "tpu.trace_stop"() : () -> ()
    %53 = vector.broadcast %39 : vector<3x1x16xf32> to vector<3x5x16xf32>
    %54 = arith.addf %52, %53 : vector<3x5x16xf32>
    "tpu.trace_start"() <{level = 10 : i32, message = "hsd,hdk->hsk"}> : () -> ()
    %cst_42 = arith.constant dense<0.000000e+00> : vector<3x5x16xf32>
    %55 = tpu.matmul %48, %35, %cst_42 {dimension_numbers = #tpu.dot_dimension_numbers<[2], [1], [1], [2], [0, 0, 0, 1, 1, 2], [0], [0]>} : vector<3x5x48xbf16>, vector<3x48x16xbf16>, vector<3x5x16xf32> -> vector<3x5x16xf32>
    "tpu.trace_stop"() : () -> ()
    %56 = vector.broadcast %41 : vector<3x1x16xf32> to vector<3x5x16xf32>
    %57 = arith.addf %55, %56 : vector<3x5x16xf32>
    %58 = arith.truncf %51 : vector<3x5x16xf32> to vector<3x5x16xbf16>
    %59 = arith.truncf %54 : vector<3x5x16xf32> to vector<3x5x16xbf16>
    "tpu.trace_start"() <{level = 10 : i32, message = "hqd,hkd->hqk"}> : () -> ()
    %cst_43 = arith.constant dense<0.000000e+00> : vector<3x5x5xf32>
    %60 = tpu.matmul %58, %59, %cst_43 {dimension_numbers = #tpu.dot_dimension_numbers<[2], [2], [1], [1], [0, 0, 0, 1, 1, 1], [0], [0]>} : vector<3x5x16xbf16>, vector<3x5x16xbf16>, vector<3x5x5xf32> -> vector<3x5x5xf32>
    "tpu.trace_stop"() : () -> ()
    %cst_44 = arith.constant 2.500000e-01 : f32
    %61 = vector.broadcast %cst_44 : f32 to vector<3x5x5xf32>
    %62 = arith.mulf %60, %61 : vector<3x5x5xf32>
    %cst_45 = arith.constant dense<0xFF800000> : vector<3x5xf32>
    %63 = vector.multi_reduction <maximumf>, %62, %cst_45 [2] : vector<3x5x5xf32> to vector<3x5xf32>
    %64 = vector.shape_cast %63 : vector<3x5xf32> to vector<3x5x1xf32>
    %65 = vector.broadcast %64 : vector<3x5x1xf32> to vector<3x5x5xf32>
    %66 = arith.subf %62, %65 : vector<3x5x5xf32>
    %67 = math.exp %66 : vector<3x5x5xf32>
    %cst_46 = arith.constant dense<0.000000e+00> : vector<3x5xf32>
    %68 = vector.multi_reduction <add>, %67, %cst_46 [2] : vector<3x5x5xf32> to vector<3x5xf32>
    %69 = vector.shape_cast %68 : vector<3x5xf32> to vector<3x5x1xf32>
    %70 = tpu.reciprocal %69 {approx = true} : vector<3x5x1xf32> -> vector<3x5x1xf32>
    %71 = vector.broadcast %70 : vector<3x5x1xf32> to vector<3x5x5xf32>
    %72 = arith.mulf %67, %71 : vector<3x5x5xf32>
    %73 = arith.truncf %72 : vector<3x5x5xf32> to vector<3x5x5xbf16>
    %74 = arith.truncf %57 : vector<3x5x16xf32> to vector<3x5x16xbf16>
    "tpu.trace_start"() <{level = 10 : i32, message = "hqk,hkd->hqd"}> : () -> ()
    %cst_47 = arith.constant dense<0.000000e+00> : vector<3x5x16xf32>
    %75 = tpu.matmul %73, %74, %cst_47 {dimension_numbers = #tpu.dot_dimension_numbers<[2], [1], [1], [2], [0, 0, 0, 1, 1, 2], [0], [0]>} : vector<3x5x5xbf16>, vector<3x5x16xbf16>, vector<3x5x16xf32> -> vector<3x5x16xf32>
    "tpu.trace_stop"() : () -> ()
    %76 = arith.truncf %75 : vector<3x5x16xf32> to vector<3x5x16xbf16>
    "tpu.trace_start"() <{level = 10 : i32, message = "hsd,hde->hse"}> : () -> ()
    %cst_48 = arith.constant dense<0.000000e+00> : vector<3x5x48xf32>
    %77 = tpu.matmul %76, %43, %cst_48 {dimension_numbers = #tpu.dot_dimension_numbers<[2], [1], [1], [2], [0, 0, 0, 1, 1, 2], [0], [0]>} : vector<3x5x16xbf16>, vector<3x16x48xbf16>, vector<3x5x48xf32> -> vector<3x5x48xf32>
    "tpu.trace_stop"() : () -> ()
    %cst_49 = arith.constant dense<0.000000e+00> : vector<5x48xf32>
    %78 = vector.multi_reduction <add>, %77, %cst_49 [0] : vector<3x5x48xf32> to vector<5x48xf32>
    %79 = vector.extract_strided_slice %29 {offsets = [5, 0], sizes = [5, 48], strides = [1, 1]} : vector<10x48xf32> to vector<5x48xf32>
    %80 = vector.shape_cast %79 : vector<5x48xf32> to vector<1x5x48xf32>
    %81 = arith.truncf %80 : vector<1x5x48xf32> to vector<1x5x48xbf16>
    %82 = vector.shape_cast %81 : vector<1x5x48xbf16> to vector<1x5x48xbf16>
    %83 = vector.broadcast %82 : vector<1x5x48xbf16> to vector<3x5x48xbf16>
    "tpu.trace_start"() <{level = 10 : i32, message = "hsd,hdk->hsk"}> : () -> ()
    %cst_50 = arith.constant dense<0.000000e+00> : vector<3x5x16xf32>
    %84 = tpu.matmul %83, %31, %cst_50 {dimension_numbers = #tpu.dot_dimension_numbers<[2], [1], [1], [2], [0, 0, 0, 1, 1, 2], [0], [0]>} : vector<3x5x48xbf16>, vector<3x48x16xbf16>, vector<3x5x16xf32> -> vector<3x5x16xf32>
    "tpu.trace_stop"() : () -> ()
    %85 = vector.broadcast %37 : vector<3x1x16xf32> to vector<3x5x16xf32>
    %86 = arith.addf %84, %85 : vector<3x5x16xf32>
    "tpu.trace_start"() <{level = 10 : i32, message = "hsd,hdk->hsk"}> : () -> ()
    %cst_51 = arith.constant dense<0.000000e+00> : vector<3x5x16xf32>
    %87 = tpu.matmul %83, %33, %cst_51 {dimension_numbers = #tpu.dot_dimension_numbers<[2], [1], [1], [2], [0, 0, 0, 1, 1, 2], [0], [0]>} : vector<3x5x48xbf16>, vector<3x48x16xbf16>, vector<3x5x16xf32> -> vector<3x5x16xf32>
    "tpu.trace_stop"() : () -> ()
    %88 = vector.broadcast %39 : vector<3x1x16xf32> to vector<3x5x16xf32>
    %89 = arith.addf %87, %88 : vector<3x5x16xf32>
    "tpu.trace_start"() <{level = 10 : i32, message = "hsd,hdk->hsk"}> : () -> ()
    %cst_52 = arith.constant dense<0.000000e+00> : vector<3x5x16xf32>
    %90 = tpu.matmul %83, %35, %cst_52 {dimension_numbers = #tpu.dot_dimension_numbers<[2], [1], [1], [2], [0, 0, 0, 1, 1, 2], [0], [0]>} : vector<3x5x48xbf16>, vector<3x48x16xbf16>, vector<3x5x16xf32> -> vector<3x5x16xf32>
    "tpu.trace_stop"() : () -> ()
    %91 = vector.broadcast %41 : vector<3x1x16xf32> to vector<3x5x16xf32>
    %92 = arith.addf %90, %91 : vector<3x5x16xf32>
    %93 = arith.truncf %86 : vector<3x5x16xf32> to vector<3x5x16xbf16>
    %94 = arith.truncf %89 : vector<3x5x16xf32> to vector<3x5x16xbf16>
    "tpu.trace_start"() <{level = 10 : i32, message = "hqd,hkd->hqk"}> : () -> ()
    %cst_53 = arith.constant dense<0.000000e+00> : vector<3x5x5xf32>
    %95 = tpu.matmul %93, %94, %cst_53 {dimension_numbers = #tpu.dot_dimension_numbers<[2], [2], [1], [1], [0, 0, 0, 1, 1, 1], [0], [0]>} : vector<3x5x16xbf16>, vector<3x5x16xbf16>, vector<3x5x5xf32> -> vector<3x5x5xf32>
    "tpu.trace_stop"() : () -> ()
    %cst_54 = arith.constant 2.500000e-01 : f32
    %96 = vector.broadcast %cst_54 : f32 to vector<3x5x5xf32>
    %97 = arith.mulf %95, %96 : vector<3x5x5xf32>
    %cst_55 = arith.constant dense<0xFF800000> : vector<3x5xf32>
    %98 = vector.multi_reduction <maximumf>, %97, %cst_55 [2] : vector<3x5x5xf32> to vector<3x5xf32>
    %99 = vector.shape_cast %98 : vector<3x5xf32> to vector<3x5x1xf32>
    %100 = vector.broadcast %99 : vector<3x5x1xf32> to vector<3x5x5xf32>
    %101 = arith.subf %97, %100 : vector<3x5x5xf32>
    %102 = math.exp %101 : vector<3x5x5xf32>
    %cst_56 = arith.constant dense<0.000000e+00> : vector<3x5xf32>
    %103 = vector.multi_reduction <add>, %102, %cst_56 [2] : vector<3x5x5xf32> to vector<3x5xf32>
    %104 = vector.shape_cast %103 : vector<3x5xf32> to vector<3x5x1xf32>
    %105 = tpu.reciprocal %104 {approx = true} : vector<3x5x1xf32> -> vector<3x5x1xf32>
    %106 = vector.broadcast %105 : vector<3x5x1xf32> to vector<3x5x5xf32>
    %107 = arith.mulf %102, %106 : vector<3x5x5xf32>
    %108 = arith.truncf %107 : vector<3x5x5xf32> to vector<3x5x5xbf16>
    %109 = arith.truncf %92 : vector<3x5x16xf32> to vector<3x5x16xbf16>
    "tpu.trace_start"() <{level = 10 : i32, message = "hqk,hkd->hqd"}> : () -> ()
    %cst_57 = arith.constant dense<0.000000e+00> : vector<3x5x16xf32>
    %110 = tpu.matmul %108, %109, %cst_57 {dimension_numbers = #tpu.dot_dimension_numbers<[2], [1], [1], [2], [0, 0, 0, 1, 1, 2], [0], [0]>} : vector<3x5x5xbf16>, vector<3x5x16xbf16>, vector<3x5x16xf32> -> vector<3x5x16xf32>
    "tpu.trace_stop"() : () -> ()
    %111 = arith.truncf %110 : vector<3x5x16xf32> to vector<3x5x16xbf16>
    "tpu.trace_start"() <{level = 10 : i32, message = "hsd,hde->hse"}> : () -> ()
    %cst_58 = arith.constant dense<0.000000e+00> : vector<3x5x48xf32>
    %112 = tpu.matmul %111, %43, %cst_58 {dimension_numbers = #tpu.dot_dimension_numbers<[2], [1], [1], [2], [0, 0, 0, 1, 1, 2], [0], [0]>} : vector<3x5x16xbf16>, vector<3x16x48xbf16>, vector<3x5x48xf32> -> vector<3x5x48xf32>
    "tpu.trace_stop"() : () -> ()
    %cst_59 = arith.constant dense<0.000000e+00> : vector<5x48xf32>
    %113 = vector.multi_reduction <add>, %112, %cst_59 [0] : vector<3x5x48xf32> to vector<5x48xf32>
    %114 = tpu.concatenate %78, %113 in 0 : vector<5x48xf32>, vector<5x48xf32> -> vector<10x48xf32>
    %115 = arith.addf %3, %114 : vector<10x48xf32>
    %c0_60 = arith.constant 0 : index
    %c0_61 = arith.constant 0 : index
    %c0_62 = arith.constant 0 : index
    %116 = vector.load %arg13[%c0_60, %c0_61, %c0_62] : memref<1x1x48xf32, #tpu.memory_space<vmem>>, vector<1x1x48xf32>
    %117 = vector.shape_cast %116 : vector<1x1x48xf32> to vector<1x48xf32>
    %118 = vector.broadcast %117 : vector<1x48xf32> to vector<10x48xf32>
    %119 = arith.addf %115, %118 : vector<10x48xf32>
    %c0_63 = arith.constant 0 : index
    %c0_64 = arith.constant 0 : index
    %c0_65 = arith.constant 0 : index
    %120 = vector.load %arg14[%c0_63, %c0_64, %c0_65] : memref<1x1x48xf32, #tpu.memory_space<vmem>>, vector<1x1x48xf32>
    %121 = vector.shape_cast %120 : vector<1x1x48xf32> to vector<1x48xf32>
    %c0_66 = arith.constant 0 : index
    %c0_67 = arith.constant 0 : index
    %c0_68 = arith.constant 0 : index
    %122 = vector.load %arg15[%c0_66, %c0_67, %c0_68] : memref<1x1x48xf32, #tpu.memory_space<vmem>>, vector<1x1x48xf32>
    %123 = vector.shape_cast %122 : vector<1x1x48xf32> to vector<1x48xf32>
    %cst_69 = arith.constant dense<0.000000e+00> : vector<10xf32>
    %124 = vector.multi_reduction <add>, %119, %cst_69 [1] : vector<10x48xf32> to vector<10xf32>
    %125 = vector.shape_cast %124 : vector<10xf32> to vector<10x1xf32>
    %cst_70 = arith.constant 4.800000e+01 : f32
    %126 = vector.broadcast %cst_70 : f32 to vector<10x1xf32>
    %127 = arith.divf %125, %126 : vector<10x1xf32>
    %128 = vector.broadcast %127 : vector<10x1xf32> to vector<10x48xf32>
    %129 = arith.subf %119, %128 : vector<10x48xf32>
    %130 = arith.mulf %129, %129 : vector<10x48xf32>
    %cst_71 = arith.constant dense<0.000000e+00> : vector<10xf32>
    %131 = vector.multi_reduction <add>, %130, %cst_71 [1] : vector<10x48xf32> to vector<10xf32>
    %132 = vector.shape_cast %131 : vector<10xf32> to vector<10x1xf32>
    %cst_72 = arith.constant 4.800000e+01 : f32
    %133 = vector.broadcast %cst_72 : f32 to vector<10x1xf32>
    %134 = arith.divf %132, %133 : vector<10x1xf32>
    %135 = vector.broadcast %127 : vector<10x1xf32> to vector<10x48xf32>
    %136 = arith.subf %119, %135 : vector<10x48xf32>
    %cst_73 = arith.constant 9.99999996E-13 : f32
    %137 = vector.broadcast %cst_73 : f32 to vector<10x1xf32>
    %138 = arith.addf %134, %137 : vector<10x1xf32>
    %139 = math.rsqrt %138 : vector<10x1xf32>
    %140 = vector.broadcast %139 : vector<10x1xf32> to vector<10x48xf32>
    %141 = arith.mulf %136, %140 : vector<10x48xf32>
    %142 = vector.broadcast %121 : vector<1x48xf32> to vector<10x48xf32>
    %143 = arith.mulf %141, %142 : vector<10x48xf32>
    %144 = vector.broadcast %123 : vector<1x48xf32> to vector<10x48xf32>
    %145 = arith.addf %143, %144 : vector<10x48xf32>
    %c0_74 = arith.constant 0 : index
    %c0_75 = arith.constant 0 : index
    %c0_76 = arith.constant 0 : index
    %146 = vector.load %arg16[%c0_74, %c0_75, %c0_76] : memref<1x48x96xbf16, #tpu.memory_space<vmem>>, vector<1x48x96xbf16>
    %147 = vector.shape_cast %146 : vector<1x48x96xbf16> to vector<48x96xbf16>
    %148 = arith.truncf %145 : vector<10x48xf32> to vector<10x48xbf16>
    %cst_77 = arith.constant dense<0.000000e+00> : vector<10x96xf32>
    %149 = tpu.matmul %148, %147, %cst_77 {dimension_numbers = #tpu.dot_dimension_numbers<[1], [0], [0], [1], [0, 0, 1, 1], [], []>} : vector<10x48xbf16>, vector<48x96xbf16>, vector<10x96xf32> -> vector<10x96xf32>
    %c0_78 = arith.constant 0 : index
    %c0_79 = arith.constant 0 : index
    %c0_80 = arith.constant 0 : index
    %150 = vector.load %arg17[%c0_78, %c0_79, %c0_80] : memref<1x1x96xf32, #tpu.memory_space<vmem>>, vector<1x1x96xf32>
    %151 = vector.shape_cast %150 : vector<1x1x96xf32> to vector<1x96xf32>
    %152 = vector.broadcast %151 : vector<1x96xf32> to vector<10x96xf32>
    %153 = arith.addf %149, %152 : vector<10x96xf32>
    %cst_81 = arith.constant 5.000000e-01 : f32
    %154 = vector.broadcast %cst_81 : f32 to vector<10x96xf32>
    %155 = arith.mulf %154, %153 : vector<10x96xf32>
    %cst_82 = arith.constant 4.471500e-02 : f32
    %156 = vector.broadcast %cst_82 : f32 to vector<10x96xf32>
    %157 = arith.mulf %156, %153 : vector<10x96xf32>
    %158 = arith.mulf %157, %153 : vector<10x96xf32>
    %159 = arith.mulf %158, %153 : vector<10x96xf32>
    %160 = arith.addf %153, %159 : vector<10x96xf32>
    %cst_83 = arith.constant 0.797884583 : f32
    %161 = vector.broadcast %cst_83 : f32 to vector<10x96xf32>
    %162 = arith.mulf %161, %160 : vector<10x96xf32>
    %163 = math.tanh %162 : vector<10x96xf32>
    %cst_84 = arith.constant 1.000000e+00 : f32
    %164 = vector.broadcast %cst_84 : f32 to vector<10x96xf32>
    %165 = arith.addf %164, %163 : vector<10x96xf32>
    %166 = arith.mulf %155, %165 : vector<10x96xf32>
    %c0_85 = arith.constant 0 : index
    %c0_86 = arith.constant 0 : index
    %c0_87 = arith.constant 0 : index
    %167 = vector.load %arg18[%c0_85, %c0_86, %c0_87] : memref<1x96x48xbf16, #tpu.memory_space<vmem>>, vector<1x96x48xbf16>
    %168 = vector.shape_cast %167 : vector<1x96x48xbf16> to vector<96x48xbf16>
    %169 = arith.truncf %166 : vector<10x96xf32> to vector<10x96xbf16>
    %cst_88 = arith.constant dense<0.000000e+00> : vector<10x48xf32>
    %170 = tpu.matmul %169, %168, %cst_88 {dimension_numbers = #tpu.dot_dimension_numbers<[1], [0], [0], [1], [0, 0, 1, 1], [], []>} : vector<10x96xbf16>, vector<96x48xbf16>, vector<10x48xf32> -> vector<10x48xf32>
    %171 = arith.addf %119, %170 : vector<10x48xf32>
    %c0_89 = arith.constant 0 : index
    %c0_90 = arith.constant 0 : index
    %c0_91 = arith.constant 0 : index
    %172 = vector.load %arg19[%c0_89, %c0_90, %c0_91] : memref<1x1x48xf32, #tpu.memory_space<vmem>>, vector<1x1x48xf32>
    %173 = vector.shape_cast %172 : vector<1x1x48xf32> to vector<1x48xf32>
    %174 = vector.broadcast %173 : vector<1x48xf32> to vector<10x48xf32>
    %175 = arith.addf %171, %174 : vector<10x48xf32>
    %c0_92 = arith.constant 0 : index
    %c0_93 = arith.constant 0 : index
    %176 = vector.load %arg27[%c0_92, %c0_93] : memref<10x48xf32, #tpu.memory_space<vmem>>, vector<10x48xf32>
    tpu.vector_store %arg27[%c0_92, %c0_93], %175 {strides = array<i32>} : memref<10x48xf32, #tpu.memory_space<vmem>>, vector<10x48xf32>,
    %c1_i32 = arith.constant 1 : i32
    %177 = arith.cmpi eq, %arg0, %c1_i32 : i32
    %178 = arith.extui %177 : i1 to i32
    %c0_i32_94 = arith.constant 0 : i32
    %179 = arith.cmpi ne, %178, %c0_i32_94 : i32
    scf.if %179 {
      %180 = vector.extract_strided_slice %175 {offsets = [0, 0], sizes = [1, 48], strides = [1, 1]} : vector<10x48xf32> to vector<1x48xf32>
      %181 = vector.extract_strided_slice %175 {offsets = [5, 0], sizes = [1, 48], strides = [1, 1]} : vector<10x48xf32> to vector<1x48xf32>
      %182 = tpu.concatenate %180, %181 in 0 : vector<1x48xf32>, vector<1x48xf32> -> vector<2x48xf32>
      %c0_95 = arith.constant 0 : index
      %c0_96 = arith.constant 0 : index
      %183 = vector.load %arg20[%c0_95, %c0_96] : memref<1x48xf32, #tpu.memory_space<vmem>>, vector<1x48xf32>
      %c0_97 = arith.constant 0 : index
      %c0_98 = arith.constant 0 : index
      %184 = vector.load %arg21[%c0_97, %c0_98] : memref<1x48xf32, #tpu.memory_space<vmem>>, vector<1x48xf32>
      %cst_99 = arith.constant dense<0.000000e+00> : vector<2xf32>
      %185 = vector.multi_reduction <add>, %182, %cst_99 [1] : vector<2x48xf32> to vector<2xf32>
      %186 = vector.shape_cast %185 : vector<2xf32> to vector<2x1xf32>
      %cst_100 = arith.constant 4.800000e+01 : f32
      %187 = vector.broadcast %cst_100 : f32 to vector<2x1xf32>
      %188 = arith.divf %186, %187 : vector<2x1xf32>
      %189 = vector.broadcast %188 : vector<2x1xf32> to vector<2x48xf32>
      %190 = arith.subf %182, %189 : vector<2x48xf32>
      %191 = arith.mulf %190, %190 : vector<2x48xf32>
      %cst_101 = arith.constant dense<0.000000e+00> : vector<2xf32>
      %192 = vector.multi_reduction <add>, %191, %cst_101 [1] : vector<2x48xf32> to vector<2xf32>
      %193 = vector.shape_cast %192 : vector<2xf32> to vector<2x1xf32>
      %cst_102 = arith.constant 4.800000e+01 : f32
      %194 = vector.broadcast %cst_102 : f32 to vector<2x1xf32>
      %195 = arith.divf %193, %194 : vector<2x1xf32>
      %196 = vector.broadcast %188 : vector<2x1xf32> to vector<2x48xf32>
      %197 = arith.subf %182, %196 : vector<2x48xf32>
      %cst_103 = arith.constant 9.99999996E-13 : f32
      %198 = vector.broadcast %cst_103 : f32 to vector<2x1xf32>
      %199 = arith.addf %195, %198 : vector<2x1xf32>
      %200 = math.rsqrt %199 : vector<2x1xf32>
      %201 = vector.broadcast %200 : vector<2x1xf32> to vector<2x48xf32>
      %202 = arith.mulf %197, %201 : vector<2x48xf32>
      %203 = vector.broadcast %183 : vector<1x48xf32> to vector<2x48xf32>
      %204 = arith.mulf %202, %203 : vector<2x48xf32>
      %205 = vector.broadcast %184 : vector<1x48xf32> to vector<2x48xf32>
      %206 = arith.addf %204, %205 : vector<2x48xf32>
      %c0_104 = arith.constant 0 : index
      %c0_105 = arith.constant 0 : index
      %207 = vector.load %arg22[%c0_104, %c0_105] : memref<48x24xbf16, #tpu.memory_space<vmem>>, vector<48x24xbf16>
      %208 = arith.truncf %206 : vector<2x48xf32> to vector<2x48xbf16>
      %cst_106 = arith.constant dense<0.000000e+00> : vector<2x24xf32>
      %209 = tpu.matmul %208, %207, %cst_106 {dimension_numbers = #tpu.dot_dimension_numbers<[1], [0], [0], [1], [0, 0, 1, 1], [], []>} : vector<2x48xbf16>, vector<48x24xbf16>, vector<2x24xf32> -> vector<2x24xf32>
      %c0_107 = arith.constant 0 : index
      %c0_108 = arith.constant 0 : index
      %210 = vector.load %arg23[%c0_107, %c0_108] : memref<1x24xf32, #tpu.memory_space<vmem>>, vector<1x24xf32>
      %211 = vector.broadcast %210 : vector<1x24xf32> to vector<2x24xf32>
      %212 = arith.addf %209, %211 : vector<2x24xf32>
      %cst_109 = arith.constant 5.000000e-01 : f32
      %213 = vector.broadcast %cst_109 : f32 to vector<2x24xf32>
      %214 = arith.mulf %213, %212 : vector<2x24xf32>
      %cst_110 = arith.constant 4.471500e-02 : f32
      %215 = vector.broadcast %cst_110 : f32 to vector<2x24xf32>
      %216 = arith.mulf %215, %212 : vector<2x24xf32>
      %217 = arith.mulf %216, %212 : vector<2x24xf32>
      %218 = arith.mulf %217, %212 : vector<2x24xf32>
      %219 = arith.addf %212, %218 : vector<2x24xf32>
      %cst_111 = arith.constant 0.797884583 : f32
      %220 = vector.broadcast %cst_111 : f32 to vector<2x24xf32>
      %221 = arith.mulf %220, %219 : vector<2x24xf32>
      %222 = math.tanh %221 : vector<2x24xf32>
      %cst_112 = arith.constant 1.000000e+00 : f32
      %223 = vector.broadcast %cst_112 : f32 to vector<2x24xf32>
      %224 = arith.addf %223, %222 : vector<2x24xf32>
      %225 = arith.mulf %214, %224 : vector<2x24xf32>
      %c0_113 = arith.constant 0 : index
      %c0_114 = arith.constant 0 : index
      %226 = vector.load %arg24[%c0_113, %c0_114] : memref<24x7xbf16, #tpu.memory_space<vmem>>, vector<24x7xbf16>
      %227 = arith.truncf %225 : vector<2x24xf32> to vector<2x24xbf16>
      %cst_115 = arith.constant dense<0.000000e+00> : vector<2x7xf32>
      %228 = tpu.matmul %227, %226, %cst_115 {dimension_numbers = #tpu.dot_dimension_numbers<[1], [0], [0], [1], [0, 0, 1, 1], [], []>} : vector<2x24xbf16>, vector<24x7xbf16>, vector<2x7xf32> -> vector<2x7xf32>
      %c0_116 = arith.constant 0 : index
      %c0_117 = arith.constant 0 : index
      %229 = vector.load %arg25[%c0_116, %c0_117] : memref<1x7xf32, #tpu.memory_space<vmem>>, vector<1x7xf32>
      %230 = vector.broadcast %229 : vector<1x7xf32> to vector<2x7xf32>
      %231 = arith.addf %228, %230 : vector<2x7xf32>
      %c0_118 = arith.constant 0 : index
      %c0_119 = arith.constant 0 : index
      %232 = vector.load %arg26[%c0_118, %c0_119] : memref<2x7xf32, #tpu.memory_space<vmem>>, vector<2x7xf32>
      tpu.vector_store %arg26[%c0_118, %c0_119], %231 {strides = array<i32>} : memref<2x7xf32, #tpu.memory_space<vmem>>, vector<2x7xf32>,
    } else {
    }
    return
  }
  func.func @transform_0(%arg0: i32) -> (i32, i32) {
    %c0_i32 = arith.constant 0 : i32
    %c0_i32_0 = arith.constant 0 : i32
    %c0_i32_1 = arith.constant 0 : i32
    return %c0_i32, %c0_i32_0 : i32, i32
  }
  func.func @transform_1(%arg0: i32) -> (i32, i32) {
    %c0_i32 = arith.constant 0 : i32
    %c0_i32_0 = arith.constant 0 : i32
    %c0_i32_1 = arith.constant 0 : i32
    return %c0_i32, %c0_i32_0 : i32, i32
  }
  func.func @transform_2(%arg0: i32) -> (i32, i32) {
    %c0_i32 = arith.constant 0 : i32
    %c0_i32_0 = arith.constant 0 : i32
    %c0_i32_1 = arith.constant 0 : i32
    return %c0_i32, %c0_i32_0 : i32, i32
  }
  func.func @transform_3(%arg0: i32) -> (i32, i32, i32) {
    %c0_i32 = arith.constant 0 : i32
    %c0_i32_0 = arith.constant 0 : i32
    %c0_i32_1 = arith.constant 0 : i32
    return %arg0, %c0_i32, %c0_i32_0 : i32, i32, i32
  }
  func.func @transform_4(%arg0: i32) -> (i32, i32, i32) {
    %c0_i32 = arith.constant 0 : i32
    %c0_i32_0 = arith.constant 0 : i32
    %c0_i32_1 = arith.constant 0 : i32
    return %arg0, %c0_i32, %c0_i32_0 : i32, i32, i32
  }
  func.func @transform_5(%arg0: i32) -> (i32, i32, i32, i32) {
    %c0_i32 = arith.constant 0 : i32
    %c0_i32_0 = arith.constant 0 : i32
    %c0_i32_1 = arith.constant 0 : i32
    %c0_i32_2 = arith.constant 0 : i32
    return %arg0, %c0_i32, %c0_i32_0, %c0_i32_1 : i32, i32, i32, i32
  }
  func.func @transform_6(%arg0: i32) -> (i32, i32, i32, i32) {
    %c0_i32 = arith.constant 0 : i32
    %c0_i32_0 = arith.constant 0 : i32
    %c0_i32_1 = arith.constant 0 : i32
    %c0_i32_2 = arith.constant 0 : i32
    return %arg0, %c0_i32, %c0_i32_0, %c0_i32_1 : i32, i32, i32, i32
  }
  func.func @transform_7(%arg0: i32) -> (i32, i32, i32, i32) {
    %c0_i32 = arith.constant 0 : i32
    %c0_i32_0 = arith.constant 0 : i32
    %c0_i32_1 = arith.constant 0 : i32
    %c0_i32_2 = arith.constant 0 : i32
    return %arg0, %c0_i32, %c0_i32_0, %c0_i32_1 : i32, i32, i32, i32
  }
  func.func @transform_8(%arg0: i32) -> (i32, i32, i32, i32) {
    %c0_i32 = arith.constant 0 : i32
    %c0_i32_0 = arith.constant 0 : i32
    %c0_i32_1 = arith.constant 0 : i32
    %c0_i32_2 = arith.constant 0 : i32
    return %arg0, %c0_i32, %c0_i32_0, %c0_i32_1 : i32, i32, i32, i32
  }
  func.func @transform_9(%arg0: i32) -> (i32, i32, i32, i32) {
    %c0_i32 = arith.constant 0 : i32
    %c0_i32_0 = arith.constant 0 : i32
    %c0_i32_1 = arith.constant 0 : i32
    %c0_i32_2 = arith.constant 0 : i32
    return %arg0, %c0_i32, %c0_i32_0, %c0_i32_1 : i32, i32, i32, i32
  }
  func.func @transform_10(%arg0: i32) -> (i32, i32, i32, i32) {
    %c0_i32 = arith.constant 0 : i32
    %c0_i32_0 = arith.constant 0 : i32
    %c0_i32_1 = arith.constant 0 : i32
    %c0_i32_2 = arith.constant 0 : i32
    return %arg0, %c0_i32, %c0_i32_0, %c0_i32_1 : i32, i32, i32, i32
  }
  func.func @transform_11(%arg0: i32) -> (i32, i32, i32, i32) {
    %c0_i32 = arith.constant 0 : i32
    %c0_i32_0 = arith.constant 0 : i32
    %c0_i32_1 = arith.constant 0 : i32
    %c0_i32_2 = arith.constant 0 : i32
    return %arg0, %c0_i32, %c0_i32_0, %c0_i32_1 : i32, i32, i32, i32
  }
  func.func @transform_12(%arg0: i32) -> (i32, i32, i32) {
    %c0_i32 = arith.constant 0 : i32
    %c0_i32_0 = arith.constant 0 : i32
    %c0_i32_1 = arith.constant 0 : i32
    return %arg0, %c0_i32, %c0_i32_0 : i32, i32, i32
  }
  func.func @transform_13(%arg0: i32) -> (i32, i32, i32) {
    %c0_i32 = arith.constant 0 : i32
    %c0_i32_0 = arith.constant 0 : i32
    %c0_i32_1 = arith.constant 0 : i32
    return %arg0, %c0_i32, %c0_i32_0 : i32, i32, i32
  }
  func.func @transform_14(%arg0: i32) -> (i32, i32, i32) {
    %c0_i32 = arith.constant 0 : i32
    %c0_i32_0 = arith.constant 0 : i32
    %c0_i32_1 = arith.constant 0 : i32
    return %arg0, %c0_i32, %c0_i32_0 : i32, i32, i32
  }
  func.func @transform_15(%arg0: i32) -> (i32, i32, i32) {
    %c0_i32 = arith.constant 0 : i32
    %c0_i32_0 = arith.constant 0 : i32
    %c0_i32_1 = arith.constant 0 : i32
    return %arg0, %c0_i32, %c0_i32_0 : i32, i32, i32
  }
  func.func @transform_16(%arg0: i32) -> (i32, i32, i32) {
    %c0_i32 = arith.constant 0 : i32
    %c0_i32_0 = arith.constant 0 : i32
    %c0_i32_1 = arith.constant 0 : i32
    return %arg0, %c0_i32, %c0_i32_0 : i32, i32, i32
  }
  func.func @transform_17(%arg0: i32) -> (i32, i32, i32) {
    %c0_i32 = arith.constant 0 : i32
    %c0_i32_0 = arith.constant 0 : i32
    %c0_i32_1 = arith.constant 0 : i32
    return %arg0, %c0_i32, %c0_i32_0 : i32, i32, i32
  }
  func.func @transform_18(%arg0: i32) -> (i32, i32, i32) {
    %c0_i32 = arith.constant 0 : i32
    %c0_i32_0 = arith.constant 0 : i32
    %c0_i32_1 = arith.constant 0 : i32
    return %arg0, %c0_i32, %c0_i32_0 : i32, i32, i32
  }
  func.func @transform_19(%arg0: i32) -> (i32, i32) {
    %c0_i32 = arith.constant 0 : i32
    %c0_i32_0 = arith.constant 0 : i32
    %c0_i32_1 = arith.constant 0 : i32
    return %c0_i32, %c0_i32_0 : i32, i32
  }
  func.func @transform_20(%arg0: i32) -> (i32, i32) {
    %c0_i32 = arith.constant 0 : i32
    %c0_i32_0 = arith.constant 0 : i32
    %c0_i32_1 = arith.constant 0 : i32
    return %c0_i32, %c0_i32_0 : i32, i32
  }
  func.func @transform_21(%arg0: i32) -> (i32, i32) {
    %c0_i32 = arith.constant 0 : i32
    %c0_i32_0 = arith.constant 0 : i32
    %c0_i32_1 = arith.constant 0 : i32
    return %c0_i32, %c0_i32_0 : i32, i32
  }
  func.func @transform_22(%arg0: i32) -> (i32, i32) {
    %c0_i32 = arith.constant 0 : i32
    %c0_i32_0 = arith.constant 0 : i32
    %c0_i32_1 = arith.constant 0 : i32
    return %c0_i32, %c0_i32_0 : i32, i32
  }
  func.func @transform_23(%arg0: i32) -> (i32, i32) {
    %c0_i32 = arith.constant 0 : i32
    %c0_i32_0 = arith.constant 0 : i32
    %c0_i32_1 = arith.constant 0 : i32
    return %c0_i32, %c0_i32_0 : i32, i32
  }
  func.func @transform_24(%arg0: i32) -> (i32, i32) {
    %c0_i32 = arith.constant 0 : i32
    %c0_i32_0 = arith.constant 0 : i32
    %c0_i32_1 = arith.constant 0 : i32
    return %c0_i32, %c0_i32_0 : i32, i32
  }
  func.func @transform_25(%arg0: i32) -> (i32, i32) {
    %c0_i32 = arith.constant 0 : i32
    %c0_i32_0 = arith.constant 0 : i32
    %c0_i32_1 = arith.constant 0 : i32
    return %c0_i32, %c0_i32_0 : i32, i32
  }
}

module attributes {stable_mosaic.version = 11 : i64} {
  func.func @_vit_fused_kernel(%arg0: i32, %arg1: memref<10x768xf32, #tpu.memory_space<vmem>>, %arg2: memref<10x32xf32, #tpu.memory_space<vmem>>, %arg3: memref<768x32xbf16, #tpu.memory_space<vmem>>, %arg4: memref<1x1x32xf32, #tpu.memory_space<vmem>>, %arg5: memref<1x1x32xf32, #tpu.memory_space<vmem>>, %arg6: memref<1x2x32x16xbf16, #tpu.memory_space<vmem>>, %arg7: memref<1x2x1x16xf32, #tpu.memory_space<vmem>>, %arg8: memref<1x2x32x16xbf16, #tpu.memory_space<vmem>>, %arg9: memref<1x2x1x16xf32, #tpu.memory_space<vmem>>, %arg10: memref<1x2x32x16xbf16, #tpu.memory_space<vmem>>, %arg11: memref<1x2x1x16xf32, #tpu.memory_space<vmem>>, %arg12: memref<1x2x16x32xbf16, #tpu.memory_space<vmem>>, %arg13: memref<1x1x32xf32, #tpu.memory_space<vmem>>, %arg14: memref<1x1x32xf32, #tpu.memory_space<vmem>>, %arg15: memref<1x1x32xf32, #tpu.memory_space<vmem>>, %arg16: memref<1x32x64xbf16, #tpu.memory_space<vmem>>, %arg17: memref<1x1x64xf32, #tpu.memory_space<vmem>>, %arg18: memref<1x64x32xbf16, #tpu.memory_space<vmem>>, %arg19: memref<1x1x32xf32, #tpu.memory_space<vmem>>, %arg20: memref<1x32xf32, #tpu.memory_space<vmem>>, %arg21: memref<1x32xf32, #tpu.memory_space<vmem>>, %arg22: memref<32x16xbf16, #tpu.memory_space<vmem>>, %arg23: memref<1x16xf32, #tpu.memory_space<vmem>>, %arg24: memref<16x7xbf16, #tpu.memory_space<vmem>>, %arg25: memref<1x7xf32, #tpu.memory_space<vmem>>, %arg26: memref<2x7xf32, #tpu.memory_space<vmem>>, %arg27: memref<10x32xf32, #tpu.memory_space<vmem>>) attributes {dimension_semantics = [#tpu.dimension_semantics<arbitrary>], iteration_bounds = array<i64: 2>, scalar_prefetch = 0 : i64, scratch_operands = 1 : i64, tpu.core_type = #tpu.core_type<tc>, window_params = [{pipeline_mode = #tpu.pipeline_mode<synchronous>, transform_indices = @transform_0, window_bounds = array<i64: 10, 768>}, {pipeline_mode = #tpu.pipeline_mode<synchronous>, transform_indices = @transform_1, window_bounds = array<i64: 10, 32>}, {pipeline_mode = #tpu.pipeline_mode<synchronous>, transform_indices = @transform_2, window_bounds = array<i64: 768, 32>}, {transform_indices = @transform_3, window_bounds = array<i64: 1, 1, 32>}, {transform_indices = @transform_4, window_bounds = array<i64: 1, 1, 32>}, {transform_indices = @transform_5, window_bounds = array<i64: 1, 2, 32, 16>}, {transform_indices = @transform_6, window_bounds = array<i64: 1, 2, 1, 16>}, {transform_indices = @transform_7, window_bounds = array<i64: 1, 2, 32, 16>}, {transform_indices = @transform_8, window_bounds = array<i64: 1, 2, 1, 16>}, {transform_indices = @transform_9, window_bounds = array<i64: 1, 2, 32, 16>}, {transform_indices = @transform_10, window_bounds = array<i64: 1, 2, 1, 16>}, {transform_indices = @transform_11, window_bounds = array<i64: 1, 2, 16, 32>}, {transform_indices = @transform_12, window_bounds = array<i64: 1, 1, 32>}, {transform_indices = @transform_13, window_bounds = array<i64: 1, 1, 32>}, {transform_indices = @transform_14, window_bounds = array<i64: 1, 1, 32>}, {transform_indices = @transform_15, window_bounds = array<i64: 1, 32, 64>}, {transform_indices = @transform_16, window_bounds = array<i64: 1, 1, 64>}, {transform_indices = @transform_17, window_bounds = array<i64: 1, 64, 32>}, {transform_indices = @transform_18, window_bounds = array<i64: 1, 1, 32>}, {pipeline_mode = #tpu.pipeline_mode<synchronous>, transform_indices = @transform_19, window_bounds = array<i64: 1, 32>}, {pipeline_mode = #tpu.pipeline_mode<synchronous>, transform_indices = @transform_20, window_bounds = array<i64: 1, 32>}, {pipeline_mode = #tpu.pipeline_mode<synchronous>, transform_indices = @transform_21, window_bounds = array<i64: 32, 16>}, {pipeline_mode = #tpu.pipeline_mode<synchronous>, transform_indices = @transform_22, window_bounds = array<i64: 1, 16>}, {pipeline_mode = #tpu.pipeline_mode<synchronous>, transform_indices = @transform_23, window_bounds = array<i64: 16, 7>}, {pipeline_mode = #tpu.pipeline_mode<synchronous>, transform_indices = @transform_24, window_bounds = array<i64: 1, 7>}, {pipeline_mode = #tpu.pipeline_mode<synchronous>, transform_indices = @transform_25, window_bounds = array<i64: 2, 7>}]} {
    %c0_i32 = arith.constant 0 : i32
    %0 = arith.cmpi eq, %arg0, %c0_i32 : i32
    %1 = arith.extui %0 : i1 to i32
    %c0_i32_0 = arith.constant 0 : i32
    %2 = arith.cmpi ne, %1, %c0_i32_0 : i32
    scf.if %2 {
      %c0_95 = arith.constant 0 : index
      %c0_96 = arith.constant 0 : index
      %180 = vector.load %arg1[%c0_95, %c0_96] : memref<10x768xf32, #tpu.memory_space<vmem>>, vector<10x768xf32>
      %c0_97 = arith.constant 0 : index
      %c0_98 = arith.constant 0 : index
      %181 = vector.load %arg3[%c0_97, %c0_98] : memref<768x32xbf16, #tpu.memory_space<vmem>>, vector<768x32xbf16>
      %182 = arith.truncf %180 : vector<10x768xf32> to vector<10x768xbf16>
      %cst_99 = arith.constant dense<0.000000e+00> : vector<10x32xf32>
      %183 = tpu.matmul %182, %181, %cst_99 {dimension_numbers = #tpu.dot_dimension_numbers<[1], [0], [0], [1], [0, 0, 1, 1], [], []>} : vector<10x768xbf16>, vector<768x32xbf16>, vector<10x32xf32> -> vector<10x32xf32>
      %c0_100 = arith.constant 0 : index
      %c0_101 = arith.constant 0 : index
      %184 = vector.load %arg2[%c0_100, %c0_101] : memref<10x32xf32, #tpu.memory_space<vmem>>, vector<10x32xf32>
      %185 = arith.addf %183, %184 : vector<10x32xf32>
      %c0_102 = arith.constant 0 : index
      %c0_103 = arith.constant 0 : index
      %186 = vector.load %arg27[%c0_102, %c0_103] : memref<10x32xf32, #tpu.memory_space<vmem>>, vector<10x32xf32>
      tpu.vector_store %arg27[%c0_102, %c0_103], %185 {strides = array<i32>} : memref<10x32xf32, #tpu.memory_space<vmem>>, vector<10x32xf32>,
    } else {
    }
    %c0 = arith.constant 0 : index
    %c0_1 = arith.constant 0 : index
    %3 = vector.load %arg27[%c0, %c0_1] : memref<10x32xf32, #tpu.memory_space<vmem>>, vector<10x32xf32>
    %c0_2 = arith.constant 0 : index
    %c0_3 = arith.constant 0 : index
    %c0_4 = arith.constant 0 : index
    %4 = vector.load %arg4[%c0_2, %c0_3, %c0_4] : memref<1x1x32xf32, #tpu.memory_space<vmem>>, vector<1x1x32xf32>
    %5 = vector.shape_cast %4 : vector<1x1x32xf32> to vector<1x32xf32>
    %c0_5 = arith.constant 0 : index
    %c0_6 = arith.constant 0 : index
    %c0_7 = arith.constant 0 : index
    %6 = vector.load %arg5[%c0_5, %c0_6, %c0_7] : memref<1x1x32xf32, #tpu.memory_space<vmem>>, vector<1x1x32xf32>
    %7 = vector.shape_cast %6 : vector<1x1x32xf32> to vector<1x32xf32>
    %cst = arith.constant dense<0.000000e+00> : vector<10xf32>
    %8 = vector.multi_reduction <add>, %3, %cst [1] : vector<10x32xf32> to vector<10xf32>
    %9 = vector.shape_cast %8 : vector<10xf32> to vector<10x1xf32>
    %cst_8 = arith.constant 3.200000e+01 : f32
    %10 = vector.broadcast %cst_8 : f32 to vector<10x1xf32>
    %11 = arith.divf %9, %10 : vector<10x1xf32>
    %12 = vector.broadcast %11 : vector<10x1xf32> to vector<10x32xf32>
    %13 = arith.subf %3, %12 : vector<10x32xf32>
    %14 = arith.mulf %13, %13 : vector<10x32xf32>
    %cst_9 = arith.constant dense<0.000000e+00> : vector<10xf32>
    %15 = vector.multi_reduction <add>, %14, %cst_9 [1] : vector<10x32xf32> to vector<10xf32>
    %16 = vector.shape_cast %15 : vector<10xf32> to vector<10x1xf32>
    %cst_10 = arith.constant 3.200000e+01 : f32
    %17 = vector.broadcast %cst_10 : f32 to vector<10x1xf32>
    %18 = arith.divf %16, %17 : vector<10x1xf32>
    %19 = vector.broadcast %11 : vector<10x1xf32> to vector<10x32xf32>
    %20 = arith.subf %3, %19 : vector<10x32xf32>
    %cst_11 = arith.constant 9.99999996E-13 : f32
    %21 = vector.broadcast %cst_11 : f32 to vector<10x1xf32>
    %22 = arith.addf %18, %21 : vector<10x1xf32>
    %23 = math.rsqrt %22 : vector<10x1xf32>
    %24 = vector.broadcast %23 : vector<10x1xf32> to vector<10x32xf32>
    %25 = arith.mulf %20, %24 : vector<10x32xf32>
    %26 = vector.broadcast %5 : vector<1x32xf32> to vector<10x32xf32>
    %27 = arith.mulf %25, %26 : vector<10x32xf32>
    %28 = vector.broadcast %7 : vector<1x32xf32> to vector<10x32xf32>
    %29 = arith.addf %27, %28 : vector<10x32xf32>
    %c0_12 = arith.constant 0 : index
    %c0_13 = arith.constant 0 : index
    %c0_14 = arith.constant 0 : index
    %c0_15 = arith.constant 0 : index
    %30 = vector.load %arg6[%c0_12, %c0_13, %c0_14, %c0_15] : memref<1x2x32x16xbf16, #tpu.memory_space<vmem>>, vector<1x2x32x16xbf16>
    %31 = vector.shape_cast %30 : vector<1x2x32x16xbf16> to vector<2x32x16xbf16>
    %c0_16 = arith.constant 0 : index
    %c0_17 = arith.constant 0 : index
    %c0_18 = arith.constant 0 : index
    %c0_19 = arith.constant 0 : index
    %32 = vector.load %arg8[%c0_16, %c0_17, %c0_18, %c0_19] : memref<1x2x32x16xbf16, #tpu.memory_space<vmem>>, vector<1x2x32x16xbf16>
    %33 = vector.shape_cast %32 : vector<1x2x32x16xbf16> to vector<2x32x16xbf16>
    %c0_20 = arith.constant 0 : index
    %c0_21 = arith.constant 0 : index
    %c0_22 = arith.constant 0 : index
    %c0_23 = arith.constant 0 : index
    %34 = vector.load %arg10[%c0_20, %c0_21, %c0_22, %c0_23] : memref<1x2x32x16xbf16, #tpu.memory_space<vmem>>, vector<1x2x32x16xbf16>
    %35 = vector.shape_cast %34 : vector<1x2x32x16xbf16> to vector<2x32x16xbf16>
    %c0_24 = arith.constant 0 : index
    %c0_25 = arith.constant 0 : index
    %c0_26 = arith.constant 0 : index
    %c0_27 = arith.constant 0 : index
    %36 = vector.load %arg7[%c0_24, %c0_25, %c0_26, %c0_27] : memref<1x2x1x16xf32, #tpu.memory_space<vmem>>, vector<1x2x1x16xf32>
    %37 = vector.shape_cast %36 : vector<1x2x1x16xf32> to vector<2x1x16xf32>
    %c0_28 = arith.constant 0 : index
    %c0_29 = arith.constant 0 : index
    %c0_30 = arith.constant 0 : index
    %c0_31 = arith.constant 0 : index
    %38 = vector.load %arg9[%c0_28, %c0_29, %c0_30, %c0_31] : memref<1x2x1x16xf32, #tpu.memory_space<vmem>>, vector<1x2x1x16xf32>
    %39 = vector.shape_cast %38 : vector<1x2x1x16xf32> to vector<2x1x16xf32>
    %c0_32 = arith.constant 0 : index
    %c0_33 = arith.constant 0 : index
    %c0_34 = arith.constant 0 : index
    %c0_35 = arith.constant 0 : index
    %40 = vector.load %arg11[%c0_32, %c0_33, %c0_34, %c0_35] : memref<1x2x1x16xf32, #tpu.memory_space<vmem>>, vector<1x2x1x16xf32>
    %41 = vector.shape_cast %40 : vector<1x2x1x16xf32> to vector<2x1x16xf32>
    %c0_36 = arith.constant 0 : index
    %c0_37 = arith.constant 0 : index
    %c0_38 = arith.constant 0 : index
    %c0_39 = arith.constant 0 : index
    %42 = vector.load %arg12[%c0_36, %c0_37, %c0_38, %c0_39] : memref<1x2x16x32xbf16, #tpu.memory_space<vmem>>, vector<1x2x16x32xbf16>
    %43 = vector.shape_cast %42 : vector<1x2x16x32xbf16> to vector<2x16x32xbf16>
    %44 = vector.extract_strided_slice %29 {offsets = [0, 0], sizes = [5, 32], strides = [1, 1]} : vector<10x32xf32> to vector<5x32xf32>
    %45 = vector.shape_cast %44 : vector<5x32xf32> to vector<1x5x32xf32>
    %46 = arith.truncf %45 : vector<1x5x32xf32> to vector<1x5x32xbf16>
    %47 = vector.shape_cast %46 : vector<1x5x32xbf16> to vector<1x5x32xbf16>
    %48 = vector.broadcast %47 : vector<1x5x32xbf16> to vector<2x5x32xbf16>
    "tpu.trace_start"() <{level = 10 : i32, message = "hsd,hdk->hsk"}> : () -> ()
    %cst_40 = arith.constant dense<0.000000e+00> : vector<2x5x16xf32>
    %49 = tpu.matmul %48, %31, %cst_40 {dimension_numbers = #tpu.dot_dimension_numbers<[2], [1], [1], [2], [0, 0, 0, 1, 1, 2], [0], [0]>} : vector<2x5x32xbf16>, vector<2x32x16xbf16>, vector<2x5x16xf32> -> vector<2x5x16xf32>
    "tpu.trace_stop"() : () -> ()
    %50 = vector.broadcast %37 : vector<2x1x16xf32> to vector<2x5x16xf32>
    %51 = arith.addf %49, %50 : vector<2x5x16xf32>
    "tpu.trace_start"() <{level = 10 : i32, message = "hsd,hdk->hsk"}> : () -> ()
    %cst_41 = arith.constant dense<0.000000e+00> : vector<2x5x16xf32>
    %52 = tpu.matmul %48, %33, %cst_41 {dimension_numbers = #tpu.dot_dimension_numbers<[2], [1], [1], [2], [0, 0, 0, 1, 1, 2], [0], [0]>} : vector<2x5x32xbf16>, vector<2x32x16xbf16>, vector<2x5x16xf32> -> vector<2x5x16xf32>
    "tpu.trace_stop"() : () -> ()
    %53 = vector.broadcast %39 : vector<2x1x16xf32> to vector<2x5x16xf32>
    %54 = arith.addf %52, %53 : vector<2x5x16xf32>
    "tpu.trace_start"() <{level = 10 : i32, message = "hsd,hdk->hsk"}> : () -> ()
    %cst_42 = arith.constant dense<0.000000e+00> : vector<2x5x16xf32>
    %55 = tpu.matmul %48, %35, %cst_42 {dimension_numbers = #tpu.dot_dimension_numbers<[2], [1], [1], [2], [0, 0, 0, 1, 1, 2], [0], [0]>} : vector<2x5x32xbf16>, vector<2x32x16xbf16>, vector<2x5x16xf32> -> vector<2x5x16xf32>
    "tpu.trace_stop"() : () -> ()
    %56 = vector.broadcast %41 : vector<2x1x16xf32> to vector<2x5x16xf32>
    %57 = arith.addf %55, %56 : vector<2x5x16xf32>
    %58 = arith.truncf %51 : vector<2x5x16xf32> to vector<2x5x16xbf16>
    %59 = arith.truncf %54 : vector<2x5x16xf32> to vector<2x5x16xbf16>
    "tpu.trace_start"() <{level = 10 : i32, message = "hqd,hkd->hqk"}> : () -> ()
    %cst_43 = arith.constant dense<0.000000e+00> : vector<2x5x5xf32>
    %60 = tpu.matmul %58, %59, %cst_43 {dimension_numbers = #tpu.dot_dimension_numbers<[2], [2], [1], [1], [0, 0, 0, 1, 1, 1], [0], [0]>} : vector<2x5x16xbf16>, vector<2x5x16xbf16>, vector<2x5x5xf32> -> vector<2x5x5xf32>
    "tpu.trace_stop"() : () -> ()
    %cst_44 = arith.constant 2.500000e-01 : f32
    %61 = vector.broadcast %cst_44 : f32 to vector<2x5x5xf32>
    %62 = arith.mulf %60, %61 : vector<2x5x5xf32>
    %cst_45 = arith.constant dense<0xFF800000> : vector<2x5xf32>
    %63 = vector.multi_reduction <maximumf>, %62, %cst_45 [2] : vector<2x5x5xf32> to vector<2x5xf32>
    %64 = vector.shape_cast %63 : vector<2x5xf32> to vector<2x5x1xf32>
    %65 = vector.broadcast %64 : vector<2x5x1xf32> to vector<2x5x5xf32>
    %66 = arith.subf %62, %65 : vector<2x5x5xf32>
    %67 = math.exp %66 : vector<2x5x5xf32>
    %cst_46 = arith.constant dense<0.000000e+00> : vector<2x5xf32>
    %68 = vector.multi_reduction <add>, %67, %cst_46 [2] : vector<2x5x5xf32> to vector<2x5xf32>
    %69 = vector.shape_cast %68 : vector<2x5xf32> to vector<2x5x1xf32>
    %70 = tpu.reciprocal %69 {approx = true} : vector<2x5x1xf32> -> vector<2x5x1xf32>
    %71 = vector.broadcast %70 : vector<2x5x1xf32> to vector<2x5x5xf32>
    %72 = arith.mulf %67, %71 : vector<2x5x5xf32>
    %73 = arith.truncf %72 : vector<2x5x5xf32> to vector<2x5x5xbf16>
    %74 = arith.truncf %57 : vector<2x5x16xf32> to vector<2x5x16xbf16>
    "tpu.trace_start"() <{level = 10 : i32, message = "hqk,hkd->hqd"}> : () -> ()
    %cst_47 = arith.constant dense<0.000000e+00> : vector<2x5x16xf32>
    %75 = tpu.matmul %73, %74, %cst_47 {dimension_numbers = #tpu.dot_dimension_numbers<[2], [1], [1], [2], [0, 0, 0, 1, 1, 2], [0], [0]>} : vector<2x5x5xbf16>, vector<2x5x16xbf16>, vector<2x5x16xf32> -> vector<2x5x16xf32>
    "tpu.trace_stop"() : () -> ()
    %76 = arith.truncf %75 : vector<2x5x16xf32> to vector<2x5x16xbf16>
    "tpu.trace_start"() <{level = 10 : i32, message = "hsd,hde->hse"}> : () -> ()
    %cst_48 = arith.constant dense<0.000000e+00> : vector<2x5x32xf32>
    %77 = tpu.matmul %76, %43, %cst_48 {dimension_numbers = #tpu.dot_dimension_numbers<[2], [1], [1], [2], [0, 0, 0, 1, 1, 2], [0], [0]>} : vector<2x5x16xbf16>, vector<2x16x32xbf16>, vector<2x5x32xf32> -> vector<2x5x32xf32>
    "tpu.trace_stop"() : () -> ()
    %cst_49 = arith.constant dense<0.000000e+00> : vector<5x32xf32>
    %78 = vector.multi_reduction <add>, %77, %cst_49 [0] : vector<2x5x32xf32> to vector<5x32xf32>
    %79 = vector.extract_strided_slice %29 {offsets = [5, 0], sizes = [5, 32], strides = [1, 1]} : vector<10x32xf32> to vector<5x32xf32>
    %80 = vector.shape_cast %79 : vector<5x32xf32> to vector<1x5x32xf32>
    %81 = arith.truncf %80 : vector<1x5x32xf32> to vector<1x5x32xbf16>
    %82 = vector.shape_cast %81 : vector<1x5x32xbf16> to vector<1x5x32xbf16>
    %83 = vector.broadcast %82 : vector<1x5x32xbf16> to vector<2x5x32xbf16>
    "tpu.trace_start"() <{level = 10 : i32, message = "hsd,hdk->hsk"}> : () -> ()
    %cst_50 = arith.constant dense<0.000000e+00> : vector<2x5x16xf32>
    %84 = tpu.matmul %83, %31, %cst_50 {dimension_numbers = #tpu.dot_dimension_numbers<[2], [1], [1], [2], [0, 0, 0, 1, 1, 2], [0], [0]>} : vector<2x5x32xbf16>, vector<2x32x16xbf16>, vector<2x5x16xf32> -> vector<2x5x16xf32>
    "tpu.trace_stop"() : () -> ()
    %85 = vector.broadcast %37 : vector<2x1x16xf32> to vector<2x5x16xf32>
    %86 = arith.addf %84, %85 : vector<2x5x16xf32>
    "tpu.trace_start"() <{level = 10 : i32, message = "hsd,hdk->hsk"}> : () -> ()
    %cst_51 = arith.constant dense<0.000000e+00> : vector<2x5x16xf32>
    %87 = tpu.matmul %83, %33, %cst_51 {dimension_numbers = #tpu.dot_dimension_numbers<[2], [1], [1], [2], [0, 0, 0, 1, 1, 2], [0], [0]>} : vector<2x5x32xbf16>, vector<2x32x16xbf16>, vector<2x5x16xf32> -> vector<2x5x16xf32>
    "tpu.trace_stop"() : () -> ()
    %88 = vector.broadcast %39 : vector<2x1x16xf32> to vector<2x5x16xf32>
    %89 = arith.addf %87, %88 : vector<2x5x16xf32>
    "tpu.trace_start"() <{level = 10 : i32, message = "hsd,hdk->hsk"}> : () -> ()
    %cst_52 = arith.constant dense<0.000000e+00> : vector<2x5x16xf32>
    %90 = tpu.matmul %83, %35, %cst_52 {dimension_numbers = #tpu.dot_dimension_numbers<[2], [1], [1], [2], [0, 0, 0, 1, 1, 2], [0], [0]>} : vector<2x5x32xbf16>, vector<2x32x16xbf16>, vector<2x5x16xf32> -> vector<2x5x16xf32>
    "tpu.trace_stop"() : () -> ()
    %91 = vector.broadcast %41 : vector<2x1x16xf32> to vector<2x5x16xf32>
    %92 = arith.addf %90, %91 : vector<2x5x16xf32>
    %93 = arith.truncf %86 : vector<2x5x16xf32> to vector<2x5x16xbf16>
    %94 = arith.truncf %89 : vector<2x5x16xf32> to vector<2x5x16xbf16>
    "tpu.trace_start"() <{level = 10 : i32, message = "hqd,hkd->hqk"}> : () -> ()
    %cst_53 = arith.constant dense<0.000000e+00> : vector<2x5x5xf32>
    %95 = tpu.matmul %93, %94, %cst_53 {dimension_numbers = #tpu.dot_dimension_numbers<[2], [2], [1], [1], [0, 0, 0, 1, 1, 1], [0], [0]>} : vector<2x5x16xbf16>, vector<2x5x16xbf16>, vector<2x5x5xf32> -> vector<2x5x5xf32>
    "tpu.trace_stop"() : () -> ()
    %cst_54 = arith.constant 2.500000e-01 : f32
    %96 = vector.broadcast %cst_54 : f32 to vector<2x5x5xf32>
    %97 = arith.mulf %95, %96 : vector<2x5x5xf32>
    %cst_55 = arith.constant dense<0xFF800000> : vector<2x5xf32>
    %98 = vector.multi_reduction <maximumf>, %97, %cst_55 [2] : vector<2x5x5xf32> to vector<2x5xf32>
    %99 = vector.shape_cast %98 : vector<2x5xf32> to vector<2x5x1xf32>
    %100 = vector.broadcast %99 : vector<2x5x1xf32> to vector<2x5x5xf32>
    %101 = arith.subf %97, %100 : vector<2x5x5xf32>
    %102 = math.exp %101 : vector<2x5x5xf32>
    %cst_56 = arith.constant dense<0.000000e+00> : vector<2x5xf32>
    %103 = vector.multi_reduction <add>, %102, %cst_56 [2] : vector<2x5x5xf32> to vector<2x5xf32>
    %104 = vector.shape_cast %103 : vector<2x5xf32> to vector<2x5x1xf32>
    %105 = tpu.reciprocal %104 {approx = true} : vector<2x5x1xf32> -> vector<2x5x1xf32>
    %106 = vector.broadcast %105 : vector<2x5x1xf32> to vector<2x5x5xf32>
    %107 = arith.mulf %102, %106 : vector<2x5x5xf32>
    %108 = arith.truncf %107 : vector<2x5x5xf32> to vector<2x5x5xbf16>
    %109 = arith.truncf %92 : vector<2x5x16xf32> to vector<2x5x16xbf16>
    "tpu.trace_start"() <{level = 10 : i32, message = "hqk,hkd->hqd"}> : () -> ()
    %cst_57 = arith.constant dense<0.000000e+00> : vector<2x5x16xf32>
    %110 = tpu.matmul %108, %109, %cst_57 {dimension_numbers = #tpu.dot_dimension_numbers<[2], [1], [1], [2], [0, 0, 0, 1, 1, 2], [0], [0]>} : vector<2x5x5xbf16>, vector<2x5x16xbf16>, vector<2x5x16xf32> -> vector<2x5x16xf32>
    "tpu.trace_stop"() : () -> ()
    %111 = arith.truncf %110 : vector<2x5x16xf32> to vector<2x5x16xbf16>
    "tpu.trace_start"() <{level = 10 : i32, message = "hsd,hde->hse"}> : () -> ()
    %cst_58 = arith.constant dense<0.000000e+00> : vector<2x5x32xf32>
    %112 = tpu.matmul %111, %43, %cst_58 {dimension_numbers = #tpu.dot_dimension_numbers<[2], [1], [1], [2], [0, 0, 0, 1, 1, 2], [0], [0]>} : vector<2x5x16xbf16>, vector<2x16x32xbf16>, vector<2x5x32xf32> -> vector<2x5x32xf32>
    "tpu.trace_stop"() : () -> ()
    %cst_59 = arith.constant dense<0.000000e+00> : vector<5x32xf32>
    %113 = vector.multi_reduction <add>, %112, %cst_59 [0] : vector<2x5x32xf32> to vector<5x32xf32>
    %114 = tpu.concatenate %78, %113 in 0 : vector<5x32xf32>, vector<5x32xf32> -> vector<10x32xf32>
    %115 = arith.addf %3, %114 : vector<10x32xf32>
    %c0_60 = arith.constant 0 : index
    %c0_61 = arith.constant 0 : index
    %c0_62 = arith.constant 0 : index
    %116 = vector.load %arg13[%c0_60, %c0_61, %c0_62] : memref<1x1x32xf32, #tpu.memory_space<vmem>>, vector<1x1x32xf32>
    %117 = vector.shape_cast %116 : vector<1x1x32xf32> to vector<1x32xf32>
    %118 = vector.broadcast %117 : vector<1x32xf32> to vector<10x32xf32>
    %119 = arith.addf %115, %118 : vector<10x32xf32>
    %c0_63 = arith.constant 0 : index
    %c0_64 = arith.constant 0 : index
    %c0_65 = arith.constant 0 : index
    %120 = vector.load %arg14[%c0_63, %c0_64, %c0_65] : memref<1x1x32xf32, #tpu.memory_space<vmem>>, vector<1x1x32xf32>
    %121 = vector.shape_cast %120 : vector<1x1x32xf32> to vector<1x32xf32>
    %c0_66 = arith.constant 0 : index
    %c0_67 = arith.constant 0 : index
    %c0_68 = arith.constant 0 : index
    %122 = vector.load %arg15[%c0_66, %c0_67, %c0_68] : memref<1x1x32xf32, #tpu.memory_space<vmem>>, vector<1x1x32xf32>
    %123 = vector.shape_cast %122 : vector<1x1x32xf32> to vector<1x32xf32>
    %cst_69 = arith.constant dense<0.000000e+00> : vector<10xf32>
    %124 = vector.multi_reduction <add>, %119, %cst_69 [1] : vector<10x32xf32> to vector<10xf32>
    %125 = vector.shape_cast %124 : vector<10xf32> to vector<10x1xf32>
    %cst_70 = arith.constant 3.200000e+01 : f32
    %126 = vector.broadcast %cst_70 : f32 to vector<10x1xf32>
    %127 = arith.divf %125, %126 : vector<10x1xf32>
    %128 = vector.broadcast %127 : vector<10x1xf32> to vector<10x32xf32>
    %129 = arith.subf %119, %128 : vector<10x32xf32>
    %130 = arith.mulf %129, %129 : vector<10x32xf32>
    %cst_71 = arith.constant dense<0.000000e+00> : vector<10xf32>
    %131 = vector.multi_reduction <add>, %130, %cst_71 [1] : vector<10x32xf32> to vector<10xf32>
    %132 = vector.shape_cast %131 : vector<10xf32> to vector<10x1xf32>
    %cst_72 = arith.constant 3.200000e+01 : f32
    %133 = vector.broadcast %cst_72 : f32 to vector<10x1xf32>
    %134 = arith.divf %132, %133 : vector<10x1xf32>
    %135 = vector.broadcast %127 : vector<10x1xf32> to vector<10x32xf32>
    %136 = arith.subf %119, %135 : vector<10x32xf32>
    %cst_73 = arith.constant 9.99999996E-13 : f32
    %137 = vector.broadcast %cst_73 : f32 to vector<10x1xf32>
    %138 = arith.addf %134, %137 : vector<10x1xf32>
    %139 = math.rsqrt %138 : vector<10x1xf32>
    %140 = vector.broadcast %139 : vector<10x1xf32> to vector<10x32xf32>
    %141 = arith.mulf %136, %140 : vector<10x32xf32>
    %142 = vector.broadcast %121 : vector<1x32xf32> to vector<10x32xf32>
    %143 = arith.mulf %141, %142 : vector<10x32xf32>
    %144 = vector.broadcast %123 : vector<1x32xf32> to vector<10x32xf32>
    %145 = arith.addf %143, %144 : vector<10x32xf32>
    %c0_74 = arith.constant 0 : index
    %c0_75 = arith.constant 0 : index
    %c0_76 = arith.constant 0 : index
    %146 = vector.load %arg16[%c0_74, %c0_75, %c0_76] : memref<1x32x64xbf16, #tpu.memory_space<vmem>>, vector<1x32x64xbf16>
    %147 = vector.shape_cast %146 : vector<1x32x64xbf16> to vector<32x64xbf16>
    %148 = arith.truncf %145 : vector<10x32xf32> to vector<10x32xbf16>
    %cst_77 = arith.constant dense<0.000000e+00> : vector<10x64xf32>
    %149 = tpu.matmul %148, %147, %cst_77 {dimension_numbers = #tpu.dot_dimension_numbers<[1], [0], [0], [1], [0, 0, 1, 1], [], []>} : vector<10x32xbf16>, vector<32x64xbf16>, vector<10x64xf32> -> vector<10x64xf32>
    %c0_78 = arith.constant 0 : index
    %c0_79 = arith.constant 0 : index
    %c0_80 = arith.constant 0 : index
    %150 = vector.load %arg17[%c0_78, %c0_79, %c0_80] : memref<1x1x64xf32, #tpu.memory_space<vmem>>, vector<1x1x64xf32>
    %151 = vector.shape_cast %150 : vector<1x1x64xf32> to vector<1x64xf32>
    %152 = vector.broadcast %151 : vector<1x64xf32> to vector<10x64xf32>
    %153 = arith.addf %149, %152 : vector<10x64xf32>
    %cst_81 = arith.constant 5.000000e-01 : f32
    %154 = vector.broadcast %cst_81 : f32 to vector<10x64xf32>
    %155 = arith.mulf %154, %153 : vector<10x64xf32>
    %cst_82 = arith.constant 4.471500e-02 : f32
    %156 = vector.broadcast %cst_82 : f32 to vector<10x64xf32>
    %157 = arith.mulf %156, %153 : vector<10x64xf32>
    %158 = arith.mulf %157, %153 : vector<10x64xf32>
    %159 = arith.mulf %158, %153 : vector<10x64xf32>
    %160 = arith.addf %153, %159 : vector<10x64xf32>
    %cst_83 = arith.constant 0.797884583 : f32
    %161 = vector.broadcast %cst_83 : f32 to vector<10x64xf32>
    %162 = arith.mulf %161, %160 : vector<10x64xf32>
    %163 = math.tanh %162 : vector<10x64xf32>
    %cst_84 = arith.constant 1.000000e+00 : f32
    %164 = vector.broadcast %cst_84 : f32 to vector<10x64xf32>
    %165 = arith.addf %164, %163 : vector<10x64xf32>
    %166 = arith.mulf %155, %165 : vector<10x64xf32>
    %c0_85 = arith.constant 0 : index
    %c0_86 = arith.constant 0 : index
    %c0_87 = arith.constant 0 : index
    %167 = vector.load %arg18[%c0_85, %c0_86, %c0_87] : memref<1x64x32xbf16, #tpu.memory_space<vmem>>, vector<1x64x32xbf16>
    %168 = vector.shape_cast %167 : vector<1x64x32xbf16> to vector<64x32xbf16>
    %169 = arith.truncf %166 : vector<10x64xf32> to vector<10x64xbf16>
    %cst_88 = arith.constant dense<0.000000e+00> : vector<10x32xf32>
    %170 = tpu.matmul %169, %168, %cst_88 {dimension_numbers = #tpu.dot_dimension_numbers<[1], [0], [0], [1], [0, 0, 1, 1], [], []>} : vector<10x64xbf16>, vector<64x32xbf16>, vector<10x32xf32> -> vector<10x32xf32>
    %171 = arith.addf %119, %170 : vector<10x32xf32>
    %c0_89 = arith.constant 0 : index
    %c0_90 = arith.constant 0 : index
    %c0_91 = arith.constant 0 : index
    %172 = vector.load %arg19[%c0_89, %c0_90, %c0_91] : memref<1x1x32xf32, #tpu.memory_space<vmem>>, vector<1x1x32xf32>
    %173 = vector.shape_cast %172 : vector<1x1x32xf32> to vector<1x32xf32>
    %174 = vector.broadcast %173 : vector<1x32xf32> to vector<10x32xf32>
    %175 = arith.addf %171, %174 : vector<10x32xf32>
    %c0_92 = arith.constant 0 : index
    %c0_93 = arith.constant 0 : index
    %176 = vector.load %arg27[%c0_92, %c0_93] : memref<10x32xf32, #tpu.memory_space<vmem>>, vector<10x32xf32>
    tpu.vector_store %arg27[%c0_92, %c0_93], %175 {strides = array<i32>} : memref<10x32xf32, #tpu.memory_space<vmem>>, vector<10x32xf32>,
    %c1_i32 = arith.constant 1 : i32
    %177 = arith.cmpi eq, %arg0, %c1_i32 : i32
    %178 = arith.extui %177 : i1 to i32
    %c0_i32_94 = arith.constant 0 : i32
    %179 = arith.cmpi ne, %178, %c0_i32_94 : i32
    scf.if %179 {
      %180 = vector.extract_strided_slice %175 {offsets = [0, 0], sizes = [1, 32], strides = [1, 1]} : vector<10x32xf32> to vector<1x32xf32>
      %181 = vector.extract_strided_slice %175 {offsets = [5, 0], sizes = [1, 32], strides = [1, 1]} : vector<10x32xf32> to vector<1x32xf32>
      %182 = tpu.concatenate %180, %181 in 0 : vector<1x32xf32>, vector<1x32xf32> -> vector<2x32xf32>
      %c0_95 = arith.constant 0 : index
      %c0_96 = arith.constant 0 : index
      %183 = vector.load %arg20[%c0_95, %c0_96] : memref<1x32xf32, #tpu.memory_space<vmem>>, vector<1x32xf32>
      %c0_97 = arith.constant 0 : index
      %c0_98 = arith.constant 0 : index
      %184 = vector.load %arg21[%c0_97, %c0_98] : memref<1x32xf32, #tpu.memory_space<vmem>>, vector<1x32xf32>
      %cst_99 = arith.constant dense<0.000000e+00> : vector<2xf32>
      %185 = vector.multi_reduction <add>, %182, %cst_99 [1] : vector<2x32xf32> to vector<2xf32>
      %186 = vector.shape_cast %185 : vector<2xf32> to vector<2x1xf32>
      %cst_100 = arith.constant 3.200000e+01 : f32
      %187 = vector.broadcast %cst_100 : f32 to vector<2x1xf32>
      %188 = arith.divf %186, %187 : vector<2x1xf32>
      %189 = vector.broadcast %188 : vector<2x1xf32> to vector<2x32xf32>
      %190 = arith.subf %182, %189 : vector<2x32xf32>
      %191 = arith.mulf %190, %190 : vector<2x32xf32>
      %cst_101 = arith.constant dense<0.000000e+00> : vector<2xf32>
      %192 = vector.multi_reduction <add>, %191, %cst_101 [1] : vector<2x32xf32> to vector<2xf32>
      %193 = vector.shape_cast %192 : vector<2xf32> to vector<2x1xf32>
      %cst_102 = arith.constant 3.200000e+01 : f32
      %194 = vector.broadcast %cst_102 : f32 to vector<2x1xf32>
      %195 = arith.divf %193, %194 : vector<2x1xf32>
      %196 = vector.broadcast %188 : vector<2x1xf32> to vector<2x32xf32>
      %197 = arith.subf %182, %196 : vector<2x32xf32>
      %cst_103 = arith.constant 9.99999996E-13 : f32
      %198 = vector.broadcast %cst_103 : f32 to vector<2x1xf32>
      %199 = arith.addf %195, %198 : vector<2x1xf32>
      %200 = math.rsqrt %199 : vector<2x1xf32>
      %201 = vector.broadcast %200 : vector<2x1xf32> to vector<2x32xf32>
      %202 = arith.mulf %197, %201 : vector<2x32xf32>
      %203 = vector.broadcast %183 : vector<1x32xf32> to vector<2x32xf32>
      %204 = arith.mulf %202, %203 : vector<2x32xf32>
      %205 = vector.broadcast %184 : vector<1x32xf32> to vector<2x32xf32>
      %206 = arith.addf %204, %205 : vector<2x32xf32>
      %c0_104 = arith.constant 0 : index
      %c0_105 = arith.constant 0 : index
      %207 = vector.load %arg22[%c0_104, %c0_105] : memref<32x16xbf16, #tpu.memory_space<vmem>>, vector<32x16xbf16>
      %208 = arith.truncf %206 : vector<2x32xf32> to vector<2x32xbf16>
      %cst_106 = arith.constant dense<0.000000e+00> : vector<2x16xf32>
      %209 = tpu.matmul %208, %207, %cst_106 {dimension_numbers = #tpu.dot_dimension_numbers<[1], [0], [0], [1], [0, 0, 1, 1], [], []>} : vector<2x32xbf16>, vector<32x16xbf16>, vector<2x16xf32> -> vector<2x16xf32>
      %c0_107 = arith.constant 0 : index
      %c0_108 = arith.constant 0 : index
      %210 = vector.load %arg23[%c0_107, %c0_108] : memref<1x16xf32, #tpu.memory_space<vmem>>, vector<1x16xf32>
      %211 = vector.broadcast %210 : vector<1x16xf32> to vector<2x16xf32>
      %212 = arith.addf %209, %211 : vector<2x16xf32>
      %cst_109 = arith.constant 5.000000e-01 : f32
      %213 = vector.broadcast %cst_109 : f32 to vector<2x16xf32>
      %214 = arith.mulf %213, %212 : vector<2x16xf32>
      %cst_110 = arith.constant 4.471500e-02 : f32
      %215 = vector.broadcast %cst_110 : f32 to vector<2x16xf32>
      %216 = arith.mulf %215, %212 : vector<2x16xf32>
      %217 = arith.mulf %216, %212 : vector<2x16xf32>
      %218 = arith.mulf %217, %212 : vector<2x16xf32>
      %219 = arith.addf %212, %218 : vector<2x16xf32>
      %cst_111 = arith.constant 0.797884583 : f32
      %220 = vector.broadcast %cst_111 : f32 to vector<2x16xf32>
      %221 = arith.mulf %220, %219 : vector<2x16xf32>
      %222 = math.tanh %221 : vector<2x16xf32>
      %cst_112 = arith.constant 1.000000e+00 : f32
      %223 = vector.broadcast %cst_112 : f32 to vector<2x16xf32>
      %224 = arith.addf %223, %222 : vector<2x16xf32>
      %225 = arith.mulf %214, %224 : vector<2x16xf32>
      %c0_113 = arith.constant 0 : index
      %c0_114 = arith.constant 0 : index
      %226 = vector.load %arg24[%c0_113, %c0_114] : memref<16x7xbf16, #tpu.memory_space<vmem>>, vector<16x7xbf16>
      %227 = arith.truncf %225 : vector<2x16xf32> to vector<2x16xbf16>
      %cst_115 = arith.constant dense<0.000000e+00> : vector<2x7xf32>
      %228 = tpu.matmul %227, %226, %cst_115 {dimension_numbers = #tpu.dot_dimension_numbers<[1], [0], [0], [1], [0, 0, 1, 1], [], []>} : vector<2x16xbf16>, vector<16x7xbf16>, vector<2x7xf32> -> vector<2x7xf32>
      %c0_116 = arith.constant 0 : index
      %c0_117 = arith.constant 0 : index
      %229 = vector.load %arg25[%c0_116, %c0_117] : memref<1x7xf32, #tpu.memory_space<vmem>>, vector<1x7xf32>
      %230 = vector.broadcast %229 : vector<1x7xf32> to vector<2x7xf32>
      %231 = arith.addf %228, %230 : vector<2x7xf32>
      %c0_118 = arith.constant 0 : index
      %c0_119 = arith.constant 0 : index
      %232 = vector.load %arg26[%c0_118, %c0_119] : memref<2x7xf32, #tpu.memory_space<vmem>>, vector<2x7xf32>
      tpu.vector_store %arg26[%c0_118, %c0_119], %231 {strides = array<i32>} : memref<2x7xf32, #tpu.memory_space<vmem>>, vector<2x7xf32>,
    } else {
    }
    return
  }
  func.func @transform_0(%arg0: i32) -> (i32, i32) {
    %c0_i32 = arith.constant 0 : i32
    %c0_i32_0 = arith.constant 0 : i32
    %c0_i32_1 = arith.constant 0 : i32
    return %c0_i32, %c0_i32_0 : i32, i32
  }
  func.func @transform_1(%arg0: i32) -> (i32, i32) {
    %c0_i32 = arith.constant 0 : i32
    %c0_i32_0 = arith.constant 0 : i32
    %c0_i32_1 = arith.constant 0 : i32
    return %c0_i32, %c0_i32_0 : i32, i32
  }
  func.func @transform_2(%arg0: i32) -> (i32, i32) {
    %c0_i32 = arith.constant 0 : i32
    %c0_i32_0 = arith.constant 0 : i32
    %c0_i32_1 = arith.constant 0 : i32
    return %c0_i32, %c0_i32_0 : i32, i32
  }
  func.func @transform_3(%arg0: i32) -> (i32, i32, i32) {
    %c0_i32 = arith.constant 0 : i32
    %c0_i32_0 = arith.constant 0 : i32
    %c0_i32_1 = arith.constant 0 : i32
    return %arg0, %c0_i32, %c0_i32_0 : i32, i32, i32
  }
  func.func @transform_4(%arg0: i32) -> (i32, i32, i32) {
    %c0_i32 = arith.constant 0 : i32
    %c0_i32_0 = arith.constant 0 : i32
    %c0_i32_1 = arith.constant 0 : i32
    return %arg0, %c0_i32, %c0_i32_0 : i32, i32, i32
  }
  func.func @transform_5(%arg0: i32) -> (i32, i32, i32, i32) {
    %c0_i32 = arith.constant 0 : i32
    %c0_i32_0 = arith.constant 0 : i32
    %c0_i32_1 = arith.constant 0 : i32
    %c0_i32_2 = arith.constant 0 : i32
    return %arg0, %c0_i32, %c0_i32_0, %c0_i32_1 : i32, i32, i32, i32
  }
  func.func @transform_6(%arg0: i32) -> (i32, i32, i32, i32) {
    %c0_i32 = arith.constant 0 : i32
    %c0_i32_0 = arith.constant 0 : i32
    %c0_i32_1 = arith.constant 0 : i32
    %c0_i32_2 = arith.constant 0 : i32
    return %arg0, %c0_i32, %c0_i32_0, %c0_i32_1 : i32, i32, i32, i32
  }
  func.func @transform_7(%arg0: i32) -> (i32, i32, i32, i32) {
    %c0_i32 = arith.constant 0 : i32
    %c0_i32_0 = arith.constant 0 : i32
    %c0_i32_1 = arith.constant 0 : i32
    %c0_i32_2 = arith.constant 0 : i32
    return %arg0, %c0_i32, %c0_i32_0, %c0_i32_1 : i32, i32, i32, i32
  }
  func.func @transform_8(%arg0: i32) -> (i32, i32, i32, i32) {
    %c0_i32 = arith.constant 0 : i32
    %c0_i32_0 = arith.constant 0 : i32
    %c0_i32_1 = arith.constant 0 : i32
    %c0_i32_2 = arith.constant 0 : i32
    return %arg0, %c0_i32, %c0_i32_0, %c0_i32_1 : i32, i32, i32, i32
  }
  func.func @transform_9(%arg0: i32) -> (i32, i32, i32, i32) {
    %c0_i32 = arith.constant 0 : i32
    %c0_i32_0 = arith.constant 0 : i32
    %c0_i32_1 = arith.constant 0 : i32
    %c0_i32_2 = arith.constant 0 : i32
    return %arg0, %c0_i32, %c0_i32_0, %c0_i32_1 : i32, i32, i32, i32
  }
  func.func @transform_10(%arg0: i32) -> (i32, i32, i32, i32) {
    %c0_i32 = arith.constant 0 : i32
    %c0_i32_0 = arith.constant 0 : i32
    %c0_i32_1 = arith.constant 0 : i32
    %c0_i32_2 = arith.constant 0 : i32
    return %arg0, %c0_i32, %c0_i32_0, %c0_i32_1 : i32, i32, i32, i32
  }
  func.func @transform_11(%arg0: i32) -> (i32, i32, i32, i32) {
    %c0_i32 = arith.constant 0 : i32
    %c0_i32_0 = arith.constant 0 : i32
    %c0_i32_1 = arith.constant 0 : i32
    %c0_i32_2 = arith.constant 0 : i32
    return %arg0, %c0_i32, %c0_i32_0, %c0_i32_1 : i32, i32, i32, i32
  }
  func.func @transform_12(%arg0: i32) -> (i32, i32, i32) {
    %c0_i32 = arith.constant 0 : i32
    %c0_i32_0 = arith.constant 0 : i32
    %c0_i32_1 = arith.constant 0 : i32
    return %arg0, %c0_i32, %c0_i32_0 : i32, i32, i32
  }
  func.func @transform_13(%arg0: i32) -> (i32, i32, i32) {
    %c0_i32 = arith.constant 0 : i32
    %c0_i32_0 = arith.constant 0 : i32
    %c0_i32_1 = arith.constant 0 : i32
    return %arg0, %c0_i32, %c0_i32_0 : i32, i32, i32
  }
  func.func @transform_14(%arg0: i32) -> (i32, i32, i32) {
    %c0_i32 = arith.constant 0 : i32
    %c0_i32_0 = arith.constant 0 : i32
    %c0_i32_1 = arith.constant 0 : i32
    return %arg0, %c0_i32, %c0_i32_0 : i32, i32, i32
  }
  func.func @transform_15(%arg0: i32) -> (i32, i32, i32) {
    %c0_i32 = arith.constant 0 : i32
    %c0_i32_0 = arith.constant 0 : i32
    %c0_i32_1 = arith.constant 0 : i32
    return %arg0, %c0_i32, %c0_i32_0 : i32, i32, i32
  }
  func.func @transform_16(%arg0: i32) -> (i32, i32, i32) {
    %c0_i32 = arith.constant 0 : i32
    %c0_i32_0 = arith.constant 0 : i32
    %c0_i32_1 = arith.constant 0 : i32
    return %arg0, %c0_i32, %c0_i32_0 : i32, i32, i32
  }
  func.func @transform_17(%arg0: i32) -> (i32, i32, i32) {
    %c0_i32 = arith.constant 0 : i32
    %c0_i32_0 = arith.constant 0 : i32
    %c0_i32_1 = arith.constant 0 : i32
    return %arg0, %c0_i32, %c0_i32_0 : i32, i32, i32
  }
  func.func @transform_18(%arg0: i32) -> (i32, i32, i32) {
    %c0_i32 = arith.constant 0 : i32
    %c0_i32_0 = arith.constant 0 : i32
    %c0_i32_1 = arith.constant 0 : i32
    return %arg0, %c0_i32, %c0_i32_0 : i32, i32, i32
  }
  func.func @transform_19(%arg0: i32) -> (i32, i32) {
    %c0_i32 = arith.constant 0 : i32
    %c0_i32_0 = arith.constant 0 : i32
    %c0_i32_1 = arith.constant 0 : i32
    return %c0_i32, %c0_i32_0 : i32, i32
  }
  func.func @transform_20(%arg0: i32) -> (i32, i32) {
    %c0_i32 = arith.constant 0 : i32
    %c0_i32_0 = arith.constant 0 : i32
    %c0_i32_1 = arith.constant 0 : i32
    return %c0_i32, %c0_i32_0 : i32, i32
  }
  func.func @transform_21(%arg0: i32) -> (i32, i32) {
    %c0_i32 = arith.constant 0 : i32
    %c0_i32_0 = arith.constant 0 : i32
    %c0_i32_1 = arith.constant 0 : i32
    return %c0_i32, %c0_i32_0 : i32, i32
  }
  func.func @transform_22(%arg0: i32) -> (i32, i32) {
    %c0_i32 = arith.constant 0 : i32
    %c0_i32_0 = arith.constant 0 : i32
    %c0_i32_1 = arith.constant 0 : i32
    return %c0_i32, %c0_i32_0 : i32, i32
  }
  func.func @transform_23(%arg0: i32) -> (i32, i32) {
    %c0_i32 = arith.constant 0 : i32
    %c0_i32_0 = arith.constant 0 : i32
    %c0_i32_1 = arith.constant 0 : i32
    return %c0_i32, %c0_i32_0 : i32, i32
  }
  func.func @transform_24(%arg0: i32) -> (i32, i32) {
    %c0_i32 = arith.constant 0 : i32
    %c0_i32_0 = arith.constant 0 : i32
    %c0_i32_1 = arith.constant 0 : i32
    return %c0_i32, %c0_i32_0 : i32, i32
  }
  func.func @transform_25(%arg0: i32) -> (i32, i32) {
    %c0_i32 = arith.constant 0 : i32
    %c0_i32_0 = arith.constant 0 : i32
    %c0_i32_1 = arith.constant 0 : i32
    return %c0_i32, %c0_i32_0 : i32, i32
  }
}

</mosaic_0001>

<bundles_post_ra>
// kernel: tile.15
= control target key start
LH: loop header
LB: loop body
LE: loop exit
PB: predicated region body
PF: predicated region fallthrough
CT: control target
= control target key end

     0   :  { %vm3_vm0 = vcmask 392192   ;;  %s34_s0 = inlined_call_operand.vmem [shape: f32[2,5,48], index: 0, kind: input, shape index: {}]   ;;  %s35_s1 = inlined_call_operand.vmem [shape: f32[10,48], index: 1, kind: output, shape index: {}]  }
   0x1   :  { %v2_v0 = vld [vmem:[%s34_s0] sm:$0x1f]   ;;  %v10_v1 = vld [vmem:[%s34_s0 + $0x8] sm:$0x1f]  }
   0x2   :  { %4 = vst.msk [vmem:[%s35_s1] sm:$0x1f] %vm3_vm0, %v2_v0   ;;  %11 = vst.msk [vmem:[%s35_s1 + $0x5] sm:$0x1f] %vm3_vm0, %v10_v1  }

// kernel: tile.11
= control target key start
LH: loop header
LB: loop body
LE: loop exit
PB: predicated region body
PF: predicated region fallthrough
CT: control target
= control target key end

     0   :  { %vm3_vm0 = vcmask 261120   ;;  %s34_s0 = inlined_call_operand.vmem [shape: f32[2,5,32], index: 0, kind: input, shape index: {}]   ;;  %s35_s1 = inlined_call_operand.vmem [shape: f32[10,32], index: 1, kind: output, shape index: {}]  }
   0x1   :  { %v2_v0 = vld [vmem:[%s34_s0] sm:$0x1f]   ;;  %v10_v1 = vld [vmem:[%s34_s0 + $0x8] sm:$0x1f]  }
   0x2   :  { %4 = vst.msk [vmem:[%s35_s1] sm:$0x1f] %vm3_vm0, %v2_v0   ;;  %11 = vst.msk [vmem:[%s35_s1 + $0x5] sm:$0x1f] %vm3_vm0, %v10_v1  }

// kernel: _lambda_.2
= control target key start
LH: loop header
LB: loop body
LE: loop exit
PB: predicated region body
PF: predicated region fallthrough
CT: control target
= control target key end

     0   :  { %s4200_s29 = smov 0   ;;  %s4837_s0 = inlined_call_operand.vmem [shape: f32[10,768], index: 0, kind: input, shape index: {}]   ;;  %s4838_s1 = inlined_call_operand.vmem [shape: f32[10,32], index: 1, kind: input, shape index: {}]   ;;  %s4839_s2 = inlined_call_operand.vmem [shape: bf16[768,32], index: 2, kind: input, shape index: {}]   ;;  %s4840_s3 = inlined_call_operand.vmem [shape: f32[2,1,32], index: 3, kind: input, shape index: {}, may-alias: {3,13}]   ;;  %s4841_s4 = inlined_call_operand.vmem [shape: f32[2,1,32], index: 4, kind: input, shape index: {}, may-alias: {4,12,14,18}]   ;;  %s4842_s5 = inlined_call_operand.vmem [shape: bf16[2,2,32,16], index: 5, kind: input, shape index: {}]   ;;  %s4843_s6 = inlined_call_operand.vmem [shape: f32[2,2,1,16], index: 6, kind: input, shape index: {}, may-alias: {6,8,10}]   ;;  %s4844_s7 = inlined_call_operand.vmem [shape: bf16[2,2,32,16], index: 7, kind: input, shape index: {}]   ;;  %s4845_s8 = inlined_call_operand.vmem [shape: f32[2,2,1,16], index: 8, kind: input, shape index: {}, may-alias: {6,8,10}]   ;;  %s4846_s9 = inlined_call_operand.vmem [shape: bf16[2,2,32,16], index: 9, kind: input, shape index: {}]   ;;  %s4847_s10 = inlined_call_operand.vmem [shape: f32[2,2,1,16], index: 10, kind: input, shape index: {}, may-alias: {6,8,10}]   ;;  %s4848_s11 = inlined_call_operand.vmem [shape: bf16[2,2,16,32], index: 11, kind: input, shape index: {}]   ;;  %s4849_s12 = inlined_call_operand.vmem [shape: f32[2,1,32], index: 12, kind: input, shape index: {}, may-alias: {4,12,14,18}]   ;;  %s4850_s13 = inlined_call_operand.vmem [shape: f32[2,1,32], index: 13, kind: input, shape index: {}, may-alias: {3,13}]   ;;  %s4851_s14 = inlined_call_operand.vmem [shape: f32[2,1,32], index: 14, kind: input, shape index: {}, may-alias: {4,12,14,18}]   ;;  %s4852_s15 = inlined_call_operand.vmem [shape: bf16[2,32,64], index: 15, kind: input, shape index: {}]   ;;  %s4853_s16 = inlined_call_operand.vmem [shape: f32[2,1,64], index: 16, kind: input, shape index: {}]   ;;  %s4854_s17 = inlined_call_operand.vmem [shape: bf16[2,64,32], index: 17, kind: input, shape index: {}]   ;;  %s4855_s18 = inlined_call_operand.vmem [shape: f32[2,1,32], index: 18, kind: input, shape index: {}, may-alias: {4,12,14,18}]   ;;  %s4856_s19 = inlined_call_operand.vmem [shape: f32[1,32], index: 19, kind: input, shape index: {}]   ;;  %s4857_s20 = inlined_call_operand.vmem [shape: f32[1,32], index: 20, kind: input, shape index: {}]   ;;  %s4858_s21 = inlined_call_operand.vmem [shape: bf16[32,16], index: 21, kind: input, shape index: {}]   ;;  %s4859_s22 = inlined_call_operand.vmem [shape: f32[1,16], index: 22, kind: input, shape index: {}]   ;;  %s4860_s23 = inlined_call_operand.vmem [shape: bf16[16,7], index: 23, kind: input, shape index: {}]   ;;  %s4861_s24 = inlined_call_operand.vmem [shape: f32[1,7], index: 24, kind: input, shape index: {}]   ;;  %s4862_s25 = inlined_call_operand.vmem [shape: f32[2,7], index: 25, kind: output, shape index: {}]  }
   0x1   :  { %4870 = sst [smem:[#allocation6_spill]] %s4837_s0 }
   0x2   :  { %4871 = sst [smem:[#allocation7_spill]] %s4838_s1 }
   0x3   :  { %4872 = sst [smem:[#allocation8_spill]] %s4839_s2 }
   0x4   :  { %4873 = sst [smem:[#allocation9_spill]] %s4840_s3 }
   0x5   :  { %4874 = sst [smem:[#allocation10_spill]] %s4841_s4 }
   0x6   :  { %4875 = sst [smem:[#allocation11_spill]] %s4842_s5 }
   0x7   :  { %4876 = sst [smem:[#allocation12_spill]] %s4843_s6 }
   0x8   :  { %4877 = sst [smem:[#allocation13_spill]] %s4844_s7 }
   0x9   :  { %4878 = sst [smem:[#allocation14_spill]] %s4845_s8 }
   0xa   :  { %4879 = sst [smem:[#allocation15_spill]] %s4846_s9 }
   0xb   :  { %4880 = sst [smem:[#allocation16_spill]] %s4847_s10 }
   0xc   :  { %4881 = sst [smem:[#allocation17_spill]] %s4848_s11 }
   0xd   :  { %4882 = sst [smem:[#allocation18_spill]] %s4856_s19 }
   0xe   :  { %4883 = sst [smem:[#allocation19_spill]] %s4857_s20 }
   0xf   :  { %4884 = sst [smem:[#allocation20_spill]] %s4858_s21 }
  0x10   :  { %4885 = sst [smem:[#allocation21_spill]] %s4859_s22 }
  0x11   :  { %4886 = sst [smem:[#allocation22_spill]] %s4860_s23 }
  0x12   :  { %4887 = sst [smem:[#allocation23_spill]] %s4861_s24 }
  0x13   :  { %4888 = sst [smem:[#allocation24_spill]] %s4862_s25 }
  0x14 LB: > { %4889 = sst [smem:[#allocation3_spill]] %s4063_s29  ;;  %s4206_s2 = sadd.s32 4294967295, %s4063_s29   ;;  %s4063_s29 = sphi %s4200_s29, %s35_s29  }
  0x15   : > { %p3458_p0 = scmp.ge.s32.totalorder %s4063_s29, 1  ;;  %p815_p1 = scmp.lt.s32.totalorder %s4063_s29, 3 }
  0x17   : > { %p816_p2 = pnand %p3458_p0, %p815_p1 }
  0x19   : > { %819 = sbr.rel (%p816_p2) target bundleno = 4162 (0x1042), region = 120 }
  0x1e   : > { %p936_p3 = scmp.lt.s32.totalorder %s4206_s2, 1  ;;  %s4892_s29 = sld [smem:[#allocation11_spill]] }
  0x1f   : > { %s4894_s24 = sld [smem:[#allocation12_spill]]  ;;  %p3474_p4 = scmp.ne.s32.totalorder %s4206_s2, 0 }
  0x20   : > { %s4212_s6 = scalar_select %p936_p3, %s4206_s2, 1 }
  0x21   : > { %s4896_s26 = sld [smem:[#allocation13_spill]] }
  0x22   : > { %s3594_s28 = sshll.u32 %s4212_s6, 5  ;;  %s3461_s9 = sshll.u32 %s4212_s6, 1 }
  0x23   : > { %s4897_s27 = sld [smem:[#allocation14_spill]]  ;;  %s3597_s25 = sshll.u32 %s4212_s6, 4 }
  0x24   : > { %s4227_s30 = scalar_lea.vmem %s4892_s29, %s3594_s28  ;;  %s4898_s5 = sld [smem:[#allocation15_spill]] }
  0x25   : > { %4893 = sst [smem:[#allocation4_spill]] %s4227_s30  ;;  %s4232_s22 = scalar_lea.vmem %s4894_s24, %s3461_s9 }
  0x26   : > { %4895 = sst [smem:[#allocation5_spill]] %s4232_s22  ;;  %s982_s30 = scalar_lea.vmem %s4851_s14, %s4212_s6 }
  0x27   : > { %s4237_s20 = scalar_lea.vmem %s4896_s26, %s3594_s28  ;;  %s4899_s10 = sld [smem:[#allocation16_spill]] }
  0x28   : > { %s4900_s11 = sld [smem:[#allocation17_spill]]  ;;  %s990_s26 = scalar_lea.vmem %s4853_s16, %s4212_s6 }
  0x29   : > { %s4242_s4 = scalar_lea.vmem %s4897_s27, %s3461_s9  ;;  %s998_s19 = scalar_lea.vmem %s4855_s18, %s4212_s6 }
  0x2a   : > { %s4247_s29 = scalar_lea.vmem %s4898_s5, %s3594_s28  ;;  %1003 = sbr.rel (%p3474_p4) target bundleno = 322 (0x142), region = 124 }
  0x2b   : > { %s4902_s8 = sld [smem:[#allocation6_spill]] (!%p3474_p4) }
  0x2c   : > { %s4903_s22 = sld [smem:[#allocation7_spill]] (!%p3474_p4) }
  0x2d   : > { %s4252_s24 = scalar_lea.vmem %s4899_s10, %s3461_s9  ;;  %s4275_s10 = scalar_lea.vmem %s4852_s15, %s3597_s25 }
  0x2e   : > { %s4262_s1 = scalar_lea.vmem %s4900_s11, %s3597_s25  ;;  %s4284_s11 = scalar_lea.vmem %s4854_s17, %s3594_s28 }
  0x2f   : > { %s4901_s25 = sld [smem:[#allocation8_spill]]  ;;  %vm1531_vm0 = vcmask 261120   ;;  %vm1533_vm1 = vcmask 254976  }
  0x31   : > { %v1005_v31 = vld [vmem:[%s4902_s8 + $0x8] sm:$0xff]  ;;  %v1011_v32 = vld [vmem:[%s4902_s8 + $0x38] sm:$0x3]  ;;  %v1004_v35 = vld [vmem:[%s4902_s8] sm:$0xff] }
  0x32   : > { %v1113_v33 = vpack.c.bf16 %v1011_v32, %v1005_v31  ;;  %v1010_v36 = vld [vmem:[%s4902_s8 + $0x30] sm:$0x3]  ;;  %v1007_v39 = vld [vmem:[%s4902_s8 + $0x18] sm:$0xff]  ;;  %v1013_v40 = vld [vmem:[%s4902_s8 + $0x48] sm:$0x3] }
  0x33   : > { %v1112_v37 = vpack.c.bf16 %v1010_v36, %v1004_v35  ;;  %v1115_v41 = vpack.c.bf16 %v1013_v40, %v1007_v39  ;;  %v1006_v43 = vld [vmem:[%s4902_s8 + $0x10] sm:$0xff]  ;;  %v1012_v44 = vld [vmem:[%s4902_s8 + $0x40] sm:$0x3]  ;;  %v1009_v55 = vld [vmem:[%s4902_s8 + $0x28] sm:$0xff] }
  0x34   : > { %1440 = vmatprep.mubr.bf16.mxu0 %v1113_v33  ;;  %v1114_v45 = vpack.c.bf16 %v1012_v44, %v1006_v43  ;;  %v1015_v56 = vld [vmem:[%s4902_s8 + $0x58] sm:$0x3]  ;;  %v1008_v63 = vld [vmem:[%s4902_s8 + $0x20] sm:$0xff] }
  0x35   : > { %v3954_v0 = vld [vmem:[%s4901_s25 + $0x78] sm:$0xff]   ;;  %v3958_v4 = vld [vmem:[%s4901_s25 + $0x70] sm:$0xff]   ;;  %v3962_v8 = vld [vmem:[%s4901_s25 + $0x68] sm:$0xff]   ;;  %1481 = vmatprep.mubr.bf16.mxu1 %v1115_v41  ;;  %v1117_v57 = vpack.c.bf16 %v1015_v56, %v1009_v55 }
  0x36   : > { %v3955_v1 = vld [vmem:[%s4901_s25 + $0x38] sm:$0xff]   ;;  %3600 = vmatprep.subr.bf16.mxu0 %v3954_v0  ;;  %v3959_v5 = vld [vmem:[%s4901_s25 + $0x30] sm:$0xff]   ;;  %v3963_v9 = vld [vmem:[%s4901_s25 + $0x28] sm:$0xff]  }
  0x37   : > { %v3956_v2 = vld [vmem:[%s4901_s25 + $0xf8] sm:$0xff]   ;;  %3601 = vmatpush3.bf16.msra.mxu0 %v3955_v1  ;;  %v3960_v6 = vld [vmem:[%s4901_s25 + $0xf0] sm:$0xff]   ;;  %v3964_v10 = vld [vmem:[%s4901_s25 + $0xe8] sm:$0xff]  }
  0x38   : > { %v3957_v3 = vld [vmem:[%s4901_s25 + $0xb8] sm:$0xff]   ;;  %3622 = vmatprep.subr.bf16.mxu1 %v3956_v2  ;;  %3602 = vmatprep.subr.bf16.mxu0 %v3958_v4  ;;  %v3961_v7 = vld [vmem:[%s4901_s25 + $0xb0] sm:$0xff]   ;;  %v3965_v11 = vld [vmem:[%s4901_s25 + $0xa8] sm:$0xff]  }
  0x39   : > { %3623 = vmatpush3.bf16.msra.mxu1 %v3957_v3  ;;  %v3966_v12 = vld [vmem:[%s4901_s25 + $0x60] sm:$0xff]   ;;  %v3970_v16 = vld [vmem:[%s4901_s25 + $0x58] sm:$0xff]   ;;  %v3974_v20 = vld [vmem:[%s4901_s25 + $0x50] sm:$0xff]  }
  0x3a   : > { %3624 = vmatprep.subr.bf16.mxu1 %v3960_v6  ;;  %v3967_v13 = vld [vmem:[%s4901_s25 + $0x20] sm:$0xff]   ;;  %v3971_v17 = vld [vmem:[%s4901_s25 + $0x18] sm:$0xff]   ;;  %v3975_v21 = vld [vmem:[%s4901_s25 + $0x10] sm:$0xff]  }
  0x3b   : > { %3603 = vmatpush3.bf16.msra.mxu0 %v3959_v5  ;;  %v3968_v14 = vld [vmem:[%s4901_s25 + $0xe0] sm:$0xff]   ;;  %v3972_v18 = vld [vmem:[%s4901_s25 + $0xd8] sm:$0xff]   ;;  %v3976_v22 = vld [vmem:[%s4901_s25 + $0xd0] sm:$0xff]  }
  0x3c   : > { %3604 = vmatprep.subr.bf16.mxu0 %v3962_v8  ;;  %v3969_v15 = vld [vmem:[%s4901_s25 + $0xa0] sm:$0xff]   ;;  %v3973_v19 = vld [vmem:[%s4901_s25 + $0x98] sm:$0xff]   ;;  %v3977_v23 = vld [vmem:[%s4901_s25 + $0x90] sm:$0xff]  }
  0x3d   : > { %3625 = vmatpush3.bf16.msra.mxu1 %v3961_v7  ;;  %v3978_v24 = vld [vmem:[%s4901_s25 + $0x48] sm:$0xff]   ;;  %v3982_v28 = vld [vmem:[%s4901_s25 + $0x40] sm:$0xff]   ;;  %v3986_v38 = vld [vmem:[%s4901_s25 + $0x178] sm:$0xff]  }
  0x3e   : > { %3626 = vmatprep.subr.bf16.mxu1 %v3964_v10  ;;  %v3979_v25 = vld [vmem:[%s4901_s25 + $0x8] sm:$0xff]   ;;  %v3983_v29 = vld [vmem:[%s4901_s25] sm:$0xff]   ;;  %v3987_v42 = vld [vmem:[%s4901_s25 + $0x138] sm:$0xff]  }
  0x3f   : > { %3605 = vmatpush3.bf16.msra.mxu0 %v3963_v9  ;;  %v3980_v26 = vld [vmem:[%s4901_s25 + $0xc8] sm:$0xff]   ;;  %v3984_v30 = vld [vmem:[%s4901_s25 + $0xc0] sm:$0xff]   ;;  %v3988_v46 = vld [vmem:[%s4901_s25 + $0x170] sm:$0xff]  }
  0x40   : > { %3606 = vmatprep.subr.bf16.mxu0 %v3966_v12  ;;  %v3981_v27 = vld [vmem:[%s4901_s25 + $0x88] sm:$0xff]   ;;  %v3985_v34 = vld [vmem:[%s4901_s25 + $0x80] sm:$0xff]   ;;  %v3989_v47 = vld [vmem:[%s4901_s25 + $0x130] sm:$0xff]  }
  0x41   : > { %3627 = vmatpush3.bf16.msra.mxu1 %v3965_v11  ;;  %v3990_v48 = vld [vmem:[%s4901_s25 + $0x168] sm:$0xff]   ;;  %v3992_v50 = vld [vmem:[%s4901_s25 + $0x160] sm:$0xff]   ;;  %v3994_v52 = vld [vmem:[%s4901_s25 + $0x158] sm:$0xff]  }
  0x42   : > { %3628 = vmatprep.subr.bf16.mxu1 %v3968_v14  ;;  %v3991_v49 = vld [vmem:[%s4901_s25 + $0x128] sm:$0xff]   ;;  %v3993_v51 = vld [vmem:[%s4901_s25 + $0x120] sm:$0xff]   ;;  %v3995_v53 = vld [vmem:[%s4901_s25 + $0x118] sm:$0xff]  }
  0x43   : > { %3607 = vmatpush3.bf16.msra.mxu0 %v3967_v13  ;;  %v3996_v54 = vld [vmem:[%s4901_s25 + $0x150] sm:$0xff]   ;;  %v3998_v59 = vld [vmem:[%s4901_s25 + $0x148] sm:$0xff]   ;;  %v4000_v61 = vld [vmem:[%s4901_s25 + $0x140] sm:$0xff]  }
  0x44   : > { %3608 = vmatprep.subr.bf16.mxu0 %v3970_v16  ;;  %v3997_v58 = vld [vmem:[%s4901_s25 + $0x110] sm:$0xff]   ;;  %v3999_v60 = vld [vmem:[%s4901_s25 + $0x108] sm:$0xff]   ;;  %v4001_v62 = vld [vmem:[%s4901_s25 + $0x100] sm:$0xff]  }
  0x45   : > { %3629 = vmatpush3.bf16.msra.mxu1 %v3969_v15  ;;  %v1014_v0 = vld [vmem:[%s4902_s8 + $0x50] sm:$0x3]  ;;  %v1118_v8 = vld [vmem:[%s4903_s22] sm:$0xff]  ;;  %v1119_v14 = vld [vmem:[%s4903_s22 + $0x8] sm:$0x3] }
  0x46   : > { %3630 = vmatprep.subr.bf16.mxu1 %v3972_v18  ;;  %v1116_v1 = vpack.c.bf16 %v1014_v0, %v1008_v63 }
  0x47   : > { %3609 = vmatpush3.bf16.msra.mxu0 %v3971_v17 }
  0x48   : > { %3610 = vmatprep.subr.bf16.mxu0 %v3974_v20 }
  0x49   : > { %3631 = vmatpush3.bf16.msra.mxu1 %v3973_v19 }
  0x4a   : > { %3632 = vmatprep.subr.bf16.mxu1 %v3976_v22 }
  0x4b   : > { %3611 = vmatpush3.bf16.msra.mxu0 %v3975_v21 }
  0x4c   : > { %3612 = vmatprep.subr.bf16.mxu0 %v3978_v24 }
  0x4d   : > { %3633 = vmatpush3.bf16.msra.mxu1 %v3977_v23 }
  0x4e   : > { %3634 = vmatprep.subr.bf16.mxu1 %v3980_v26 }
  0x4f   : > { %3613 = vmatpush3.bf16.msra.mxu0 %v3979_v25 }
  0x50   : > { %3614 = vmatprep.subr.bf16.mxu0 %v3982_v28 }
  0x51   : > { %3635 = vmatpush3.bf16.msra.mxu1 %v3981_v27 }
  0x52   : > { %3636 = vmatprep.subr.bf16.mxu1 %v3984_v30 }
  0x53   : > { %3615 = vmatpush3.bf16.msra.mxu0 %v3983_v29 }
  0x54   : > { %3644 = vmatprep.subr.bf16.mxu0 %v3986_v38 }
  0x55   : > { %3637 = vmatpush3.bf16.msra.mxu1 %v3985_v34 }
  0x56   : > { %1441 = vmatmul.mubr.bf16.vlgmr.msra.gmra.mxu0 %v1112_v37 }
  0x57   : > { %3645 = vmatpush3.bf16.msra.mxu0 %v3987_v42  ;;  %1522 = vmatprep.mubr.bf16.mxu0 %v1117_v57 }
  0x58   : > { %1482 = vmatmul.mubr.bf16.vlgmr.msra.gmra.mxu1 %v1114_v45  ;;  %3646 = vmatprep.subr.bf16.mxu0 %v3988_v46 }
  0x5b   : > { %3647 = vmatpush3.bf16.msra.mxu0 %v3989_v47 }
  0x5c   : > { %3648 = vmatprep.subr.bf16.mxu0 %v3990_v48 }
  0x5f   : > { %3649 = vmatpush3.bf16.msra.mxu0 %v3991_v49 }
  0x60   : > { %3650 = vmatprep.subr.bf16.mxu0 %v3992_v50 }
  0x63   : > { %3651 = vmatpush3.bf16.msra.mxu0 %v3993_v51 }
  0x64   : > { %3652 = vmatprep.subr.bf16.mxu0 %v3994_v52 }
  0x67   : > { %3653 = vmatpush3.bf16.msra.mxu0 %v3995_v53 }
  0x68   : > { %3654 = vmatprep.subr.bf16.mxu0 %v3996_v54 }
  0x6b   : > { %3655 = vmatpush3.bf16.msra.mxu0 %v3997_v58 }
  0x6c   : > { %3656 = vmatprep.subr.bf16.mxu0 %v3998_v59 }
  0x6f   : > { %3657 = vmatpush3.bf16.msra.mxu0 %v3999_v60 }
  0x70   : > { %3658 = vmatprep.subr.bf16.mxu0 %v4000_v61 }
  0x73   : > { %3659 = vmatpush3.bf16.msra.mxu0 %v4001_v62 }
  0x76   : > { %1523 = vmatmul.mubr.bf16.vlgmr.msra.gmra.mxu0 %v1116_v1 }
 0x116   : > { %v3616_v2 = vpop.f32.mrf.mxu0 }
 0x118   : > { %v3617_v3 = vpop.f32.mrf.mxu0  ;;  %v3638_v4 = vpop.f32.mrf.mxu1 }
 0x119   : > { %v3618_v7 = vadd.f32 %v3617_v3, %v3616_v2 }
 0x11a   : > { %v3619_v5 = vpop.f32.mrf.mxu0  ;;  %v3639_v6 = vpop.f32.mrf.mxu1 }
 0x11b   : > { %v1443_v11 = vadd.f32 %v3618_v7, %v1118_v8  ;;  %v3640_v12 = vadd.f32 %v3639_v6, %v3638_v4 }
 0x11c   : > { %v3620_v9 = vpop.f32.mrf.mxu0  ;;  %v3641_v10 = vpop.f32.mrf.mxu1 }
 0x11d   : > { %v3621_v13 = vadd.f32 %v3620_v9, %v3619_v5  ;;  %v1484_v18 = vadd.f32 %v3640_v12, %v1443_v11 }
 0x11e   : > { %v3642_v15 = vpop.f32.mrf.mxu1 }
 0x11f   : > { %v1446_v19 = vadd.f32 %v3621_v13, %v1119_v14  ;;  %v3643_v20 = vadd.f32 %v3642_v15, %v3641_v10 }
 0x121   : > { %v1487_v25 = vadd.f32 %v3643_v20, %v1446_v19 }
 0x136   : > { %v3660_v16 = vpop.f32.mrf.mxu0 }
 0x138   : > { %v3661_v17 = vpop.f32.mrf.mxu0 }
 0x139   : > { %v3662_v21 = vadd.f32 %v3661_v17, %v3660_v16 }
 0x13a   : > { %v3663_v22 = vpop.f32.mrf.mxu0 }
 0x13b   : > { %v1525_v23 = vadd.f32 %v3662_v21, %v1484_v18 }
 0x13c   : > { %v3664_v24 = vpop.f32.mrf.mxu0 }
 0x13d   : > { %1532 = vst.msk [vmem:[#allocation2] sm:$0xff] %vm1531_vm0, %v1525_v23  ;;  %v3665_v26 = vadd.f32 %v3664_v24, %v3663_v22 }
 0x13f   : > { %v1528_v27 = vadd.f32 %v3665_v26, %v1487_v25 }
 0x141   : > { %1534 = vst.msk [vmem:[#allocation2 + $0x8] sm:$0x3] %vm1533_vm1, %v1528_v27 }
 0x142 PF: > { %s4904_s21 = sld [smem:[#allocation4_spill]]  ;;  %vm1539_vm2 = vcmask 261120   ;;  %v4065_v37 = vmov 0.0   ;;  %vm4066_vm3 = vmmov 0   ;;  %v4528_v49 = vld [vmem:[%s4237_s20 + $0x8] sm:$0xff]   ;;  %v4531_v50 = vld [vmem:[%s4237_s20 + $0x18] sm:$0xff]   ;;  %s4911_s5 = scalar_lea.vmem %s4850_s13, %s4212_s6 }
 0x143   : > { %3739 = vmatprep.subr.bf16.mxu0 %v4065_v37  ;;  %3747 = vmatprep.subr.bf16.mxu1 %v4065_v37  ;;  %s4905_s0 = sld [smem:[#allocation9_spill]]  ;;  %v4540_v52 = vld [vmem:[%s4237_s20] sm:$0xff]   ;;  %v4543_v53 = vld [vmem:[%s4237_s20 + $0x10] sm:$0xff]   ;;  %v4554_v54 = vld [vmem:[%s4247_s29 + $0x8] sm:$0xff]   ;;  %vm1974_vm4 = vcmask 130048   ;;  %vm2100_vm5 = vcmask 1041408  }
 0x144   : > { %v4477_v28 = vld [vmem:[#allocation2] sm:$0xff]  ;;  %3743 = vmatprep.mubr.msk.bf16.mxu0 %vm4066_vm3, %v4065_v37  ;;  %3751 = vmatprep.mubr.msk.bf16.mxu1 %vm4066_vm3, %v4065_v37  ;;  %s4907_s3 = sld [smem:[#allocation10_spill]]  ;;  %v4557_v55 = vld [vmem:[%s4247_s29 + $0x18] sm:$0xff]   ;;  %v4569_v57 = vld [vmem:[%s4247_s29 + $0x10] sm:$0xff]   ;;  %vm2101_vm6 = vcmask 1042432   ;;  %v4067_v24 = vmov 65535  }
 0x145   : > { %v1540_v29 = vsel %vm1539_vm2, %v4477_v28, 0.0  ;;  %v4566_v56 = vld [vmem:[%s4247_s29] sm:$0xff]   ;;  %s4909_s20 = sld [smem:[#allocation5_spill]]  ;;  %v2102_v25 = vsel %vm2100_vm5, 4294967295, %v4067_v24  ;;  %vm2069_vm7 = vcmask 36864   ;;  %vm1543_vm8 = vcmask 254976  }
 0x146   : > { %1541 = vadd.xlane.f32.xlu0 %v1540_v29  ;;  %v4588_v2 = vld [vmem:[%s4242_s4] ss:$0 sm:$0xff]  ;;  %v4591_v3 = vld [vmem:[%s4242_s4 + $0x1] ss:$0 sm:$0xff]  ;;  %vm2096_vm9 = vcmask 39936   ;;  %vm2293_vm10 = vcmask 258048  }
 0x147   : > { %v4604_v20 = vld [vmem:[%s4252_s24] ss:$0 sm:$0xff]  ;;  %v4607_v21 = vld [vmem:[%s4252_s24 + $0x1] ss:$0 sm:$0xff]  ;;  %vm2859_vm11 = vcmask 1044480   ;;  %s4910_s24 = scalar_lea.vmem %s4849_s12, %s4212_s6  ;;  %vm3035_vm12 = vcmask 523264  }
 0x148   : > { %v4484_v35 = vld [vmem:[%s4904_s21 + $0x8] sm:$0xff]   ;;  %v4487_v36 = vld [vmem:[%s4904_s21 + $0x18] sm:$0xff]   ;;  %v4496_v38 = vld [vmem:[%s4904_s21] sm:$0xff]   ;;  %p3582_p5 = scmp.ne.s32.totalorder %s4206_s2, 1 }
 0x149   : > { %3740 = vmatpush3.bf16.msra.mxu0 %v4484_v35  ;;  %3748 = vmatpush3.bf16.msra.mxu1 %v4487_v36  ;;  %v4499_v39 = vld [vmem:[%s4904_s21 + $0x10] sm:$0xff]   ;;  %s4906_s7 = scalar_lea.vmem %s4905_s0, %s4212_s6  ;;  %s4914_s29 = sld [smem:[#allocation19_spill]] (!%p3582_p5) }
 0x14a   : > { %3741 = vmatprep.subr.bf16.mxu0 %v4065_v37  ;;  %3749 = vmatprep.subr.bf16.mxu1 %v4065_v37  ;;  %v4514_v44 = vld [vmem:[%s4906_s7] ss:$0 sm:$0xff]  ;;  %s4908_s27 = scalar_lea.vmem %s4907_s3, %s4212_s6  ;;  %s4912_s7 = sld [smem:[#allocation20_spill]] (!%p3582_p5) }
 0x14b   : > { %v4521_v46 = vld [vmem:[%s4908_s27] ss:$0 sm:$0xff]  ;;  %v4599_v13 = vld [vmem:[%s4909_s20 + $0x1] ss:$0 sm:$0xff]  ;;  %s4913_s27 = sld [smem:[#allocation18_spill]] (!%p3582_p5) }
 0x14c   : > { %v4596_v12 = vld [vmem:[%s4909_s20] ss:$0 sm:$0xff]  ;;  %s4915_s21 = sld [smem:[#allocation22_spill]] (!%p3582_p5) }
 0x14d   : > { %3742 = vmatpush3.bf16.msra.mxu0 %v4496_v38  ;;  %3750 = vmatpush3.bf16.msra.mxu1 %v4499_v39  ;;  %s4916_s9 = sld [smem:[#allocation21_spill]] (!%p3582_p5) }
 0x14e   : > { %3755 = vmatprep.subr.bf16.mxu0 %v4065_v37  ;;  %3763 = vmatprep.subr.bf16.mxu1 %v4065_v37 }
 0x1cf   : > { %v1542_v30 = vpop.xlane.xlu0 %1541 }
 0x1d0   : > { %v1548_v31 = vmul.f32 0.03125, %v1542_v30 }
 0x1d2   : > { %v1550_v32 = vsub.f32 %v4477_v28, %v1548_v31  ;;  %v4615_v31 = vsel %vm2101_vm6, %v2102_v25, 0 }
 0x1d4   : > { %v1552_v33 = vmul.f32 %v1550_v32, %v1550_v32 }
 0x1d6   : > { %v1554_v34 = vsel %vm1539_vm2, %v1552_v33, 0.0 }
 0x1d7   : > { %1555 = vadd.xlane.f32.xlu0 %v1554_v34 }
 0x260   : > { %v1556_v40 = vpop.xlane.xlu0 %1555 }
 0x261   : > { %v1560_v41 = vmul.f32 0.03125, %v1556_v40 }
 0x263   : > { %v1562_v42 = vadd.f32 1e-12, %v1560_v41 }
 0x265   : > { %4022 = vrsqrt.f32 %v1562_v42 }
 0x272   : > { %v4023_v43 = vpop.eup %4022 }
 0x273   : > { %v1566_v45 = vmul.f32 %v4023_v43, %v1550_v32 }
 0x275   : > { %v1574_v47 = vmul.f32 %v4514_v44, %v1566_v45 }
 0x277   : > { %v4525_v48 = vadd.f32 %v4521_v46, %v1574_v47 }
 0x279   : > { %v1618_v51 = vpack.c.bf16 %v4525_v48, %v4525_v48 }
 0x27b   : > { %3744 = vmatmul.mubr.msk.bf16.vlgmr.msra.gmra.mxu0 %vm1539_vm2, %v1618_v51  ;;  %3752 = vmatmul.mubr.msk.bf16.vlgmr.msra.gmra.mxu1 %vm1539_vm2, %v1618_v51 }
 0x27c   : > { %3756 = vmatpush3.bf16.msra.mxu0 %v4528_v49  ;;  %3764 = vmatpush3.bf16.msra.mxu1 %v4531_v50 }
 0x27d   : > { %3757 = vmatprep.subr.bf16.mxu0 %v4065_v37  ;;  %3765 = vmatprep.subr.bf16.mxu1 %v4065_v37 }
 0x27e   : > { %3759 = vmatprep.mubr.msk.bf16.mxu0 %vm4066_vm3, %v4065_v37  ;;  %3767 = vmatprep.mubr.msk.bf16.mxu1 %vm4066_vm3, %v4065_v37 }
 0x280   : > { %3758 = vmatpush3.bf16.msra.mxu0 %v4540_v52  ;;  %3766 = vmatpush3.bf16.msra.mxu1 %v4543_v53 }
 0x281   : > { %3771 = vmatprep.subr.bf16.mxu0 %v4065_v37  ;;  %3779 = vmatprep.subr.bf16.mxu1 %v4065_v37 }
 0x283   : > { %3760 = vmatmul.mubr.msk.bf16.vlgmr.msra.gmra.mxu0 %vm1539_vm2, %v1618_v51  ;;  %3768 = vmatmul.mubr.msk.bf16.vlgmr.msra.gmra.mxu1 %vm1539_vm2, %v1618_v51 }
 0x284   : > { %3772 = vmatpush3.bf16.msra.mxu0 %v4554_v54  ;;  %3780 = vmatpush3.bf16.msra.mxu1 %v4557_v55 }
 0x285   : > { %3773 = vmatprep.subr.bf16.mxu0 %v4065_v37  ;;  %3781 = vmatprep.subr.bf16.mxu1 %v4065_v37 }
 0x286   : > { %3775 = vmatprep.mubr.msk.bf16.mxu0 %vm4066_vm3, %v4065_v37  ;;  %3783 = vmatprep.mubr.msk.bf16.mxu1 %vm4066_vm3, %v4065_v37 }
 0x288   : > { %3774 = vmatpush3.bf16.msra.mxu0 %v4566_v56  ;;  %3782 = vmatpush3.bf16.msra.mxu1 %v4569_v57 }
 0x289   : > { %3787 = vmatprep.subr.bf16.mxu0 %v4065_v37  ;;  %3793 = vmatprep.subr.bf16.mxu1 %v4065_v37 }
 0x28b   : > { %3776 = vmatmul.mubr.msk.bf16.vlgmr.msra.gmra.mxu0 %vm1539_vm2, %v1618_v51  ;;  %3784 = vmatmul.mubr.msk.bf16.vlgmr.msra.gmra.mxu1 %vm1539_vm2, %v1618_v51 }
 0x28c   : > { %3789 = vmatprep.mubr.msk.bf16.mxu0 %vm4066_vm3, %v4065_v37  ;;  %3795 = vmatprep.mubr.msk.bf16.mxu1 %vm4066_vm3, %v4065_v37 }
 0x33b   : > { %v1680_v58 = vpop.f32.mrf.mxu0  ;;  %v1732_v59 = vpop.f32.mrf.mxu1 }
 0x33c   : > { %v1681_v22 = vadd.f32 %v4596_v12, %v1680_v58  ;;  %v1733_v23 = vadd.f32 %v4599_v13, %v1732_v59 }
 0x33d   : > { %v3745_v60 = vpop.f32.mrf.mxu0  ;;  %v3753_v61 = vpop.f32.mrf.mxu1 }
 0x33e   : > { %v1970_v34 = vpack.c.bf16 %v1681_v22, %v1681_v22  ;;  %v1971_v40 = vpack.c.bf16 %v1733_v23, %v1733_v23 }
 0x33f   : > { %v1683_v62 = vpop.f32.mrf.mxu0  ;;  %v1735_v63 = vpop.f32.mrf.mxu1 }
 0x341   : > { %v3746_v0 = vpop.f32.mrf.mxu0  ;;  %v3754_v1 = vpop.f32.mrf.mxu1 }
 0x343   : > { %v1796_v4 = vpop.f32.mrf.mxu0  ;;  %v1848_v5 = vpop.f32.mrf.mxu1 }
 0x344   : > { %v1797_v6 = vadd.f32 %v4588_v2, %v1796_v4  ;;  %v1849_v7 = vadd.f32 %v4591_v3, %v1848_v5 }
 0x345   : > { %v3761_v8 = vpop.f32.mrf.mxu0  ;;  %v3769_v9 = vpop.f32.mrf.mxu1 }
 0x346   : > { %v1972_v10 = vpack.c.bf16 %v1797_v6, %v1797_v6  ;;  %v1973_v11 = vpack.c.bf16 %v1849_v7, %v1849_v7 }
 0x347   : > { %v1799_v14 = vpop.f32.mrf.mxu0  ;;  %v1851_v15 = vpop.f32.mrf.mxu1 }
 0x348   : > { %v1979_v16 = vsel %vm1974_vm4, %v1972_v10, 0  ;;  %v2025_v17 = vsel %vm1974_vm4, %v1973_v11, 0 }
 0x349   : > { %v3762_v18 = vpop.f32.mrf.mxu0  ;;  %v3770_v19 = vpop.f32.mrf.mxu1  ;;  %3788 = vmatpush3.bf16.xpose.msra.mxu0 %v1979_v16  ;;  %3794 = vmatpush3.bf16.xpose.msra.mxu1 %v2025_v17 }
 0x34a   : > { %3799 = vmatprep.subr.bf16.mxu0 %v4065_v37  ;;  %3805 = vmatprep.subr.bf16.mxu1 %v4065_v37  ;;  %v4629_v19 = vld [vmem:[#allocation2 + $0x8] sm:$0x3] }
 0x34b   : > { %v1912_v26 = vpop.f32.mrf.mxu0  ;;  %v1964_v27 = vpop.f32.mrf.mxu1  ;;  %v1544_v23 = vsel %vm1543_vm8, %v4629_v19, 0.0 }
 0x34c   : > { %v1913_v29 = vadd.f32 %v4604_v20, %v1912_v26  ;;  %v1965_v30 = vadd.f32 %v4607_v21, %v1964_v27 }
 0x34d   : > { %v3777_v32 = vpop.f32.mrf.mxu0  ;;  %v3785_v33 = vpop.f32.mrf.mxu1 }
 0x34e   : > { %v2094_v41 = vpack.c.bf16 %v1913_v29, %v1913_v29  ;;  %v2095_v42 = vpack.c.bf16 %v1965_v30, %v1965_v30 }
 0x34f   : > { %v1915_v43 = vpop.f32.mrf.mxu0  ;;  %v1967_v45 = vpop.f32.mrf.mxu1 }
 0x350   : > { %v2105_v47 = vand.u32 %v4615_v31, %v2094_v41  ;;  %v2151_v51 = vand.u32 %v4615_v31, %v2095_v42  ;;  %3790 = vmatmul.mubr.msk.bf16.vlgmr.msra.gmra.mxu0 %vm1974_vm4, %v1970_v34  ;;  %3796 = vmatmul.mubr.msk.bf16.vlgmr.msra.gmra.mxu1 %vm1974_vm4, %v1971_v40 }
 0x351   : > { %v3778_v58 = vpop.f32.mrf.mxu0  ;;  %v3786_v59 = vpop.f32.mrf.mxu1  ;;  %3801 = vmatprep.mubr.msk.bf16.mxu0 %vm4066_vm3, %v4065_v37  ;;  %3807 = vmatprep.mubr.msk.bf16.mxu1 %vm4066_vm3, %v4065_v37 }
 0x352   : > { %3800 = vmatpush3.bf16.msra.mxu0 %v2105_v47  ;;  %3806 = vmatpush3.bf16.msra.mxu1 %v2151_v51  ;;  %v4644_v51 = vld [vmem:[%s4262_s1] sm:$0xff]   ;;  %v4648_v58 = vld [vmem:[%s4262_s1 + $0x8] sm:$0xff]  }
 0x353   : > { %3811 = vmatprep.subr.bf16.mxu0 %v4065_v37  ;;  %3817 = vmatprep.subr.bf16.mxu1 %v4065_v37 }
 0x410   : > { %v2015_v60 = vpop.f32.mrf.mxu0  ;;  %v2061_v61 = vpop.f32.mrf.mxu1 }
 0x411   : > { %v2067_v62 = vmul.f32 0.25, %v2015_v60  ;;  %v2068_v1 = vmul.f32 0.25, %v2061_v61 }
 0x412   : > { %v3791_v63 = vpop.f32.mrf.mxu0  ;;  %v3797_v0 = vpop.f32.mrf.mxu1 }
 0x413   : > { %v2070_v4 = vsel %vm2069_vm7, %v2067_v62, -inf  ;;  %v2073_v9 = vsel %vm2069_vm7, %v2068_v1, -inf }
 0x414   : > { %v2064_v5 = vpop.f32.mrf.mxu1  ;;  %2071 = vmax.xlane.f32.xlu1 %v2070_v4  ;;  %v2018_v6 = vpop.f32.mrf.mxu0 }
 0x416   : > { %v3792_v7 = vpop.f32.mrf.mxu0  ;;  %v3798_v8 = vpop.f32.mrf.mxu1 }
 0x418   : > { %2074 = vmax.xlane.f32.xlu1 %v2073_v9 }
 0x49d   : > { %v2072_v10 = vpop.xlane.xlu1 %2071 }
 0x49e   : > { %v2076_v11 = vsub.f32 %v2067_v62, %v2072_v10 }
 0x4a0   : > { %v2078_v14 = vmul.f32 1.442695, %v2076_v11 }
 0x4a1   : > { %v2075_v15 = vpop.xlane.xlu1 %2074 }
 0x4a2   : > { %4024 = vpow2.f32 %v2078_v14  ;;  %v2077_v16 = vsub.f32 %v2068_v1, %v2075_v15 }
 0x4a4   : > { %v2080_v17 = vmul.f32 1.442695, %v2077_v16 }
 0x4a6   : > { %4026 = vpow2.f32 %v2080_v17 }
 0x4af   : > { %v4025_v18 = vpop.eup %4024 }
 0x4b0   : > { %v2082_v22 = vsel %vm2069_vm7, %v4025_v18, 0.0 }
 0x4b1   : > { %2083 = vadd.xlane.f32.xlu0 %v2082_v22 }
 0x4b3   : > { %v4027_v24 = vpop.eup %4026 }
 0x4b4   : > { %v2085_v25 = vsel %vm2069_vm7, %v4027_v24, 0.0 }
 0x4b5   : > { %1545 = vadd.xlane.f32.xlu0 %v1544_v23  ;;  %2086 = vadd.xlane.f32.xlu1 %v2085_v25 }
 0x53a   : > { %v2084_v26 = vpop.xlane.xlu0 %2083 }
 0x53b   : > { %4028 = vrcp.f32 %v2084_v26 }
 0x53e   : > { %v1546_v27 = vpop.xlane.xlu0 %1545  ;;  %v2087_v29 = vpop.xlane.xlu1 %2086 }
 0x53f   : > { %v1549_v30 = vmul.f32 0.03125, %v1546_v27  ;;  %4030 = vrcp.f32 %v2087_v29 }
 0x541   : > { %v1551_v32 = vsub.f32 %v4629_v19, %v1549_v30 }
 0x543   : > { %v1553_v33 = vmul.f32 %v1551_v32, %v1551_v32 }
 0x545   : > { %v1557_v34 = vsel %vm1543_vm8, %v1553_v33, 0.0 }
 0x546   : > { %1558 = vadd.xlane.f32.xlu1 %v1557_v34 }
 0x548   : > { %v4029_v40 = vpop.eup %4028 }
 0x549   : > { %v2090_v41 = vmul.f32 %v4029_v40, %v4025_v18 }
 0x54b   : > { %v2092_v42 = vpack.c.bf16 %v2090_v41, %v2090_v41 }
 0x54c   : > { %v4031_v43 = vpop.eup %4030 }
 0x54d   : > { %3802 = vmatmul.mubr.msk.bf16.vlgmr.msra.gmra.mxu0 %vm2096_vm9, %v2092_v42  ;;  %v2091_v45 = vmul.f32 %v4031_v43, %v4027_v24 }
 0x54e   : > { %3813 = vmatprep.mubr.msk.bf16.mxu0 %vm4066_vm3, %v4065_v37  ;;  %3812 = vmatpush3.bf16.msra.mxu0 %v4644_v51 }
 0x54f   : > { %v2093_v47 = vpack.c.bf16 %v2091_v45, %v2091_v45  ;;  %3823 = vmatprep.subr.bf16.mxu0 %v4065_v37 }
 0x551   : > { %3808 = vmatmul.mubr.msk.bf16.vlgmr.msra.gmra.mxu1 %vm2096_vm9, %v2093_v47 }
 0x552   : > { %3819 = vmatprep.mubr.msk.bf16.mxu1 %vm4066_vm3, %v4065_v37  ;;  %3818 = vmatpush3.bf16.msra.mxu1 %v4648_v58 }
 0x553   : > { %3831 = vmatprep.subr.bf16.mxu1 %v4065_v37 }
 0x5cf   : > { %v1559_v59 = vpop.xlane.xlu1 %1558 }
 0x5d0   : > { %v1561_v60 = vmul.f32 0.03125, %v1559_v59 }
 0x5d2   : > { %v1563_v61 = vadd.f32 1e-12, %v1561_v60 }
 0x5d4   : > { %4032 = vrsqrt.f32 %v1563_v61 }
 0x5e1   : > { %v4033_v62 = vpop.eup %4032 }
 0x5e2   : > { %v1567_v63 = vmul.f32 %v4033_v62, %v1551_v32 }
 0x5e4   : > { %v1575_v0 = vmul.f32 %v4514_v44, %v1567_v63 }
 0x5e6   : > { %v1583_v1 = vadd.f32 %v4521_v46, %v1575_v0 }
 0x5e8   : > { %v2297_v4 = vpack.c.bf16 %v1583_v1, %v4525_v48 }
 0x5ea   : > { %v2299_v7 = vshrl.u32 %v2297_v4, 16  ;;  %v2302_v8 = vshll.u32 %v2297_v4, 16 }
 0x5ec   : > { %v2301_v44 = vrot.slane %v2299_v7, 2  ;;  %v2304_v46 = vrot.slane %v2302_v8, 3 }
 0x5ee   : > { %v2305_v17 = vor.u32 %v2304_v46, %v2301_v44 }
 0x60d   : > { %v2141_v5 = vpop.f32.mrf.mxu0 }
 0x60e   : > { %v2193_v6 = vpack.c.bf16 %v2141_v5, %v2141_v5 }
 0x60f   : > { %v3803_v9 = vpop.f32.mrf.mxu0 }
 0x610   : > { %3814 = vmatmul.mubr.msk.bf16.vlgmr.msra.gmra.mxu0 %vm1974_vm4, %v2193_v6 }
 0x611   : > { %v2144_v10 = vpop.f32.mrf.mxu0  ;;  %v2187_v11 = vpop.f32.mrf.mxu1  ;;  %3824 = vmatpush3.bf16.msra.mxu0 %v4484_v35  ;;  %3827 = vmatprep.mubr.msk.bf16.mxu0 %vm4066_vm3, %v4065_v37 }
 0x612   : > { %v2194_v14 = vpack.c.bf16 %v2187_v11, %v2187_v11  ;;  %3825 = vmatprep.subr.bf16.mxu0 %v4065_v37 }
 0x613   : > { %v3804_v48 = vpop.f32.mrf.mxu0  ;;  %v3809_v15 = vpop.f32.mrf.mxu1 }
 0x614   : > { %3820 = vmatmul.mubr.msk.bf16.vlgmr.msra.gmra.mxu1 %vm1974_vm4, %v2194_v14 }
 0x615   : > { %v2190_v16 = vpop.f32.mrf.mxu1  ;;  %3826 = vmatpush3.bf16.msra.mxu0 %v4496_v38  ;;  %3832 = vmatpush3.bf16.msra.mxu1 %v4487_v36 }
 0x616   : > { %3833 = vmatprep.subr.bf16.mxu1 %v4065_v37  ;;  %3839 = vmatprep.subr.bf16.mxu0 %v4065_v37 }
 0x617   : > { %v3810_v35 = vpop.f32.mrf.mxu1  ;;  %3835 = vmatprep.mubr.msk.bf16.mxu1 %vm4066_vm3, %v4065_v37 }
 0x618   : > { %3828 = vmatmul.mubr.msk.bf16.vlgmr.msra.gmra.mxu0 %vm1539_vm2, %v2305_v17 }
 0x619   : > { %3834 = vmatpush3.bf16.msra.mxu1 %v4499_v39  ;;  %3840 = vmatpush3.bf16.msra.mxu0 %v4528_v49 }
 0x61a   : > { %3841 = vmatprep.subr.bf16.mxu0 %v4065_v37  ;;  %3847 = vmatprep.subr.bf16.mxu1 %v4065_v37 }
 0x61b   : > { %3843 = vmatprep.mubr.msk.bf16.mxu0 %vm4066_vm3, %v4065_v37 }
 0x61c   : > { %3836 = vmatmul.mubr.msk.bf16.vlgmr.msra.gmra.mxu1 %vm1539_vm2, %v2305_v17 }
 0x61d   : > { %3842 = vmatpush3.bf16.msra.mxu0 %v4540_v52  ;;  %3848 = vmatpush3.bf16.msra.mxu1 %v4531_v50 }
 0x61e   : > { %3849 = vmatprep.subr.bf16.mxu1 %v4065_v37  ;;  %3855 = vmatprep.subr.bf16.mxu0 %v4065_v37 }
 0x61f   : > { %3851 = vmatprep.mubr.msk.bf16.mxu1 %vm4066_vm3, %v4065_v37 }
 0x620   : > { %3844 = vmatmul.mubr.msk.bf16.vlgmr.msra.gmra.mxu0 %vm1539_vm2, %v2305_v17 }
 0x621   : > { %3850 = vmatpush3.bf16.msra.mxu1 %v4543_v53  ;;  %3856 = vmatpush3.bf16.msra.mxu0 %v4554_v54 }
 0x622   : > { %3857 = vmatprep.subr.bf16.mxu0 %v4065_v37  ;;  %3863 = vmatprep.subr.bf16.mxu1 %v4065_v37 }
 0x623   : > { %3859 = vmatprep.mubr.msk.bf16.mxu0 %vm4066_vm3, %v4065_v37 }
 0x624   : > { %3852 = vmatmul.mubr.msk.bf16.vlgmr.msra.gmra.mxu1 %vm1539_vm2, %v2305_v17 }
 0x625   : > { %3858 = vmatpush3.bf16.msra.mxu0 %v4566_v56  ;;  %3864 = vmatpush3.bf16.msra.mxu1 %v4557_v55 }
 0x626   : > { %3865 = vmatprep.subr.bf16.mxu1 %v4065_v37  ;;  %3867 = vmatprep.mubr.msk.bf16.mxu1 %vm4066_vm3, %v4065_v37 }
 0x627   : > { %3871 = vmatprep.subr.bf16.mxu0 %v4065_v37 }
 0x628   : > { %3860 = vmatmul.mubr.msk.bf16.vlgmr.msra.gmra.mxu0 %vm1539_vm2, %v2305_v17 }
 0x629   : > { %3866 = vmatpush3.bf16.msra.mxu1 %v4569_v57  ;;  %3873 = vmatprep.mubr.msk.bf16.mxu0 %vm4066_vm3, %v4065_v37 }
 0x62a   : > { %3877 = vmatprep.subr.bf16.mxu1 %v4065_v37 }
 0x62c   : > { %3868 = vmatmul.mubr.msk.bf16.vlgmr.msra.gmra.mxu1 %vm1539_vm2, %v2305_v17 }
 0x62d   : > { %3879 = vmatprep.mubr.msk.bf16.mxu1 %vm4066_vm3, %v4065_v37 }
 0x6d0   : > { %v2238_v36 = vpop.f32.mrf.mxu0 }
 0x6d1   : > { %v2294_v50 = vsel %vm2293_vm10, %v2238_v36, 0.0 }
 0x6d2   : > { %v3815_v38 = vpop.f32.mrf.mxu0 }
 0x6d4   : > { %v2241_v39 = vpop.f32.mrf.mxu0  ;;  %v2287_v49 = vpop.f32.mrf.mxu1 }
 0x6d5   : > { %v2295_v52 = vsel %vm2293_vm10, %v2287_v49, 0.0 }
 0x6d6   : > { %v4706_v53 = vadd.f32 %v2295_v52, %v2294_v50  ;;  %v3816_v54 = vpop.f32.mrf.mxu0  ;;  %v3821_v55 = vpop.f32.mrf.mxu1 }
 0x6d8   : > { %v2290_v56 = vpop.f32.mrf.mxu1  ;;  %v2343_v57 = vpop.f32.mrf.mxu0 }
 0x6d9   : > { %v2344_v59 = vadd.f32 %v4596_v12, %v2343_v57 }
 0x6da   : > { %v3822_v18 = vpop.f32.mrf.mxu1  ;;  %v3829_v22 = vpop.f32.mrf.mxu0 }
 0x6db   : > { %v2549_v4 = vpack.c.bf16 %v2344_v59, %v2344_v59 }
 0x6dc   : > { %v2346_v23 = vpop.f32.mrf.mxu0  ;;  %v2383_v24 = vpop.f32.mrf.mxu1 }
 0x6de   : > { %v3830_v25 = vpop.f32.mrf.mxu0  ;;  %v3837_v26 = vpop.f32.mrf.mxu1 }
 0x6e0   : > { %v2386_v27 = vpop.f32.mrf.mxu1  ;;  %v2423_v29 = vpop.f32.mrf.mxu0 }
 0x6e1   : > { %v2424_v30 = vadd.f32 %v4588_v2, %v2423_v29 }
 0x6e2   : > { %v3838_v32 = vpop.f32.mrf.mxu1  ;;  %v3845_v33 = vpop.f32.mrf.mxu0 }
 0x6e3   : > { %v2551_v34 = vpack.c.bf16 %v2424_v30, %v2424_v30 }
 0x6e4   : > { %v2426_v40 = vpop.f32.mrf.mxu0  ;;  %v2463_v41 = vpop.f32.mrf.mxu1 }
 0x6e5   : > { %v2557_v42 = vsel %vm1974_vm4, %v2551_v34, 0  ;;  %v2464_v43 = vadd.f32 %v4591_v3, %v2463_v41  ;;  %v2384_v3 = vadd.f32 %v4599_v13, %v2383_v24 }
 0x6e6   : > { %v3846_v45 = vpop.f32.mrf.mxu0  ;;  %v3853_v47 = vpop.f32.mrf.mxu1  ;;  %3872 = vmatpush3.bf16.xpose.msra.mxu0 %v2557_v42 }
 0x6e7   : > { %v2552_v60 = vpack.c.bf16 %v2464_v43, %v2464_v43  ;;  %3883 = vmatprep.subr.bf16.mxu0 %v4065_v37 }
 0x6e8   : > { %v2466_v61 = vpop.f32.mrf.mxu1  ;;  %v2503_v62 = vpop.f32.mrf.mxu0 }
 0x6e9   : > { %v2603_v2 = vsel %vm1974_vm4, %v2552_v60, 0  ;;  %v2504_v63 = vadd.f32 %v4604_v20, %v2503_v62  ;;  %v2550_v20 = vpack.c.bf16 %v2384_v3, %v2384_v3 }
 0x6ea   : > { %v3854_v0 = vpop.f32.mrf.mxu1  ;;  %v3861_v1 = vpop.f32.mrf.mxu0  ;;  %3878 = vmatpush3.bf16.xpose.msra.mxu1 %v2603_v2 }
 0x6eb   : > { %v2671_v5 = vpack.c.bf16 %v2504_v63, %v2504_v63  ;;  %3889 = vmatprep.subr.bf16.mxu1 %v4065_v37 }
 0x6ec   : > { %v2506_v6 = vpop.f32.mrf.mxu0  ;;  %v2543_v12 = vpop.f32.mrf.mxu1 }
 0x6ed   : > { %v2677_v7 = vand.u32 %v2671_v5, %v4615_v31  ;;  %v2544_v8 = vadd.f32 %v4607_v21, %v2543_v12  ;;  %3874 = vmatmul.mubr.msk.bf16.vlgmr.msra.gmra.mxu0 %vm1974_vm4, %v2549_v4 }
 0x6ee   : > { %v3862_v9 = vpop.f32.mrf.mxu0  ;;  %v3869_v10 = vpop.f32.mrf.mxu1  ;;  %3885 = vmatprep.mubr.msk.bf16.mxu0 %vm4066_vm3, %v4065_v37 }
 0x6ef   : > { %v2672_v11 = vpack.c.bf16 %v2544_v8, %v2544_v8  ;;  %3884 = vmatpush3.bf16.msra.mxu0 %v2677_v7  ;;  %v3569_v7 = vld [vmem:[%s4910_s24] ss:$0 sm:$0xff] }
 0x6f0   : > { %v2546_v13 = vpop.f32.mrf.mxu1  ;;  %3895 = vmatprep.subr.bf16.mxu0 %v4065_v37 }
 0x6f1   : > { %v2723_v14 = vand.u32 %v2672_v11, %v4615_v31  ;;  %3880 = vmatmul.mubr.msk.bf16.vlgmr.msra.gmra.mxu1 %vm1974_vm4, %v2550_v20 }
 0x6f2   : > { %v3870_v44 = vpop.f32.mrf.mxu1  ;;  %3891 = vmatprep.mubr.msk.bf16.mxu1 %vm4066_vm3, %v4065_v37 }
 0x6f3   : > { %3890 = vmatpush3.bf16.msra.mxu1 %v2723_v14 }
 0x6f4   : > { %3901 = vmatprep.subr.bf16.mxu1 %v4065_v37 }
 0x7ad   : > { %v2593_v21 = vpop.f32.mrf.mxu0 }
 0x7ae   : > { %v2645_v46 = vmul.f32 0.25, %v2593_v21 }
 0x7af   : > { %v3875_v48 = vpop.f32.mrf.mxu0 }
 0x7b0   : > { %v2647_v15 = vsel %vm2069_vm7, %v2645_v46, -inf }
 0x7b1   : > { %v2639_v16 = vpop.f32.mrf.mxu1  ;;  %2648 = vmax.xlane.f32.xlu0 %v2647_v15  ;;  %v2596_v17 = vpop.f32.mrf.mxu0 }
 0x7b2   : > { %v2646_v35 = vmul.f32 0.25, %v2639_v16 }
 0x7b3   : > { %v3876_v36 = vpop.f32.mrf.mxu0  ;;  %v3881_v31 = vpop.f32.mrf.mxu1 }
 0x7b4   : > { %v2650_v38 = vsel %vm2069_vm7, %v2646_v35, -inf  ;;  %v4016_v36 = vld [vmem:[%s4275_s10 + $0x8] sm:$0xff]   ;;  %v4017_v31 = vld [vmem:[%s4275_s10] sm:$0xff]  }
 0x7b5   : > { %2651 = vmax.xlane.f32.xlu1 %v2650_v38  ;;  %v2642_v39 = vpop.f32.mrf.mxu1 }
 0x7b7   : > { %v3882_v49 = vpop.f32.mrf.mxu1 }
 0x83a   : > { %v2649_v50 = vpop.xlane.xlu0 %2648 }
 0x83b   : > { %v2653_v52 = vsub.f32 %v2645_v46, %v2649_v50 }
 0x83d   : > { %v2655_v54 = vmul.f32 1.442695, %v2653_v52 }
 0x83e   : > { %v2652_v55 = vpop.xlane.xlu1 %2651 }
 0x83f   : > { %4034 = vpow2.f32 %v2655_v54  ;;  %v2654_v56 = vsub.f32 %v2646_v35, %v2652_v55 }
 0x841   : > { %v2657_v57 = vmul.f32 1.442695, %v2654_v56  ;;  %v3570_v56 = vld [vmem:[%s4911_s5] ss:$0 sm:$0xff] }
 0x843   : > { %4036 = vpow2.f32 %v2657_v57 }
 0x84c   : > { %v4035_v18 = vpop.eup %4034 }
 0x84d   : > { %v2659_v22 = vsel %vm2069_vm7, %v4035_v18, 0.0 }
 0x84e   : > { %2660 = vadd.xlane.f32.xlu0 %v2659_v22 }
 0x850   : > { %v4037_v23 = vpop.eup %4036 }
 0x851   : > { %v2662_v24 = vsel %vm2069_vm7, %v4037_v23, 0.0 }
 0x852   : > { %2663 = vadd.xlane.f32.xlu1 %v2662_v24 }
 0x8d7   : > { %v2661_v25 = vpop.xlane.xlu0 %2660 }
 0x8d8   : > { %4038 = vrcp.f32 %v2661_v25 }
 0x8db   : > { %v2664_v26 = vpop.xlane.xlu1 %2663 }
 0x8dc   : > { %4040 = vrcp.f32 %v2664_v26 }
 0x8e5   : > { %v4039_v27 = vpop.eup %4038 }
 0x8e6   : > { %v2667_v29 = vmul.f32 %v4039_v27, %v4035_v18 }
 0x8e8   : > { %v2669_v30 = vpack.c.bf16 %v2667_v29, %v2667_v29 }
 0x8e9   : > { %v4041_v32 = vpop.eup %4040 }
 0x8ea   : > { %3886 = vmatmul.mubr.msk.bf16.vlgmr.msra.gmra.mxu0 %vm2096_vm9, %v2669_v30  ;;  %v2668_v33 = vmul.f32 %v4041_v32, %v4037_v23  ;;  %v3571_v23 = vld [vmem:[%s982_s30] ss:$0 sm:$0xff]  ;;  %v4018_v30 = vld [vmem:[%s4284_s11 + $0x18] sm:$0xff]   ;;  %v4019_v32 = vld [vmem:[%s4284_s11 + $0x10] sm:$0xff]  }
 0x8eb   : > { %3896 = vmatpush3.bf16.msra.mxu0 %v4644_v51  ;;  %3897 = vmatprep.mubr.msk.bf16.mxu0 %vm4066_vm3, %v4065_v37 }
 0x8ec   : > { %v2670_v34 = vpack.c.bf16 %v2668_v33, %v2668_v33  ;;  %3907 = vmatprep.subr.bf16.mxu0 %v4065_v37  ;;  %v4020_v33 = vld [vmem:[%s4284_s11 + $0x8] sm:$0xff]  }
 0x8ee   : > { %3892 = vmatmul.mubr.msk.bf16.vlgmr.msra.gmra.mxu1 %vm2096_vm9, %v2670_v34  ;;  %v4021_v34 = vld [vmem:[%s4284_s11] sm:$0xff]   ;;  %s4917_s11 = sld [smem:[#allocation23_spill]] (!%p3582_p5) }
 0x8ef   : > { %3902 = vmatpush3.bf16.msra.mxu1 %v4648_v58  ;;  %3903 = vmatprep.mubr.msk.bf16.mxu1 %vm4066_vm3, %v4065_v37 }
 0x8f0   : > { %3915 = vmatprep.subr.bf16.mxu1 %v4065_v37 }
 0x9aa   : > { %v2713_v40 = vpop.f32.mrf.mxu0 }
 0x9ab   : > { %v2765_v41 = vpack.c.bf16 %v2713_v40, %v2713_v40  ;;  %v3572_v40 = vld [vmem:[%s990_s26] ss:$0 sm:$0xff] }
 0x9ac   : > { %v3887_v42 = vpop.f32.mrf.mxu0 }
 0x9ad   : > { %3898 = vmatmul.mubr.msk.bf16.vlgmr.msra.gmra.mxu0 %vm1974_vm4, %v2765_v41 }
 0x9ae   : > { %v2716_v51 = vpop.f32.mrf.mxu0  ;;  %v2759_v43 = vpop.f32.mrf.mxu1  ;;  %3911 = vmatprep.mubr.msk.bf16.mxu0 %vm4066_vm3, %v4065_v37  ;;  %3908 = vmatpush3.bf16.msra.mxu0 %v4016_v36 }
 0x9af   : > { %v2766_v45 = vpack.c.bf16 %v2759_v43, %v2759_v43  ;;  %3909 = vmatprep.subr.bf16.mxu0 %v4065_v37 }
 0x9b0   : > { %v3888_v47 = vpop.f32.mrf.mxu0  ;;  %v3893_v59 = vpop.f32.mrf.mxu1 }
 0x9b1   : > { %3904 = vmatmul.mubr.msk.bf16.vlgmr.msra.gmra.mxu1 %vm1974_vm4, %v2766_v45 }
 0x9b2   : > { %v2762_v58 = vpop.f32.mrf.mxu1  ;;  %3923 = vmatprep.mubr.msk.bf16.mxu1 %vm4066_vm3, %v4065_v37  ;;  %3910 = vmatpush3.bf16.msra.mxu0 %v4017_v31 }
 0x9b3   : > { %3916 = vmatpush3.bf16.msra.mxu1 %v4018_v30 }
 0x9b4   : > { %v3894_v60 = vpop.f32.mrf.mxu1  ;;  %3917 = vmatprep.subr.bf16.mxu1 %v4065_v37 }
 0x9b7   : > { %3918 = vmatpush3.bf16.msra.mxu1 %v4019_v32 }
 0x9b8   : > { %3919 = vmatprep.subr.bf16.mxu1 %v4065_v37 }
 0x9bb   : > { %3920 = vmatpush3.bf16.msra.mxu1 %v4020_v33 }
 0x9bc   : > { %3921 = vmatprep.subr.bf16.mxu1 %v4065_v37 }
 0x9bf   : > { %3922 = vmatpush3.bf16.msra.mxu1 %v4021_v34 }
 0xa6d   : > { %v2804_v61 = vpop.f32.mrf.mxu0 }
 0xa6e   : > { %v2853_v0 = vsel %vm2293_vm10, %v2804_v61, 0.0 }
 0xa6f   : > { %v3899_v62 = vpop.f32.mrf.mxu0 }
 0xa71   : > { %v2807_v2 = vpop.f32.mrf.mxu0  ;;  %v2847_v63 = vpop.f32.mrf.mxu1 }
 0xa72   : > { %v2854_v1 = vsel %vm2293_vm10, %v2847_v63, 0.0 }
 0xa73   : > { %v2855_v4 = vadd.f32 %v2854_v1, %v2853_v0  ;;  %v3900_v3 = vpop.f32.mrf.mxu0  ;;  %v3905_v5 = vpop.f32.mrf.mxu1 }
 0xa75   : > { %v2857_v6 = vrot.slane %v2855_v4, 3  ;;  %v2850_v12 = vpop.f32.mrf.mxu1 }
 0xa77   : > { %v2860_v8 = vsel %vm2859_vm11, %v4706_v53, %v2857_v6  ;;  %v2862_v9 = vadd.f32 %v2857_v6, %v4629_v19  ;;  %v3906_v10 = vpop.f32.mrf.mxu1 }
 0xa78   : > { %v2861_v20 = vadd.f32 %v2860_v8, %v4477_v28 }
 0xa79   : > { %v4758_v11 = vadd.f32 %v3569_v7, %v2862_v9 }
 0xa7a   : > { %v4760_v13 = vadd.f32 %v3569_v7, %v2861_v20 }
 0xa7b   : > { %v2877_v14 = vsel %vm1543_vm8, %v4758_v11, 0.0 }
 0xa7c   : > { %2878 = vadd.xlane.f32.xlu1 %v2877_v14  ;;  %v2874_v44 = vsel %vm1539_vm2, %v4760_v13, 0.0  ;;  %v3581_v14 = vld [vmem:[%s998_s19] ss:$0 sm:$0xff]  ;;  %s4918_s19 = sld [smem:[#allocation24_spill]] (!%p3582_p5) }
 0xa7d   : > { %2875 = vadd.xlane.f32.xlu0 %v2874_v44 }
 0xb05   : > { %v2879_v53 = vpop.xlane.xlu1 %2878 }
 0xb06   : > { %v2881_v21 = vmul.f32 0.03125, %v2879_v53  ;;  %v2876_v19 = vpop.xlane.xlu0 %2875 }
 0xb07   : > { %v2880_v46 = vmul.f32 0.03125, %v2876_v19 }
 0xb08   : > { %v2883_v28 = vsub.f32 %v4758_v11, %v2881_v21 }
 0xb09   : > { %v2882_v48 = vsub.f32 %v4760_v13, %v2880_v46 }
 0xb0a   : > { %v2885_v15 = vmul.f32 %v2883_v28, %v2883_v28 }
 0xb0b   : > { %v2884_v16 = vmul.f32 %v2882_v48, %v2882_v48 }
 0xb0c   : > { %v2889_v17 = vsel %vm1543_vm8, %v2885_v15, 0.0 }
 0xb0d   : > { %2890 = vadd.xlane.f32.xlu1 %v2889_v17  ;;  %v2886_v35 = vsel %vm1539_vm2, %v2884_v16, 0.0 }
 0xb0e   : > { %2887 = vadd.xlane.f32.xlu0 %v2886_v35 }
 0xb96   : > { %v2891_v38 = vpop.xlane.xlu1 %2890 }
 0xb97   : > { %v2893_v39 = vmul.f32 0.03125, %v2891_v38  ;;  %v2888_v49 = vpop.xlane.xlu0 %2887 }
 0xb98   : > { %v2892_v50 = vmul.f32 0.03125, %v2888_v49 }
 0xb99   : > { %v2895_v52 = vadd.f32 1e-12, %v2893_v39 }
 0xb9a   : > { %v2894_v54 = vadd.f32 1e-12, %v2892_v50 }
 0xb9b   : > { %4042 = vrsqrt.f32 %v2895_v52 }
 0xb9c   : > { %4044 = vrsqrt.f32 %v2894_v54 }
 0xba8   : > { %v4043_v55 = vpop.eup %4042 }
 0xba9   : > { %v4045_v57 = vpop.eup %4044  ;;  %v2899_v18 = vmul.f32 %v4043_v55, %v2883_v28 }
 0xbaa   : > { %v2898_v22 = vmul.f32 %v4045_v57, %v2882_v48 }
 0xbab   : > { %v2907_v24 = vmul.f32 %v3570_v56, %v2899_v18 }
 0xbac   : > { %v2906_v25 = vmul.f32 %v3570_v56, %v2898_v22 }
 0xbad   : > { %v2915_v26 = vadd.f32 %v3571_v23, %v2907_v24 }
 0xbae   : > { %v2914_v27 = vadd.f32 %v3571_v23, %v2906_v25 }
 0xbb0   : > { %v2920_v29 = vpack.c.bf16 %v2915_v26, %v2914_v27 }
 0xbb2   : > { %3912 = vmatmul.mubr.msk.bf16.vlgmr.msra.gmra.mxu0 %vm1539_vm2, %v2920_v29 }
 0xc72   : > { %v2977_v41 = vpop.f32.mrf.mxu0 }
 0xc73   : > { %v2978_v42 = vadd.f32 %v3572_v40, %v2977_v41 }
 0xc74   : > { %v3913_v51 = vpop.f32.mrf.mxu0 }
 0xc75   : > { %v2986_v43 = vmul.f32 0.044715, %v2978_v42  ;;  %v2984_v6 = vmul.f32 0.5, %v2978_v42 }
 0xc76   : > { %v2980_v45 = vpop.f32.mrf.mxu0 }
 0xc77   : > { %v2988_v47 = vmul.f32 %v2986_v43, %v2978_v42  ;;  %v2981_v59 = vadd.f32 %v3572_v40, %v2980_v45 }
 0xc78   : > { %v3914_v58 = vpop.f32.mrf.mxu0 }
 0xc79   : > { %v2990_v60 = vmul.f32 %v2988_v47, %v2978_v42  ;;  %v2987_v61 = vmul.f32 0.044715, %v2981_v59  ;;  %v2985_v12 = vmul.f32 0.5, %v2981_v59 }
 0xc7b   : > { %v2992_v62 = vadd.f32 %v2990_v60, %v2978_v42  ;;  %v2989_v2 = vmul.f32 %v2987_v61, %v2981_v59 }
 0xc7d   : > { %v2994_v63 = vmul.f32 0.7978846, %v2992_v62  ;;  %v2991_v37 = vmul.f32 %v2989_v2, %v2981_v59 }
 0xc7f   : > { %4046 = vtanh.f32 %v2994_v63  ;;  %v2993_v0 = vadd.f32 %v2991_v37, %v2981_v59 }
 0xc81   : > { %v2995_v1 = vmul.f32 0.7978846, %v2993_v0 }
 0xc83   : > { %4048 = vtanh.f32 %v2995_v1 }
 0xc8c   : > { %v4047_v4 = vpop.eup %4046 }
 0xc8d   : > { %v2998_v3 = vadd.f32 1.0, %v4047_v4 }
 0xc8f   : > { %v3000_v8 = vmul.f32 %v2998_v3, %v2984_v6 }
 0xc90   : > { %v4049_v5 = vpop.eup %4048 }
 0xc91   : > { %v2999_v7 = vadd.f32 1.0, %v4049_v5 }
 0xc93   : > { %v3001_v9 = vmul.f32 %v2999_v7, %v2985_v12 }
 0xc95   : > { %v3010_v10 = vpack.c.bf16 %v3001_v9, %v3000_v8 }
 0xc97   : > { %3924 = vmatmul.mubr.msk.bf16.vlgmr.msra.gmra.mxu1 %vm3035_vm12, %v3010_v10 }
 0xd57   : > { %v3073_v20 = vpop.f32.mrf.mxu1 }
 0xd58   : > { %v3080_v44 = vadd.f32 %v3073_v20, %v4760_v13 }
 0xd59   : > { %v3925_v53 = vpop.f32.mrf.mxu1 }
 0xd5a   : > { %v3089_v21 = vadd.f32 %v3581_v14, %v3080_v44 }
 0xd5b   : > { %v3076_v19 = vpop.f32.mrf.mxu1 }
 0xd5c   : > { %3091 = vst.msk [vmem:[#allocation2] sm:$0xff] %vm1539_vm2, %v3089_v21  ;;  %v3081_v46 = vadd.f32 %v3076_v19, %v4758_v11  ;;  %3096 = sbr.rel (%p3582_p5) target bundleno = 4162 (0x1042), region = 128 }
 0xd5d   : > { %v3926_v28 = vpop.f32.mrf.mxu1 }
 0xd5e   : > { %v3090_v48 = vadd.f32 %v3581_v14, %v3081_v46 }
 0xd60   : > { %3092 = vst.msk [vmem:[#allocation2 + $0x8] sm:$0x3] %vm1543_vm8, %v3090_v48 }
 0xd61   : > { %v3098_v15 = vrot.slane %v3089_v21, 4  ;;  %vm3100_vm13 = vcmask 1040384   ;;  %v4050_v11 = vld [vmem:[%s4912_s7 + $0x8] sm:$0xff]   ;;  %v4068_v39 = vmov 0.0   ;;  %vm4069_vm14 = vmmov 0   ;;  %v4051_v49 = vld [vmem:[%s4912_s7] sm:$0xff]  }
 0xd62   : > { %3927 = vmatprep.subr.bf16.mxu0 %v4068_v39  ;;  %3931 = vmatprep.mubr.msk.bf16.mxu0 %vm4069_vm14, %v4068_v39  ;;  %v3583_v56 = vld [vmem:[%s4913_s27] ss:$0 sm:$0xff]  ;;  %vm3266_vm15 = vcmask 50176  }
 0xd63   : > { %v3101_v16 = vsel %vm3100_vm13, %v3089_v21, %v3098_v15  ;;  %3928 = vmatpush3.bf16.msra.mxu0 %v4050_v11  ;;  %3935 = vmatprep.subr.bf16.mxu1 %v4068_v39  ;;  %v3584_v18 = vld [vmem:[%s4914_s29] ss:$0 sm:$0xff] }
 0xd64   : > { %v3104_v17 = vsel %vm1543_vm8, %v3101_v16, 0.0  ;;  %3929 = vmatprep.subr.bf16.mxu0 %v4068_v39  ;;  %3937 = vmatprep.mubr.msk.bf16.mxu1 %vm4069_vm14, %v4068_v39  ;;  %v4052_v25 = vld [vmem:[%s4915_s21] sm:$0xff]  }
 0xd65   : > { %3105 = vadd.xlane.f32.xlu0 %v3104_v17  ;;  %3936 = vmatpush3.bf16.msra.mxu1 %v4052_v25  ;;  %v3585_v26 = vld [vmem:[%s4916_s9] ss:$0 sm:$0xff] }
 0xd66   : > { %v3589_v60 = vld [vmem:[%s4917_s11] ss:$0 sm:$0xff] }
 0xd67   : > { %3930 = vmatpush3.bf16.msra.mxu0 %v4051_v49 }
 0xdee   : > { %v3106_v13 = vpop.xlane.xlu0 %3105 }
 0xdef   : > { %v3107_v35 = vmul.f32 0.03125, %v3106_v13 }
 0xdf1   : > { %v3108_v36 = vsub.f32 %v3101_v16, %v3107_v35 }
 0xdf3   : > { %v3109_v31 = vmul.f32 %v3108_v36, %v3108_v36 }
 0xdf5   : > { %v3110_v38 = vsel %vm1543_vm8, %v3109_v31, 0.0 }
 0xdf6   : > { %3111 = vadd.xlane.f32.xlu0 %v3110_v38 }
 0xe7f   : > { %v3112_v50 = vpop.xlane.xlu0 %3111 }
 0xe80   : > { %v3113_v52 = vmul.f32 0.03125, %v3112_v50 }
 0xe82   : > { %v3114_v54 = vadd.f32 1e-12, %v3113_v52 }
 0xe84   : > { %4053 = vrsqrt.f32 %v3114_v54 }
 0xe91   : > { %v4054_v55 = vpop.eup %4053 }
 0xe92   : > { %v3116_v57 = vmul.f32 %v4054_v55, %v3108_v36 }
 0xe94   : > { %v3123_v22 = vmul.f32 %v3583_v56, %v3116_v57 }
 0xe96   : > { %v3130_v23 = vadd.f32 %v3584_v18, %v3123_v22 }
 0xe98   : > { %v3135_v24 = vpack.c.bf16 %v3130_v23, %v3130_v23 }
 0xe9a   : > { %3932 = vmatmul.mubr.msk.bf16.vlgmr.msra.gmra.mxu0 %vm1539_vm2, %v3135_v24 }
 0xf5a   : > { %v3192_v27 = vpop.f32.mrf.mxu0 }
 0xf5b   : > { %v3193_v29 = vadd.f32 %v3585_v26, %v3192_v27 }
 0xf5c   : > { %v3933_v30 = vpop.f32.mrf.mxu0 }
 0xf5d   : > { %v3199_v32 = vmul.f32 0.044715, %v3193_v29  ;;  %v3198_v45 = vmul.f32 0.5, %v3193_v29 }
 0xf5e   : > { %v3195_v33 = vpop.f32.mrf.mxu0 }
 0xf5f   : > { %v3200_v34 = vmul.f32 %v3199_v32, %v3193_v29 }
 0xf60   : > { %v3934_v40 = vpop.f32.mrf.mxu0 }
 0xf61   : > { %v3201_v41 = vmul.f32 %v3200_v34, %v3193_v29 }
 0xf63   : > { %v3202_v42 = vadd.f32 %v3201_v41, %v3193_v29 }
 0xf65   : > { %v3203_v51 = vmul.f32 0.7978846, %v3202_v42 }
 0xf67   : > { %4055 = vtanh.f32 %v3203_v51 }
 0xf74   : > { %v4056_v43 = vpop.eup %4055 }
 0xf75   : > { %v3205_v47 = vadd.f32 1.0, %v4056_v43 }
 0xf77   : > { %v3206_v59 = vmul.f32 %v3205_v47, %v3198_v45 }
 0xf79   : > { %v3209_v58 = vpack.c.bf16 %v3206_v59, %v3206_v59 }
 0xf7b   : > { %3938 = vmatmul.mubr.msk.bf16.vlgmr.msra.gmra.mxu1 %vm1974_vm4, %v3209_v58 }
0x103b   : > { %v3260_v61 = vpop.f32.mrf.mxu1 }
0x103c   : > { %v3261_v62 = vadd.f32 %v3589_v60, %v3260_v61 }
0x103d   : > { %v3939_v2 = vpop.f32.mrf.mxu1 }
0x103e   : > { %3267 = vst.msk [vmem:[%s4918_s19] sm:$0x3] %vm3266_vm15, %v3261_v62 }
0x103f   : > { %v3263_v63 = vpop.f32.mrf.mxu1 }
0x1041   : > { %v3940_v37 = vpop.f32.mrf.mxu1 }
0x1042 PF: > { %s4919_s2 = sld [smem:[#allocation3_spill]] }
0x1048   : > { %s35_s29 = sadd.s32 1, %s4919_s2  }
0x1049   : > { %p32_p6 = scmp.ge.s32.totalorder %s35_s29, 4  }
0x104b   :  { %34 = sbr.rel (!%p32_p6) target bundleno = 20 (0x14), region = 199 }

// kernel: _lambda_.3
= control target key start
LH: loop header
LB: loop body
LE: loop exit
PB: predicated region body
PF: predicated region fallthrough
CT: control target
= control target key end

     0   :  { %s5176_s29 = smov 0   ;;  %s6008_s0 = inlined_call_operand.vmem [shape: f32[10,768], index: 0, kind: input, shape index: {}]   ;;  %s6009_s1 = inlined_call_operand.vmem [shape: f32[10,48], index: 1, kind: input, shape index: {}]   ;;  %s6010_s2 = inlined_call_operand.vmem [shape: bf16[768,48], index: 2, kind: input, shape index: {}]   ;;  %s6011_s3 = inlined_call_operand.vmem [shape: f32[2,1,48], index: 3, kind: input, shape index: {}, may-alias: {3,13}]   ;;  %s6012_s4 = inlined_call_operand.vmem [shape: f32[2,1,48], index: 4, kind: input, shape index: {}, may-alias: {4,12,14,18}]   ;;  %s6013_s5 = inlined_call_operand.vmem [shape: bf16[2,3,48,16], index: 5, kind: input, shape index: {}]   ;;  %s6014_s6 = inlined_call_operand.vmem [shape: f32[2,3,1,16], index: 6, kind: input, shape index: {}, may-alias: {6,8,10}]   ;;  %s6015_s7 = inlined_call_operand.vmem [shape: bf16[2,3,48,16], index: 7, kind: input, shape index: {}]   ;;  %s6016_s8 = inlined_call_operand.vmem [shape: f32[2,3,1,16], index: 8, kind: input, shape index: {}, may-alias: {6,8,10}]   ;;  %s6017_s9 = inlined_call_operand.vmem [shape: bf16[2,3,48,16], index: 9, kind: input, shape index: {}]   ;;  %s6018_s10 = inlined_call_operand.vmem [shape: f32[2,3,1,16], index: 10, kind: input, shape index: {}, may-alias: {6,8,10}]   ;;  %s6019_s11 = inlined_call_operand.vmem [shape: bf16[2,3,16,48], index: 11, kind: input, shape index: {}]   ;;  %s6020_s12 = inlined_call_operand.vmem [shape: f32[2,1,48], index: 12, kind: input, shape index: {}, may-alias: {4,12,14,18}]   ;;  %s6021_s13 = inlined_call_operand.vmem [shape: f32[2,1,48], index: 13, kind: input, shape index: {}, may-alias: {3,13}]   ;;  %s6022_s14 = inlined_call_operand.vmem [shape: f32[2,1,48], index: 14, kind: input, shape index: {}, may-alias: {4,12,14,18}]   ;;  %s6023_s15 = inlined_call_operand.vmem [shape: bf16[2,48,96], index: 15, kind: input, shape index: {}]   ;;  %s6024_s16 = inlined_call_operand.vmem [shape: f32[2,1,96], index: 16, kind: input, shape index: {}]   ;;  %s6025_s17 = inlined_call_operand.vmem [shape: bf16[2,96,48], index: 17, kind: input, shape index: {}]   ;;  %s6026_s18 = inlined_call_operand.vmem [shape: f32[2,1,48], index: 18, kind: input, shape index: {}, may-alias: {4,12,14,18}]   ;;  %s6027_s19 = inlined_call_operand.vmem [shape: f32[1,48], index: 19, kind: input, shape index: {}]   ;;  %s6028_s20 = inlined_call_operand.vmem [shape: f32[1,48], index: 20, kind: input, shape index: {}]   ;;  %s6029_s21 = inlined_call_operand.vmem [shape: bf16[48,24], index: 21, kind: input, shape index: {}]   ;;  %s6030_s22 = inlined_call_operand.vmem [shape: f32[1,24], index: 22, kind: input, shape index: {}]   ;;  %s6031_s23 = inlined_call_operand.vmem [shape: bf16[24,7], index: 23, kind: input, shape index: {}]   ;;  %s6032_s24 = inlined_call_operand.vmem [shape: f32[1,7], index: 24, kind: input, shape index: {}]   ;;  %s6033_s25 = inlined_call_operand.vmem [shape: f32[2,7], index: 25, kind: output, shape index: {}]  }
   0x1   :  { %6041 = sst [smem:[#allocation5_spill]] %s6008_s0 }
   0x2   :  { %6042 = sst [smem:[#allocation6_spill]] %s6009_s1 }
   0x3   :  { %6043 = sst [smem:[#allocation7_spill]] %s6010_s2 }
   0x4   :  { %6044 = sst [smem:[#allocation8_spill]] %s6011_s3 }
   0x5   :  { %6045 = sst [smem:[#allocation9_spill]] %s6012_s4 }
   0x6   :  { %6046 = sst [smem:[#allocation10_spill]] %s6013_s5 }
   0x7   :  { %6047 = sst [smem:[#allocation11_spill]] %s6014_s6 }
   0x8   :  { %6048 = sst [smem:[#allocation12_spill]] %s6015_s7 }
   0x9   :  { %6049 = sst [smem:[#allocation13_spill]] %s6016_s8 }
   0xa   :  { %6050 = sst [smem:[#allocation14_spill]] %s6017_s9 }
   0xb   :  { %6051 = sst [smem:[#allocation15_spill]] %s6020_s12 }
   0xc   :  { %6052 = sst [smem:[#allocation16_spill]] %s6021_s13 }
   0xd   :  { %6053 = sst [smem:[#allocation17_spill]] %s6027_s19 }
   0xe   :  { %6054 = sst [smem:[#allocation18_spill]] %s6028_s20 }
   0xf   :  { %6055 = sst [smem:[#allocation19_spill]] %s6029_s21 }
  0x10   :  { %6056 = sst [smem:[#allocation20_spill]] %s6030_s22 }
  0x11   :  { %6057 = sst [smem:[#allocation21_spill]] %s6031_s23 }
  0x12   :  { %6058 = sst [smem:[#allocation22_spill]] %s6032_s24 }
  0x13   :  { %6059 = sst [smem:[#allocation23_spill]] %s6033_s25 }
  0x14 LB: > { %6060 = sst [smem:[#allocation3_spill]] %s5039_s29  ;;  %s5182_s2 = sadd.s32 4294967295, %s5039_s29   ;;  %s5039_s29 = sphi %s5176_s29, %s35_s29  }
  0x15   : > { %p4196_p0 = scmp.ge.s32.totalorder %s5039_s29, 1  ;;  %p815_p1 = scmp.lt.s32.totalorder %s5039_s29, 3 }
  0x17   : > { %p816_p2 = pnand %p4196_p0, %p815_p1 }
  0x19   : > { %819 = sbr.rel (%p816_p2) target bundleno = 4192 (0x1060), region = 120 }
  0x1e   : > { %p936_p3 = scmp.lt.s32.totalorder %s5182_s2, 1  ;;  %s6065_s23 = sld [smem:[#allocation10_spill]] }
  0x1f   : > { %s6066_s1 = sld [smem:[#allocation12_spill]]  ;;  %p4203_p4 = scmp.ne.s32.totalorder %s5182_s2, 0 }
  0x20   : > { %s5188_s6 = scalar_select %p936_p3, %s5182_s2, 1 }
  0x21   : > { %s6067_s9 = sld [smem:[#allocation11_spill]] }
  0x22   : > { %s4883_s28 = smul.u32 72, %s5188_s6  ;;  %s6069_s21 = sld [smem:[#allocation13_spill]] }
  0x23   : > { %s4884_s30 = smul.u32 3, %s5188_s6  ;;  %s6070_s22 = sld [smem:[#allocation14_spill]] }
  0x24   : > { %s5211_s20 = scalar_lea.vmem %s6065_s23, %s4883_s28  ;;  %s4885_s3 = smul.u32 24, %s5188_s6 }
  0x25   : > { %s5216_s8 = scalar_lea.vmem %s6066_s1, %s4883_s28  ;;  %s5236_s26 = scalar_lea.vmem %s6018_s10, %s4884_s30 }
  0x26   : > { %s982_s27 = scalar_lea.vmem %s6022_s14, %s5188_s6  ;;  %s5251_s25 = scalar_lea.vmem %s6019_s11, %s4885_s3 }
  0x27   : > { %s5221_s5 = scalar_lea.vmem %s6067_s9, %s4884_s30  ;;  %s5256_s13 = scalar_lea.vmem %s6023_s15, %s4885_s3 }
  0x28   : > { %6068 = sst [smem:[#allocation4_spill]] %s5221_s5  ;;  %s5226_s29 = scalar_lea.vmem %s6069_s21, %s4884_s30 }
  0x29   : > { %s5231_s23 = scalar_lea.vmem %s6070_s22, %s4883_s28  ;;  %s4886_s21 = smul.u32 48, %s5188_s6 }
  0x2a   : > { %s998_s12 = scalar_lea.vmem %s6026_s18, %s5188_s6  ;;  %1003 = sbr.rel (%p4203_p4) target bundleno = 318 (0x13e), region = 124 }
  0x2b   : > { %s5261_s24 = scalar_lea.vmem %s6025_s17, %s4886_s21  ;;  %s6071_s0 = sld [smem:[#allocation7_spill]] (!%p4203_p4) }
  0x2c   : > { %s6072_s1 = sld [smem:[#allocation5_spill]] (!%p4203_p4) }
  0x2d   : > { %s6073_s30 = sld [smem:[#allocation6_spill]] (!%p4203_p4) }
  0x2f   : > { %vm1531_vm0 = vcmask 392192   ;;  %vm1533_vm1 = vcmask 386048  }
  0x31   : > { %v4900_v0 = vld [vmem:[%s6071_s0 + $0x78] sm:$0xff]   ;;  %v4904_v4 = vld [vmem:[%s6071_s0 + $0x70] sm:$0xff]   ;;  %v4908_v8 = vld [vmem:[%s6071_s0 + $0x68] sm:$0xff]  }
  0x32   : > { %v4901_v1 = vld [vmem:[%s6071_s0 + $0x38] sm:$0xff]   ;;  %4359 = vmatprep.subr.bf16.mxu0 %v4900_v0  ;;  %v4905_v5 = vld [vmem:[%s6071_s0 + $0x30] sm:$0xff]   ;;  %v4909_v9 = vld [vmem:[%s6071_s0 + $0x28] sm:$0xff]  }
  0x33   : > { %v4902_v2 = vld [vmem:[%s6071_s0 + $0xf8] sm:$0xff]   ;;  %4360 = vmatpush3.bf16.msra.mxu0 %v4901_v1  ;;  %v4906_v6 = vld [vmem:[%s6071_s0 + $0xf0] sm:$0xff]   ;;  %v4910_v10 = vld [vmem:[%s6071_s0 + $0xe8] sm:$0xff]  }
  0x34   : > { %v4903_v3 = vld [vmem:[%s6071_s0 + $0xb8] sm:$0xff]   ;;  %4381 = vmatprep.subr.bf16.mxu1 %v4902_v2  ;;  %4361 = vmatprep.subr.bf16.mxu0 %v4904_v4  ;;  %v4907_v7 = vld [vmem:[%s6071_s0 + $0xb0] sm:$0xff]   ;;  %v4911_v11 = vld [vmem:[%s6071_s0 + $0xa8] sm:$0xff]  }
  0x35   : > { %4382 = vmatpush3.bf16.msra.mxu1 %v4903_v3  ;;  %v4912_v12 = vld [vmem:[%s6071_s0 + $0x60] sm:$0xff]   ;;  %v4916_v16 = vld [vmem:[%s6071_s0 + $0x58] sm:$0xff]   ;;  %v4920_v20 = vld [vmem:[%s6071_s0 + $0x50] sm:$0xff]  }
  0x36   : > { %4383 = vmatprep.subr.bf16.mxu1 %v4906_v6  ;;  %v4913_v13 = vld [vmem:[%s6071_s0 + $0x20] sm:$0xff]   ;;  %v4917_v17 = vld [vmem:[%s6071_s0 + $0x18] sm:$0xff]   ;;  %v4921_v21 = vld [vmem:[%s6071_s0 + $0x10] sm:$0xff]  }
  0x37   : > { %4362 = vmatpush3.bf16.msra.mxu0 %v4905_v5  ;;  %v4914_v14 = vld [vmem:[%s6071_s0 + $0xe0] sm:$0xff]   ;;  %v4918_v18 = vld [vmem:[%s6071_s0 + $0xd8] sm:$0xff]   ;;  %v4922_v22 = vld [vmem:[%s6071_s0 + $0xd0] sm:$0xff]  }
  0x38   : > { %4363 = vmatprep.subr.bf16.mxu0 %v4908_v8  ;;  %v4915_v15 = vld [vmem:[%s6071_s0 + $0xa0] sm:$0xff]   ;;  %v4919_v19 = vld [vmem:[%s6071_s0 + $0x98] sm:$0xff]   ;;  %v4923_v23 = vld [vmem:[%s6071_s0 + $0x90] sm:$0xff]  }
  0x39   : > { %4384 = vmatpush3.bf16.msra.mxu1 %v4907_v7  ;;  %v4924_v24 = vld [vmem:[%s6071_s0 + $0x48] sm:$0xff]   ;;  %v4928_v28 = vld [vmem:[%s6071_s0 + $0x40] sm:$0xff]   ;;  %v1011_v32 = vld [vmem:[%s6072_s1 + $0x38] sm:$0x3] }
  0x3a   : > { %4385 = vmatprep.subr.bf16.mxu1 %v4910_v10  ;;  %v4925_v25 = vld [vmem:[%s6071_s0 + $0x8] sm:$0xff]   ;;  %v4929_v29 = vld [vmem:[%s6071_s0] sm:$0xff]   ;;  %v1010_v36 = vld [vmem:[%s6072_s1 + $0x30] sm:$0x3] }
  0x3b   : > { %4364 = vmatpush3.bf16.msra.mxu0 %v4909_v9  ;;  %v4926_v26 = vld [vmem:[%s6071_s0 + $0xc8] sm:$0xff]   ;;  %v4930_v30 = vld [vmem:[%s6071_s0 + $0xc0] sm:$0xff]   ;;  %v4932_v38 = vld [vmem:[%s6071_s0 + $0x178] sm:$0xff]  }
  0x3c   : > { %4365 = vmatprep.subr.bf16.mxu0 %v4912_v12  ;;  %v4927_v27 = vld [vmem:[%s6071_s0 + $0x88] sm:$0xff]   ;;  %v4931_v34 = vld [vmem:[%s6071_s0 + $0x80] sm:$0xff]   ;;  %v1007_v39 = vld [vmem:[%s6072_s1 + $0x18] sm:$0xff] }
  0x3d   : > { %4386 = vmatpush3.bf16.msra.mxu1 %v4911_v11  ;;  %v1005_v31 = vld [vmem:[%s6072_s1 + $0x8] sm:$0xff]  ;;  %v1004_v35 = vld [vmem:[%s6072_s1] sm:$0xff]  ;;  %v4933_v42 = vld [vmem:[%s6071_s0 + $0x138] sm:$0xff]  }
  0x3e   : > { %4387 = vmatprep.subr.bf16.mxu1 %v4914_v14  ;;  %v1113_v33 = vpack.c.bf16 %v1011_v32, %v1005_v31  ;;  %v1112_v37 = vpack.c.bf16 %v1010_v36, %v1004_v35  ;;  %v1013_v40 = vld [vmem:[%s6072_s1 + $0x48] sm:$0x3]  ;;  %v1006_v43 = vld [vmem:[%s6072_s1 + $0x10] sm:$0xff]  ;;  %v1012_v44 = vld [vmem:[%s6072_s1 + $0x40] sm:$0x3] }
  0x3f   : > { %4366 = vmatpush3.bf16.msra.mxu0 %v4913_v13  ;;  %v1115_v41 = vpack.c.bf16 %v1013_v40, %v1007_v39  ;;  %v1114_v45 = vpack.c.bf16 %v1012_v44, %v1006_v43  ;;  %v4934_v46 = vld [vmem:[%s6071_s0 + $0x170] sm:$0xff]   ;;  %v4936_v48 = vld [vmem:[%s6071_s0 + $0x168] sm:$0xff]   ;;  %v4938_v50 = vld [vmem:[%s6071_s0 + $0x160] sm:$0xff]  }
  0x40   : > { %4367 = vmatprep.subr.bf16.mxu0 %v4916_v16  ;;  %1440 = vmatprep.mubr.bf16.mxu0 %v1113_v33  ;;  %v4935_v47 = vld [vmem:[%s6071_s0 + $0x130] sm:$0xff]   ;;  %v4937_v49 = vld [vmem:[%s6071_s0 + $0x128] sm:$0xff]   ;;  %v4939_v51 = vld [vmem:[%s6071_s0 + $0x120] sm:$0xff]  }
  0x41   : > { %4388 = vmatpush3.bf16.msra.mxu1 %v4915_v15  ;;  %1481 = vmatprep.mubr.bf16.mxu1 %v1115_v41  ;;  %v4940_v52 = vld [vmem:[%s6071_s0 + $0x158] sm:$0xff]   ;;  %v4942_v54 = vld [vmem:[%s6071_s0 + $0x150] sm:$0xff]   ;;  %v1009_v55 = vld [vmem:[%s6072_s1 + $0x28] sm:$0xff] }
  0x42   : > { %4389 = vmatprep.subr.bf16.mxu1 %v4918_v18  ;;  %v4941_v53 = vld [vmem:[%s6071_s0 + $0x118] sm:$0xff]   ;;  %v4943_v58 = vld [vmem:[%s6071_s0 + $0x110] sm:$0xff]   ;;  %v4944_v59 = vld [vmem:[%s6071_s0 + $0x148] sm:$0xff]  }
  0x43   : > { %4368 = vmatpush3.bf16.msra.mxu0 %v4917_v17  ;;  %v1015_v56 = vld [vmem:[%s6072_s1 + $0x58] sm:$0x3]  ;;  %v4945_v60 = vld [vmem:[%s6071_s0 + $0x108] sm:$0xff]   ;;  %v4946_v61 = vld [vmem:[%s6071_s0 + $0x140] sm:$0xff]  }
  0x44   : > { %4369 = vmatprep.subr.bf16.mxu0 %v4920_v20  ;;  %v1117_v57 = vpack.c.bf16 %v1015_v56, %v1009_v55  ;;  %v4947_v62 = vld [vmem:[%s6071_s0 + $0x100] sm:$0xff]   ;;  %v1014_v0 = vld [vmem:[%s6072_s1 + $0x50] sm:$0x3]  ;;  %v1119_v14 = vld [vmem:[%s6073_s30 + $0x8] sm:$0x3] }
  0x45   : > { %4390 = vmatpush3.bf16.msra.mxu1 %v4919_v19  ;;  %v1008_v63 = vld [vmem:[%s6072_s1 + $0x20] sm:$0xff] }
  0x46   : > { %4391 = vmatprep.subr.bf16.mxu1 %v4922_v22  ;;  %v1116_v1 = vpack.c.bf16 %v1014_v0, %v1008_v63  ;;  %v1118_v8 = vld [vmem:[%s6073_s30] sm:$0xff] }
  0x47   : > { %4370 = vmatpush3.bf16.msra.mxu0 %v4921_v21 }
  0x48   : > { %4371 = vmatprep.subr.bf16.mxu0 %v4924_v24 }
  0x49   : > { %4392 = vmatpush3.bf16.msra.mxu1 %v4923_v23 }
  0x4a   : > { %4393 = vmatprep.subr.bf16.mxu1 %v4926_v26 }
  0x4b   : > { %4372 = vmatpush3.bf16.msra.mxu0 %v4925_v25 }
  0x4c   : > { %4373 = vmatprep.subr.bf16.mxu0 %v4928_v28 }
  0x4d   : > { %4394 = vmatpush3.bf16.msra.mxu1 %v4927_v27 }
  0x4e   : > { %4395 = vmatprep.subr.bf16.mxu1 %v4930_v30 }
  0x4f   : > { %4374 = vmatpush3.bf16.msra.mxu0 %v4929_v29 }
  0x50   : > { %4403 = vmatprep.subr.bf16.mxu0 %v4932_v38 }
  0x51   : > { %4396 = vmatpush3.bf16.msra.mxu1 %v4931_v34 }
  0x52   : > { %1441 = vmatmul.mubr.bf16.vlgmr.msra.gmra.mxu0 %v1112_v37 }
  0x53   : > { %4404 = vmatpush3.bf16.msra.mxu0 %v4933_v42  ;;  %1522 = vmatprep.mubr.bf16.mxu0 %v1117_v57 }
  0x54   : > { %1482 = vmatmul.mubr.bf16.vlgmr.msra.gmra.mxu1 %v1114_v45  ;;  %4405 = vmatprep.subr.bf16.mxu0 %v4934_v46 }
  0x57   : > { %4406 = vmatpush3.bf16.msra.mxu0 %v4935_v47 }
  0x58   : > { %4407 = vmatprep.subr.bf16.mxu0 %v4936_v48 }
  0x5b   : > { %4408 = vmatpush3.bf16.msra.mxu0 %v4937_v49 }
  0x5c   : > { %4409 = vmatprep.subr.bf16.mxu0 %v4938_v50 }
  0x5f   : > { %4410 = vmatpush3.bf16.msra.mxu0 %v4939_v51 }
  0x60   : > { %4411 = vmatprep.subr.bf16.mxu0 %v4940_v52 }
  0x63   : > { %4412 = vmatpush3.bf16.msra.mxu0 %v4941_v53 }
  0x64   : > { %4413 = vmatprep.subr.bf16.mxu0 %v4942_v54 }
  0x67   : > { %4414 = vmatpush3.bf16.msra.mxu0 %v4943_v58 }
  0x68   : > { %4415 = vmatprep.subr.bf16.mxu0 %v4944_v59 }
  0x6b   : > { %4416 = vmatpush3.bf16.msra.mxu0 %v4945_v60 }
  0x6c   : > { %4417 = vmatprep.subr.bf16.mxu0 %v4946_v61 }
  0x6f   : > { %4418 = vmatpush3.bf16.msra.mxu0 %v4947_v62 }
  0x72   : > { %1523 = vmatmul.mubr.bf16.vlgmr.msra.gmra.mxu0 %v1116_v1 }
 0x112   : > { %v4375_v2 = vpop.f32.mrf.mxu0 }
 0x114   : > { %v4376_v3 = vpop.f32.mrf.mxu0  ;;  %v4397_v4 = vpop.f32.mrf.mxu1 }
 0x115   : > { %v4377_v7 = vadd.f32 %v4376_v3, %v4375_v2 }
 0x116   : > { %v4378_v5 = vpop.f32.mrf.mxu0  ;;  %v4398_v6 = vpop.f32.mrf.mxu1 }
 0x117   : > { %v1443_v11 = vadd.f32 %v4377_v7, %v1118_v8  ;;  %v4399_v12 = vadd.f32 %v4398_v6, %v4397_v4 }
 0x118   : > { %v4379_v9 = vpop.f32.mrf.mxu0  ;;  %v4400_v10 = vpop.f32.mrf.mxu1 }
 0x119   : > { %v4380_v13 = vadd.f32 %v4379_v9, %v4378_v5  ;;  %v1484_v18 = vadd.f32 %v4399_v12, %v1443_v11 }
 0x11a   : > { %v4401_v15 = vpop.f32.mrf.mxu1 }
 0x11b   : > { %v1446_v19 = vadd.f32 %v4380_v13, %v1119_v14  ;;  %v4402_v20 = vadd.f32 %v4401_v15, %v4400_v10 }
 0x11d   : > { %v1487_v25 = vadd.f32 %v4402_v20, %v1446_v19 }
 0x132   : > { %v4419_v16 = vpop.f32.mrf.mxu0 }
 0x134   : > { %v4420_v17 = vpop.f32.mrf.mxu0 }
 0x135   : > { %v4421_v21 = vadd.f32 %v4420_v17, %v4419_v16 }
 0x136   : > { %v4422_v22 = vpop.f32.mrf.mxu0 }
 0x137   : > { %v1525_v23 = vadd.f32 %v4421_v21, %v1484_v18 }
 0x138   : > { %v4423_v24 = vpop.f32.mrf.mxu0 }
 0x139   : > { %1532 = vst.msk [vmem:[#allocation2] sm:$0xff] %vm1531_vm0, %v1525_v23  ;;  %v4424_v26 = vadd.f32 %v4423_v24, %v4422_v22 }
 0x13b   : > { %v1528_v27 = vadd.f32 %v4424_v26, %v1487_v25 }
 0x13d   : > { %1534 = vst.msk [vmem:[#allocation2 + $0x8] sm:$0x3] %vm1533_vm1, %v1528_v27 }
 0x13e PF: > { %vm1539_vm2 = vcmask 392192   ;;  %v5457_v35 = vld [vmem:[%s5211_s20 + $0x10] sm:$0xff]   ;;  %v5460_v36 = vld [vmem:[%s5211_s20 + $0x28] sm:$0xff]   ;;  %v5041_v37 = vmov 0.0   ;;  %v5472_v39 = vld [vmem:[%s5211_s20 + $0x20] sm:$0xff]   ;;  %vm5042_vm3 = vmmov 0   ;;  %s6083_s3 = scalar_lea.vmem %s6024_s16, %s5188_s6 }
 0x13f   : > { %4551 = vmatprep.subr.bf16.mxu0 %v5041_v37  ;;  %4561 = vmatprep.subr.bf16.mxu1 %v5041_v37  ;;  %v5469_v38 = vld [vmem:[%s5211_s20 + $0x8] sm:$0xff]   ;;  %v5479_v40 = vld [vmem:[%s5211_s20] sm:$0xff]   ;;  %v5482_v41 = vld [vmem:[%s5211_s20 + $0x18] sm:$0xff]   ;;  %s6074_s9 = sld [smem:[#allocation8_spill]]  ;;  %vm2239_vm4 = vcmask 130048   ;;  %vm2425_vm5 = vcmask 1041408  }
 0x140   : > { %v1535_v28 = vld [vmem:[#allocation2] sm:$0xff]  ;;  %4552 = vmatpush3.bf16.msra.mxu0 %v5457_v35  ;;  %4562 = vmatpush3.bf16.msra.mxu1 %v5460_v36  ;;  %s6076_s21 = sld [smem:[#allocation9_spill]]  ;;  %v5514_v52 = vld [vmem:[%s5216_s8 + $0x10] sm:$0xff]   ;;  %v5527_v54 = vld [vmem:[%s5211_s20 + $0x38] sm:$0xff]   ;;  %vm2426_vm6 = vcmask 1042432   ;;  %vm2381_vm7 = vcmask 36864  }
 0x141   : > { %v1540_v29 = vsel %vm1539_vm2, %v1535_v28, 0.0  ;;  %4553 = vmatprep.subr.bf16.mxu0 %v5041_v37  ;;  %4563 = vmatprep.subr.bf16.mxu1 %v5041_v37  ;;  %v5511_v51 = vld [vmem:[%s5211_s20 + $0x40] sm:$0xff]   ;;  %v5530_v55 = vld [vmem:[%s5216_s8 + $0x8] sm:$0xff]   ;;  %v5541_v56 = vld [vmem:[%s5211_s20 + $0x30] sm:$0xff]   ;;  %s6078_s20 = sld [smem:[#allocation4_spill]]  ;;  %vm1543_vm8 = vcmask 386048  }
 0x142   : > { %1541 = vadd.xlane.f32.xlu0 %v1540_v29  ;;  %4557 = vmatprep.mubr.msk.bf16.mxu0 %vm5042_vm3, %v5041_v37  ;;  %v5544_v57 = vld [vmem:[%s5216_s8] sm:$0xff]   ;;  %v5551_v58 = vld [vmem:[%s5216_s8 + $0x28] sm:$0xff]   ;;  %v5568_v61 = vld [vmem:[%s5216_s8 + $0x38] sm:$0xff]   ;;  %vm2421_vm9 = vcmask 39936   ;;  %vm2714_vm10 = vcmask 389120   ;;  %vm3556_vm11 = vcmask 1044480  }
 0x143   : > { %4567 = vmatprep.mubr.msk.bf16.mxu1 %vm5042_vm3, %v5041_v37  ;;  %v5554_v59 = vld [vmem:[%s5216_s8 + $0x40] sm:$0xff]   ;;  %v5579_v62 = vld [vmem:[%s5216_s8 + $0x18] sm:$0xff]   ;;  %v5582_v63 = vld [vmem:[%s5216_s8 + $0x30] sm:$0xff]   ;;  %s6081_s5 = sld [smem:[#allocation16_spill]]  ;;  %vm3756_vm12 = vcmask 785408   ;;  %p4345_p5 = scmp.ne.s32.totalorder %s5182_s2, 1 }
 0x144   : > { %4554 = vmatpush3.bf16.msra.mxu0 %v5469_v38  ;;  %4564 = vmatpush3.bf16.msra.mxu1 %v5472_v39  ;;  %v5565_v60 = vld [vmem:[%s5216_s8 + $0x20] sm:$0xff]   ;;  %v5589_v0 = vld [vmem:[%s5231_s23 + $0x10] sm:$0xff]   ;;  %v5592_v1 = vld [vmem:[%s5231_s23 + $0x28] sm:$0xff]   ;;  %s6088_s7 = sld [smem:[#allocation20_spill]] (!%p4345_p5) }
 0x145   : > { %4555 = vmatprep.subr.bf16.mxu0 %v5041_v37  ;;  %4565 = vmatprep.subr.bf16.mxu1 %v5041_v37  ;;  %s6075_s28 = scalar_lea.vmem %s6074_s9, %s5188_s6  ;;  %v5603_v2 = vld [vmem:[%s5231_s23 + $0x8] sm:$0xff]   ;;  %v5606_v3 = vld [vmem:[%s5231_s23 + $0x20] sm:$0xff]   ;;  %v5620_v5 = vld [vmem:[%s5231_s23 + $0x18] sm:$0xff]   ;;  %s6087_s9 = sld [smem:[#allocation21_spill]] (!%p4345_p5) }
 0x146   : > { %v5497_v46 = vld [vmem:[%s6075_s28] ss:$0 sm:$0xff]  ;;  %s6077_s22 = scalar_lea.vmem %s6076_s21, %s5188_s6  ;;  %v5637_v7 = vld [vmem:[%s5231_s23 + $0x38] sm:$0xff]   ;;  %v5646_v8 = vld [vmem:[%s5231_s23 + $0x30] sm:$0xff]   ;;  %s6084_s21 = sld [smem:[#allocation19_spill]] (!%p4345_p5) }
 0x147   : > { %v5504_v48 = vld [vmem:[%s6077_s22] ss:$0 sm:$0xff]  ;;  %s6089_s2 = sld [smem:[#allocation22_spill]] (!%p4345_p5) }
 0x148   : > { %4556 = vmatpush3.bf16.msra.mxu0 %v5479_v40  ;;  %4566 = vmatpush3.bf16.msra.mxu1 %v5482_v41  ;;  %v5617_v4 = vld [vmem:[%s5231_s23] sm:$0xff]   ;;  %s6090_s8 = sld [smem:[#allocation23_spill]] (!%p4345_p5) }
 0x149   : > { %4571 = vmatprep.subr.bf16.mxu0 %v5041_v37  ;;  %4581 = vmatprep.subr.bf16.mxu1 %v5041_v37  ;;  %v5627_v6 = vld [vmem:[%s5231_s23 + $0x40] sm:$0xff]   ;;  %s6079_s23 = sld [smem:[#allocation15_spill]]  ;;  %s6082_s19 = scalar_lea.vmem %s6081_s5, %s5188_s6 }
 0x14a   : > { %v5656_v17 = vld [vmem:[%s5226_s29] ss:$0 sm:$0xff]  ;;  %s6086_s5 = sld [smem:[#allocation18_spill]] (!%p4345_p5) }
 0x14b   : > { %v5660_v24 = vld [vmem:[%s6078_s20] ss:$0 sm:$0xff] }
 0x1cb   : > { %v1542_v30 = vpop.xlane.xlu0 %1541 }
 0x1cc   : > { %v1548_v31 = vmul.f32 0.020833334, %v1542_v30 }
 0x1ce   : > { %v1550_v32 = vsub.f32 %v1535_v28, %v1548_v31  ;;  %v5666_v31 = vld [vmem:[%s5226_s29 + $0x1] ss:$0 sm:$0xff] }
 0x1d0   : > { %v1552_v33 = vmul.f32 %v1550_v32, %v1550_v32 }
 0x1d2   : > { %v1554_v34 = vsel %vm1539_vm2, %v1552_v33, 0.0 }
 0x1d3   : > { %1555 = vadd.xlane.f32.xlu0 %v1554_v34 }
 0x25c   : > { %v1556_v42 = vpop.xlane.xlu0 %1555 }
 0x25d   : > { %v1560_v43 = vmul.f32 0.020833334, %v1556_v42 }
 0x25f   : > { %v1562_v44 = vadd.f32 1e-12, %v1560_v43 }
 0x261   : > { %4987 = vrsqrt.f32 %v1562_v44 }
 0x26e   : > { %v4988_v45 = vpop.eup %4987 }
 0x26f   : > { %v1566_v47 = vmul.f32 %v4988_v45, %v1550_v32  ;;  %v5669_v32 = vld [vmem:[%s5226_s29 + $0x2] ss:$0 sm:$0xff] }
 0x271   : > { %v1574_v49 = vmul.f32 %v5497_v46, %v1566_v47 }
 0x273   : > { %v5508_v50 = vadd.f32 %v5504_v48, %v1574_v49 }
 0x275   : > { %v5518_v53 = vpack.c.bf16 %v5508_v50, %v5508_v50 }
 0x277   : > { %4558 = vmatmul.mubr.msk.bf16.vlgmr.msra.gmra.mxu0 %vm1539_vm2, %v5518_v53  ;;  %4568 = vmatmul.mubr.msk.bf16.vlgmr.msra.gmra.mxu1 %vm1539_vm2, %v5518_v53 }
 0x278   : > { %4572 = vmatpush3.bf16.msra.mxu0 %v5511_v51  ;;  %4582 = vmatpush3.bf16.msra.mxu1 %v5514_v52 }
 0x279   : > { %4573 = vmatprep.subr.bf16.mxu0 %v5041_v37  ;;  %4583 = vmatprep.subr.bf16.mxu1 %v5041_v37 }
 0x27a   : > { %4577 = vmatprep.mubr.msk.bf16.mxu0 %vm5042_vm3, %v5041_v37  ;;  %4587 = vmatprep.mubr.msk.bf16.mxu1 %vm5042_vm3, %v5041_v37 }
 0x27c   : > { %4574 = vmatpush3.bf16.msra.mxu0 %v5527_v54  ;;  %4584 = vmatpush3.bf16.msra.mxu1 %v5530_v55 }
 0x27d   : > { %4575 = vmatprep.subr.bf16.mxu0 %v5041_v37  ;;  %4585 = vmatprep.subr.bf16.mxu1 %v5041_v37 }
 0x280   : > { %4576 = vmatpush3.bf16.msra.mxu0 %v5541_v56  ;;  %4586 = vmatpush3.bf16.msra.mxu1 %v5544_v57 }
 0x281   : > { %4591 = vmatprep.subr.bf16.mxu0 %v5041_v37  ;;  %4601 = vmatprep.subr.bf16.mxu1 %v5041_v37 }
 0x283   : > { %4578 = vmatmul.mubr.msk.bf16.vlgmr.msra.gmra.mxu0 %vm1539_vm2, %v5518_v53  ;;  %4588 = vmatmul.mubr.msk.bf16.vlgmr.msra.gmra.mxu1 %vm1539_vm2, %v5518_v53 }
 0x284   : > { %4592 = vmatpush3.bf16.msra.mxu0 %v5551_v58  ;;  %4602 = vmatpush3.bf16.msra.mxu1 %v5554_v59 }
 0x285   : > { %4593 = vmatprep.subr.bf16.mxu0 %v5041_v37  ;;  %4603 = vmatprep.subr.bf16.mxu1 %v5041_v37 }
 0x286   : > { %4597 = vmatprep.mubr.msk.bf16.mxu0 %vm5042_vm3, %v5041_v37  ;;  %4607 = vmatprep.mubr.msk.bf16.mxu1 %vm5042_vm3, %v5041_v37 }
 0x288   : > { %4594 = vmatpush3.bf16.msra.mxu0 %v5565_v60  ;;  %4604 = vmatpush3.bf16.msra.mxu1 %v5568_v61 }
 0x289   : > { %4595 = vmatprep.subr.bf16.mxu0 %v5041_v37  ;;  %4605 = vmatprep.subr.bf16.mxu1 %v5041_v37 }
 0x28c   : > { %4596 = vmatpush3.bf16.msra.mxu0 %v5579_v62  ;;  %4606 = vmatpush3.bf16.msra.mxu1 %v5582_v63 }
 0x28d   : > { %4611 = vmatprep.subr.bf16.mxu0 %v5041_v37  ;;  %4621 = vmatprep.subr.bf16.mxu1 %v5041_v37 }
 0x28f   : > { %4598 = vmatmul.mubr.msk.bf16.vlgmr.msra.gmra.mxu0 %vm1539_vm2, %v5518_v53  ;;  %4608 = vmatmul.mubr.msk.bf16.vlgmr.msra.gmra.mxu1 %vm1539_vm2, %v5518_v53 }
 0x290   : > { %4612 = vmatpush3.bf16.msra.mxu0 %v5589_v0  ;;  %4622 = vmatpush3.bf16.msra.mxu1 %v5592_v1 }
 0x291   : > { %4613 = vmatprep.subr.bf16.mxu0 %v5041_v37  ;;  %4623 = vmatprep.subr.bf16.mxu1 %v5041_v37 }
 0x292   : > { %4617 = vmatprep.mubr.msk.bf16.mxu0 %vm5042_vm3, %v5041_v37  ;;  %4627 = vmatprep.mubr.msk.bf16.mxu1 %vm5042_vm3, %v5041_v37 }
 0x294   : > { %4614 = vmatpush3.bf16.msra.mxu0 %v5603_v2  ;;  %4624 = vmatpush3.bf16.msra.mxu1 %v5606_v3 }
 0x295   : > { %4615 = vmatprep.subr.bf16.mxu0 %v5041_v37  ;;  %4625 = vmatprep.subr.bf16.mxu1 %v5041_v37 }
 0x298   : > { %4616 = vmatpush3.bf16.msra.mxu0 %v5617_v4  ;;  %4626 = vmatpush3.bf16.msra.mxu1 %v5620_v5 }
 0x299   : > { %4631 = vmatprep.subr.bf16.mxu0 %v5041_v37  ;;  %4647 = vmatprep.subr.bf16.mxu1 %v5041_v37 }
 0x29b   : > { %4618 = vmatmul.mubr.msk.bf16.vlgmr.msra.gmra.mxu0 %vm1539_vm2, %v5518_v53  ;;  %4628 = vmatmul.mubr.msk.bf16.vlgmr.msra.gmra.mxu1 %vm1539_vm2, %v5518_v53 }
 0x29c   : > { %4632 = vmatpush3.bf16.msra.mxu0 %v5627_v6  ;;  %4637 = vmatprep.mubr.msk.bf16.mxu0 %vm5042_vm3, %v5041_v37 }
 0x29d   : > { %4633 = vmatprep.subr.bf16.mxu0 %v5041_v37  ;;  %4649 = vmatprep.mubr.msk.bf16.mxu1 %vm5042_vm3, %v5041_v37 }
 0x2a0   : > { %4634 = vmatpush3.bf16.msra.mxu0 %v5637_v7 }
 0x2a1   : > { %4635 = vmatprep.subr.bf16.mxu0 %v5041_v37 }
 0x2a4   : > { %4636 = vmatpush3.bf16.msra.mxu0 %v5646_v8 }
 0x2a5   : > { %4641 = vmatprep.subr.bf16.mxu0 %v5041_v37 }
 0x2a7   : > { %4638 = vmatmul.mubr.msk.bf16.vlgmr.msra.gmra.mxu0 %vm1539_vm2, %v5518_v53 }
 0x2a8   : > { %4643 = vmatprep.mubr.msk.bf16.mxu0 %vm5042_vm3, %v5041_v37 }
 0x337   : > { %v1727_v9 = vpop.f32.mrf.mxu0  ;;  %v1785_v10 = vpop.f32.mrf.mxu1 }
 0x338   : > { %v1728_v30 = vadd.f32 %v5660_v24, %v1727_v9  ;;  %v5677_v9 = vld [vmem:[%s6078_s20 + $0x1] ss:$0 sm:$0xff] }
 0x339   : > { %v4559_v11 = vpop.f32.mrf.mxu0  ;;  %v4569_v12 = vpop.f32.mrf.mxu1 }
 0x33a   : > { %v2233_v33 = vpack.c.bf16 %v1728_v30, %v1728_v30  ;;  %v5680_v11 = vld [vmem:[%s6078_s20 + $0x2] ss:$0 sm:$0xff] }
 0x33b   : > { %v1730_v13 = vpop.f32.mrf.mxu0  ;;  %v1788_v14 = vpop.f32.mrf.mxu1 }
 0x33d   : > { %v4560_v15 = vpop.f32.mrf.mxu0  ;;  %v4570_v16 = vpop.f32.mrf.mxu1 }
 0x343   : > { %v1843_v18 = vpop.f32.mrf.mxu0  ;;  %v1919_v19 = vpop.f32.mrf.mxu1 }
 0x344   : > { %v1920_v20 = vadd.f32 %v5656_v17, %v1919_v19 }
 0x345   : > { %v4579_v21 = vpop.f32.mrf.mxu0  ;;  %v4589_v22 = vpop.f32.mrf.mxu1 }
 0x346   : > { %v2236_v23 = vpack.c.bf16 %v1920_v20, %v1920_v20  ;;  %v1786_v20 = vadd.f32 %v5677_v9, %v1785_v10  ;;  %v1844_v21 = vadd.f32 %v5680_v11, %v1843_v18  ;;  %v5689_v22 = vld [vmem:[%s5236_s26] ss:$0 sm:$0xff] }
 0x347   : > { %v1846_v25 = vpop.f32.mrf.mxu0  ;;  %v1922_v26 = vpop.f32.mrf.mxu1 }
 0x348   : > { %v2244_v27 = vsel %vm2239_vm4, %v2236_v23, 0  ;;  %v5692_v23 = vld [vmem:[%s5236_s26 + $0x1] ss:$0 sm:$0xff]  ;;  %v2234_v25 = vpack.c.bf16 %v1786_v20, %v1786_v20  ;;  %v2235_v26 = vpack.c.bf16 %v1844_v21, %v1844_v21 }
 0x349   : > { %v4580_v28 = vpop.f32.mrf.mxu0  ;;  %v4590_v29 = vpop.f32.mrf.mxu1  ;;  %4642 = vmatpush3.bf16.xpose.msra.mxu0 %v2244_v27  ;;  %v5043_v27 = vmov 65535  }
 0x34a   : > { %4653 = vmatprep.subr.bf16.mxu0 %v5041_v37  ;;  %v2427_v28 = vsel %vm2425_vm5, 4294967295, %v5043_v27 }
 0x34f   : > { %v1977_v34 = vpop.f32.mrf.mxu0  ;;  %v2035_v42 = vpop.f32.mrf.mxu1 }
 0x350   : > { %v1978_v43 = vadd.f32 %v5666_v31, %v1977_v34  ;;  %v2036_v44 = vadd.f32 %v5669_v32, %v2035_v42  ;;  %4644 = vmatmul.mubr.msk.bf16.vlgmr.msra.gmra.mxu0 %vm2239_vm4, %v2233_v33  ;;  %v5698_v33 = vsel %vm2426_vm6, %v2427_v28, 0 }
 0x351   : > { %v4599_v45 = vpop.f32.mrf.mxu0  ;;  %v4609_v47 = vpop.f32.mrf.mxu1  ;;  %4655 = vmatprep.mubr.msk.bf16.mxu0 %vm5042_vm3, %v5041_v37 }
 0x352   : > { %v2237_v49 = vpack.c.bf16 %v1978_v43, %v1978_v43  ;;  %v2238_v53 = vpack.c.bf16 %v2036_v44, %v2036_v44 }
 0x353   : > { %v1980_v12 = vpop.f32.mrf.mxu0  ;;  %v2038_v13 = vpop.f32.mrf.mxu1 }
 0x354   : > { %v2290_v14 = vsel %vm2239_vm4, %v2237_v49, 0  ;;  %v2336_v15 = vsel %vm2239_vm4, %v2238_v53, 0 }
 0x355   : > { %v4600_v16 = vpop.f32.mrf.mxu0  ;;  %v4610_v19 = vpop.f32.mrf.mxu1  ;;  %4648 = vmatpush3.bf16.xpose.msra.mxu1 %v2290_v14  ;;  %4654 = vmatpush3.bf16.xpose.msra.mxu0 %v2336_v15 }
 0x356   : > { %4659 = vmatprep.subr.bf16.mxu1 %v5041_v37  ;;  %4665 = vmatprep.subr.bf16.mxu0 %v5041_v37 }
 0x35b   : > { %v2111_v29 = vpop.f32.mrf.mxu0  ;;  %v2169_v30 = vpop.f32.mrf.mxu1 }
 0x35c   : > { %v2112_v10 = vadd.f32 %v5689_v22, %v2111_v29  ;;  %v2170_v18 = vadd.f32 %v5692_v23, %v2169_v30  ;;  %4650 = vmatmul.mubr.msk.bf16.vlgmr.msra.gmra.mxu1 %vm2239_vm4, %v2234_v25  ;;  %4656 = vmatmul.mubr.msk.bf16.vlgmr.msra.gmra.mxu0 %vm2239_vm4, %v2235_v26 }
 0x35d   : > { %v4619_v34 = vpop.f32.mrf.mxu0  ;;  %v4629_v42 = vpop.f32.mrf.mxu1  ;;  %4661 = vmatprep.mubr.msk.bf16.mxu1 %vm5042_vm3, %v5041_v37  ;;  %4667 = vmatprep.mubr.msk.bf16.mxu0 %vm5042_vm3, %v5041_v37 }
 0x35e   : > { %v2418_v43 = vpack.c.bf16 %v2112_v10, %v2112_v10  ;;  %v2419_v44 = vpack.c.bf16 %v2170_v18, %v2170_v18 }
 0x35f   : > { %v2114_v45 = vpop.f32.mrf.mxu0  ;;  %v2172_v47 = vpop.f32.mrf.mxu1 }
 0x360   : > { %v2430_v49 = vand.u32 %v5698_v33, %v2418_v43  ;;  %v2476_v53 = vand.u32 %v5698_v33, %v2419_v44 }
 0x361   : > { %v4620_v12 = vpop.f32.mrf.mxu0  ;;  %v4630_v13 = vpop.f32.mrf.mxu1 }
 0x362   : > { %4660 = vmatpush3.bf16.msra.mxu1 %v2430_v49  ;;  %4666 = vmatpush3.bf16.msra.mxu0 %v2476_v53 }
 0x363   : > { %4671 = vmatprep.subr.bf16.mxu1 %v5041_v37  ;;  %4677 = vmatprep.subr.bf16.mxu0 %v5041_v37 }
 0x367   : > { %v2227_v14 = vpop.f32.mrf.mxu0 }
 0x369   : > { %v4639_v15 = vpop.f32.mrf.mxu0 }
 0x36b   : > { %v2230_v16 = vpop.f32.mrf.mxu0 }
 0x36d   : > { %v4640_v19 = vpop.f32.mrf.mxu0 }
 0x410   : > { %v2280_v20 = vpop.f32.mrf.mxu0 }
 0x411   : > { %v2378_v21 = vmul.f32 0.25, %v2280_v20 }
 0x412   : > { %v4645_v25 = vpop.f32.mrf.mxu0 }
 0x413   : > { %v2382_v26 = vsel %vm2381_vm7, %v2378_v21, -inf }
 0x414   : > { %2383 = vmax.xlane.f32.xlu1 %v2382_v26  ;;  %v2283_v27 = vpop.f32.mrf.mxu0 }
 0x416   : > { %v4646_v28 = vpop.f32.mrf.mxu0 }
 0x41c   : > { %v2326_v29 = vpop.f32.mrf.mxu1  ;;  %v2372_v30 = vpop.f32.mrf.mxu0 }
 0x41d   : > { %v2379_v10 = vmul.f32 0.25, %v2326_v29  ;;  %v2380_v18 = vmul.f32 0.25, %v2372_v30 }
 0x41e   : > { %v4651_v34 = vpop.f32.mrf.mxu1  ;;  %v4657_v42 = vpop.f32.mrf.mxu0 }
 0x41f   : > { %v2385_v43 = vsel %vm2381_vm7, %v2379_v10, -inf  ;;  %v2388_v44 = vsel %vm2381_vm7, %v2380_v18, -inf  ;;  %v5712_v34 = vld [vmem:[#allocation2 + $0x8] sm:$0x3] }
 0x420   : > { %v2329_v45 = vpop.f32.mrf.mxu1  ;;  %2386 = vmax.xlane.f32.xlu1 %v2385_v43  ;;  %2389 = vmax.xlane.f32.xlu0 %v2388_v44  ;;  %v2375_v47 = vpop.f32.mrf.mxu0  ;;  %v5719_v44 = vld [vmem:[%s5236_s26 + $0x2] ss:$0 sm:$0xff]  ;;  %s6080_s26 = scalar_lea.vmem %s6079_s23, %s5188_s6 }
 0x421   : > { %v2228_v45 = vadd.f32 %v5719_v44, %v2227_v14 }
 0x422   : > { %v4652_v49 = vpop.f32.mrf.mxu1  ;;  %v4658_v53 = vpop.f32.mrf.mxu0 }
 0x49d   : > { %v2384_v12 = vpop.xlane.xlu1 %2383 }
 0x49e   : > { %v2391_v13 = vsub.f32 %v2378_v21, %v2384_v12  ;;  %v2420_v12 = vpack.c.bf16 %v2228_v45, %v2228_v45 }
 0x4a0   : > { %v2394_v15 = vmul.f32 1.442695, %v2391_v13 }
 0x4a2   : > { %4989 = vpow2.f32 %v2394_v15 }
 0x4a9   : > { %v2387_v16 = vpop.xlane.xlu1 %2386  ;;  %v2390_v19 = vpop.xlane.xlu0 %2389 }
 0x4aa   : > { %v2392_v20 = vsub.f32 %v2379_v10, %v2387_v16  ;;  %v2393_v25 = vsub.f32 %v2380_v18, %v2390_v19  ;;  %v1544_v18 = vsel %vm1543_vm8, %v5712_v34, 0.0 }
 0x4ac   : > { %v2396_v26 = vmul.f32 1.442695, %v2392_v20  ;;  %v2398_v27 = vmul.f32 1.442695, %v2393_v25  ;;  %v2522_v20 = vand.u32 %v5698_v33, %v2420_v12  ;;  %v5746_v12 = vld [vmem:[%s5251_s25 + $0x10] sm:$0xff]  }
 0x4ae   : > { %4991 = vpow2.f32 %v2396_v26 }
 0x4af   : > { %v4990_v28 = vpop.eup %4989  ;;  %4993 = vpow2.f32 %v2398_v27 }
 0x4b0   : > { %v2400_v29 = vsel %vm2381_vm7, %v4990_v28, 0.0 }
 0x4b1   : > { %2401 = vadd.xlane.f32.xlu1 %v2400_v29 }
 0x4bb   : > { %v4992_v30 = vpop.eup %4991 }
 0x4bc   : > { %v4994_v21 = vpop.eup %4993  ;;  %v2403_v42 = vsel %vm2381_vm7, %v4992_v30, 0.0 }
 0x4bd   : > { %2404 = vadd.xlane.f32.xlu0 %v2403_v42  ;;  %v2406_v10 = vsel %vm2381_vm7, %v4994_v21, 0.0 }
 0x4be   : > { %2407 = vadd.xlane.f32.xlu1 %v2406_v10 }
 0x4c1   : > { %1545 = vadd.xlane.f32.xlu0 %v1544_v18 }
 0x53a   : > { %v2402_v43 = vpop.xlane.xlu1 %2401 }
 0x53b   : > { %4995 = vrcp.f32 %v2402_v43  ;;  %v5736_v43 = vld [vmem:[%s5251_s25] sm:$0xff]  }
 0x546   : > { %v2405_v47 = vpop.xlane.xlu0 %2404 }
 0x547   : > { %v2408_v49 = vpop.xlane.xlu1 %2407  ;;  %4997 = vrcp.f32 %v2405_v47 }
 0x548   : > { %v4996_v53 = vpop.eup %4995  ;;  %4999 = vrcp.f32 %v2408_v49 }
 0x549   : > { %v2412_v13 = vmul.f32 %v4996_v53, %v4990_v28 }
 0x54a   : > { %v1546_v15 = vpop.xlane.xlu0 %1545 }
 0x54b   : > { %v1549_v16 = vmul.f32 0.020833334, %v1546_v15  ;;  %v2415_v19 = vpack.c.bf16 %v2412_v13, %v2412_v13 }
 0x54d   : > { %v1551_v25 = vsub.f32 %v5712_v34, %v1549_v16  ;;  %4662 = vmatmul.mubr.msk.bf16.vlgmr.msra.gmra.mxu1 %vm2421_vm9, %v2415_v19 }
 0x54e   : > { %4672 = vmatpush3.bf16.msra.mxu1 %v2522_v20  ;;  %4673 = vmatprep.mubr.msk.bf16.mxu1 %vm5042_vm3, %v5041_v37 }
 0x54f   : > { %v1553_v14 = vmul.f32 %v1551_v25, %v1551_v25  ;;  %4683 = vmatprep.subr.bf16.mxu1 %v5041_v37 }
 0x551   : > { %v1557_v26 = vsel %vm1543_vm8, %v1553_v14, 0.0 }
 0x552   : > { %1558 = vadd.xlane.f32.xlu1 %v1557_v26 }
 0x554   : > { %v4998_v27 = vpop.eup %4997 }
 0x555   : > { %v5000_v28 = vpop.eup %4999  ;;  %v2413_v29 = vmul.f32 %v4998_v27, %v4992_v30  ;;  %v5741_v30 = vld [vmem:[%s5251_s25 + $0x8] sm:$0xff]  }
 0x556   : > { %v2414_v42 = vmul.f32 %v5000_v28, %v4994_v21 }
 0x557   : > { %v2416_v10 = vpack.c.bf16 %v2413_v29, %v2413_v29 }
 0x558   : > { %v2417_v18 = vpack.c.bf16 %v2414_v42, %v2414_v42 }
 0x559   : > { %4668 = vmatmul.mubr.msk.bf16.vlgmr.msra.gmra.mxu0 %vm2421_vm9, %v2416_v10 }
 0x55a   : > { %4674 = vmatmul.mubr.msk.bf16.vlgmr.msra.gmra.mxu1 %vm2421_vm9, %v2417_v18  ;;  %4679 = vmatprep.mubr.msk.bf16.mxu0 %vm5042_vm3, %v5041_v37 }
 0x55b   : > { %4685 = vmatprep.mubr.msk.bf16.mxu1 %vm5042_vm3, %v5041_v37  ;;  %4678 = vmatpush3.bf16.msra.mxu0 %v5736_v43 }
 0x55c   : > { %4689 = vmatprep.subr.bf16.mxu0 %v5041_v37  ;;  %4684 = vmatpush3.bf16.msra.mxu1 %v5741_v30 }
 0x55d   : > { %4695 = vmatprep.subr.bf16.mxu1 %v5041_v37 }
 0x5db   : > { %v1559_v21 = vpop.xlane.xlu1 %1558 }
 0x5dc   : > { %v1561_v45 = vmul.f32 0.020833334, %v1559_v21 }
 0x5de   : > { %v1563_v47 = vadd.f32 1e-12, %v1561_v45 }
 0x5e0   : > { %5001 = vrsqrt.f32 %v1563_v47 }
 0x5ed   : > { %v5002_v49 = vpop.eup %5001 }
 0x5ee   : > { %v1567_v13 = vmul.f32 %v5002_v49, %v1551_v25 }
 0x5f0   : > { %v1575_v20 = vmul.f32 %v5497_v46, %v1567_v13 }
 0x5f2   : > { %v1583_v26 = vadd.f32 %v5504_v48, %v1575_v20 }
 0x5f4   : > { %v2720_v25 = vpack.c.bf16 %v1583_v26, %v5508_v50 }
 0x5f6   : > { %v2722_v21 = vshrl.u32 %v2720_v25, 16  ;;  %v2725_v45 = vshll.u32 %v2720_v25, 16 }
 0x5f8   : > { %v2727_v49 = vrot.slane %v2725_v45, 3 }
 0x60d   : > { %v2466_v53 = vpop.f32.mrf.mxu1 }
 0x60e   : > { %v2564_v15 = vpack.c.bf16 %v2466_v53, %v2466_v53 }
 0x60f   : > { %v4663_v16 = vpop.f32.mrf.mxu1 }
 0x610   : > { %4680 = vmatmul.mubr.msk.bf16.vlgmr.msra.gmra.mxu0 %vm2239_vm4, %v2564_v15 }
 0x611   : > { %v2469_v19 = vpop.f32.mrf.mxu1  ;;  %4690 = vmatpush3.bf16.msra.mxu0 %v5746_v12  ;;  %4691 = vmatprep.mubr.msk.bf16.mxu0 %vm5042_vm3, %v5041_v37 }
 0x612   : > { %4705 = vmatprep.subr.bf16.mxu0 %v5041_v37 }
 0x613   : > { %v4664_v14 = vpop.f32.mrf.mxu1 }
 0x619   : > { %v2512_v27 = vpop.f32.mrf.mxu0 }
 0x61a   : > { %v2565_v28 = vpack.c.bf16 %v2512_v27, %v2512_v27  ;;  %v2558_v29 = vpop.f32.mrf.mxu1 }
 0x61b   : > { %v2566_v42 = vpack.c.bf16 %v2558_v29, %v2558_v29  ;;  %v4669_v10 = vpop.f32.mrf.mxu0 }
 0x61c   : > { %v4675_v18 = vpop.f32.mrf.mxu1  ;;  %4686 = vmatmul.mubr.msk.bf16.vlgmr.msra.gmra.mxu1 %vm2239_vm4, %v2565_v28 }
 0x61d   : > { %4692 = vmatmul.mubr.msk.bf16.vlgmr.msra.gmra.mxu0 %vm2239_vm4, %v2566_v42  ;;  %4696 = vmatpush3.bf16.msra.mxu1 %v5457_v35  ;;  %v2515_v46 = vpop.f32.mrf.mxu0  ;;  %v2724_v35 = vrot.slane %v2722_v21, 2 }
 0x61e   : > { %4706 = vmatpush3.bf16.msra.mxu0 %v5460_v36  ;;  %v2561_v48 = vpop.f32.mrf.mxu1  ;;  %4697 = vmatprep.subr.bf16.mxu1 %v5041_v37 }
 0x61f   : > { %v4670_v50 = vpop.f32.mrf.mxu0  ;;  %4707 = vmatprep.subr.bf16.mxu0 %v5041_v37  ;;  %4701 = vmatprep.mubr.msk.bf16.mxu1 %vm5042_vm3, %v5041_v37  ;;  %v2728_v36 = vor.u32 %v2727_v49, %v2724_v35 }
 0x620   : > { %v4676_v47 = vpop.f32.mrf.mxu1  ;;  %4711 = vmatprep.mubr.msk.bf16.mxu0 %vm5042_vm3, %v5041_v37 }
 0x621   : > { %4698 = vmatpush3.bf16.msra.mxu1 %v5469_v38 }
 0x622   : > { %4708 = vmatpush3.bf16.msra.mxu0 %v5472_v39  ;;  %4699 = vmatprep.subr.bf16.mxu1 %v5041_v37 }
 0x623   : > { %4709 = vmatprep.subr.bf16.mxu0 %v5041_v37 }
 0x625   : > { %4700 = vmatpush3.bf16.msra.mxu1 %v5479_v40 }
 0x626   : > { %4710 = vmatpush3.bf16.msra.mxu0 %v5482_v41  ;;  %4715 = vmatprep.subr.bf16.mxu1 %v5041_v37 }
 0x627   : > { %4725 = vmatprep.subr.bf16.mxu0 %v5041_v37 }
 0x628   : > { %4702 = vmatmul.mubr.msk.bf16.vlgmr.msra.gmra.mxu1 %vm1539_vm2, %v2728_v36 }
 0x629   : > { %4712 = vmatmul.mubr.msk.bf16.vlgmr.msra.gmra.mxu0 %vm1539_vm2, %v2728_v36  ;;  %4716 = vmatpush3.bf16.msra.mxu1 %v5511_v51 }
 0x62a   : > { %4726 = vmatpush3.bf16.msra.mxu0 %v5514_v52  ;;  %4717 = vmatprep.subr.bf16.mxu1 %v5041_v37 }
 0x62b   : > { %4727 = vmatprep.subr.bf16.mxu0 %v5041_v37  ;;  %4721 = vmatprep.mubr.msk.bf16.mxu1 %vm5042_vm3, %v5041_v37 }
 0x62c   : > { %4731 = vmatprep.mubr.msk.bf16.mxu0 %vm5042_vm3, %v5041_v37 }
 0x62d   : > { %4718 = vmatpush3.bf16.msra.mxu1 %v5527_v54 }
 0x62e   : > { %4728 = vmatpush3.bf16.msra.mxu0 %v5530_v55  ;;  %4719 = vmatprep.subr.bf16.mxu1 %v5041_v37 }
 0x62f   : > { %4729 = vmatprep.subr.bf16.mxu0 %v5041_v37 }
 0x631   : > { %4720 = vmatpush3.bf16.msra.mxu1 %v5541_v56 }
 0x632   : > { %4730 = vmatpush3.bf16.msra.mxu0 %v5544_v57  ;;  %4735 = vmatprep.subr.bf16.mxu1 %v5041_v37 }
 0x633   : > { %4745 = vmatprep.subr.bf16.mxu0 %v5041_v37 }
 0x634   : > { %4722 = vmatmul.mubr.msk.bf16.vlgmr.msra.gmra.mxu1 %vm1539_vm2, %v2728_v36 }
 0x635   : > { %4732 = vmatmul.mubr.msk.bf16.vlgmr.msra.gmra.mxu0 %vm1539_vm2, %v2728_v36  ;;  %4736 = vmatpush3.bf16.msra.mxu1 %v5551_v58 }
 0x636   : > { %4746 = vmatpush3.bf16.msra.mxu0 %v5554_v59  ;;  %4737 = vmatprep.subr.bf16.mxu1 %v5041_v37 }
 0x637   : > { %4747 = vmatprep.subr.bf16.mxu0 %v5041_v37  ;;  %4741 = vmatprep.mubr.msk.bf16.mxu1 %vm5042_vm3, %v5041_v37 }
 0x638   : > { %4751 = vmatprep.mubr.msk.bf16.mxu0 %vm5042_vm3, %v5041_v37 }
 0x639   : > { %4738 = vmatpush3.bf16.msra.mxu1 %v5565_v60 }
 0x63a   : > { %4748 = vmatpush3.bf16.msra.mxu0 %v5568_v61  ;;  %4739 = vmatprep.subr.bf16.mxu1 %v5041_v37 }
 0x63b   : > { %4749 = vmatprep.subr.bf16.mxu0 %v5041_v37 }
 0x63d   : > { %4740 = vmatpush3.bf16.msra.mxu1 %v5579_v62 }
 0x63e   : > { %4750 = vmatpush3.bf16.msra.mxu0 %v5582_v63  ;;  %4755 = vmatprep.subr.bf16.mxu1 %v5041_v37 }
 0x63f   : > { %4765 = vmatprep.subr.bf16.mxu0 %v5041_v37 }
 0x640   : > { %4742 = vmatmul.mubr.msk.bf16.vlgmr.msra.gmra.mxu1 %vm1539_vm2, %v2728_v36 }
 0x641   : > { %4752 = vmatmul.mubr.msk.bf16.vlgmr.msra.gmra.mxu0 %vm1539_vm2, %v2728_v36  ;;  %4756 = vmatpush3.bf16.msra.mxu1 %v5589_v0 }
 0x642   : > { %4766 = vmatpush3.bf16.msra.mxu0 %v5592_v1  ;;  %4757 = vmatprep.subr.bf16.mxu1 %v5041_v37 }
 0x643   : > { %4767 = vmatprep.subr.bf16.mxu0 %v5041_v37  ;;  %4761 = vmatprep.mubr.msk.bf16.mxu1 %vm5042_vm3, %v5041_v37 }
 0x644   : > { %4771 = vmatprep.mubr.msk.bf16.mxu0 %vm5042_vm3, %v5041_v37 }
 0x645   : > { %4758 = vmatpush3.bf16.msra.mxu1 %v5603_v2 }
 0x646   : > { %4768 = vmatpush3.bf16.msra.mxu0 %v5606_v3  ;;  %4759 = vmatprep.subr.bf16.mxu1 %v5041_v37 }
 0x647   : > { %4769 = vmatprep.subr.bf16.mxu0 %v5041_v37 }
 0x649   : > { %4760 = vmatpush3.bf16.msra.mxu1 %v5617_v4 }
 0x64a   : > { %4770 = vmatpush3.bf16.msra.mxu0 %v5620_v5  ;;  %4775 = vmatprep.subr.bf16.mxu1 %v5041_v37 }
 0x64b   : > { %4785 = vmatprep.subr.bf16.mxu0 %v5041_v37 }
 0x64c   : > { %4762 = vmatmul.mubr.msk.bf16.vlgmr.msra.gmra.mxu1 %vm1539_vm2, %v2728_v36 }
 0x64d   : > { %4772 = vmatmul.mubr.msk.bf16.vlgmr.msra.gmra.mxu0 %vm1539_vm2, %v2728_v36  ;;  %4776 = vmatpush3.bf16.msra.mxu1 %v5627_v6 }
 0x64e   : > { %4777 = vmatprep.subr.bf16.mxu1 %v5041_v37  ;;  %4781 = vmatprep.mubr.msk.bf16.mxu1 %vm5042_vm3, %v5041_v37 }
 0x64f   : > { %4787 = vmatprep.mubr.msk.bf16.mxu0 %vm5042_vm3, %v5041_v37 }
 0x651   : > { %4778 = vmatpush3.bf16.msra.mxu1 %v5637_v7 }
 0x652   : > { %4779 = vmatprep.subr.bf16.mxu1 %v5041_v37 }
 0x655   : > { %4780 = vmatpush3.bf16.msra.mxu1 %v5646_v8 }
 0x656   : > { %4797 = vmatprep.subr.bf16.mxu1 %v5041_v37 }
 0x658   : > { %4782 = vmatmul.mubr.msk.bf16.vlgmr.msra.gmra.mxu1 %vm1539_vm2, %v2728_v36 }
 0x659   : > { %4799 = vmatprep.mubr.msk.bf16.mxu1 %vm5042_vm3, %v5041_v37 }
 0x6d0   : > { %v2610_v38 = vpop.f32.mrf.mxu0 }
 0x6d1   : > { %v2715_v52 = vsel %vm2714_vm10, %v2610_v38, 0.0 }
 0x6d2   : > { %v4681_v39 = vpop.f32.mrf.mxu0 }
 0x6d4   : > { %v2613_v40 = vpop.f32.mrf.mxu0 }
 0x6d6   : > { %v4682_v41 = vpop.f32.mrf.mxu0 }
 0x6dc   : > { %v2659_v51 = vpop.f32.mrf.mxu1 }
 0x6dd   : > { %v2716_v54 = vsel %vm2714_vm10, %v2659_v51, 0.0  ;;  %v2708_v55 = vpop.f32.mrf.mxu0 }
 0x6de   : > { %v2717_v56 = vadd.f32 %v2716_v54, %v2715_v52  ;;  %v4687_v57 = vpop.f32.mrf.mxu1  ;;  %v2718_v58 = vsel %vm2714_vm10, %v2708_v55, 0.0 }
 0x6df   : > { %v4693_v59 = vpop.f32.mrf.mxu0 }
 0x6e0   : > { %v5846_v60 = vadd.f32 %v2718_v58, %v2717_v56  ;;  %v2662_v61 = vpop.f32.mrf.mxu1 }
 0x6e1   : > { %v2711_v62 = vpop.f32.mrf.mxu0 }
 0x6e2   : > { %v4688_v63 = vpop.f32.mrf.mxu1 }
 0x6e3   : > { %v4694_v0 = vpop.f32.mrf.mxu0 }
 0x6e8   : > { %v2766_v1 = vpop.f32.mrf.mxu1 }
 0x6e9   : > { %v2806_v2 = vpop.f32.mrf.mxu0  ;;  %v2767_v29 = vadd.f32 %v5660_v24, %v2766_v1 }
 0x6ea   : > { %v4703_v3 = vpop.f32.mrf.mxu1 }
 0x6eb   : > { %v4713_v4 = vpop.f32.mrf.mxu0  ;;  %v3092_v42 = vpack.c.bf16 %v2767_v29, %v2767_v29 }
 0x6ec   : > { %v2769_v5 = vpop.f32.mrf.mxu1 }
 0x6ed   : > { %v2809_v6 = vpop.f32.mrf.mxu0 }
 0x6ee   : > { %v4704_v7 = vpop.f32.mrf.mxu1 }
 0x6ef   : > { %v4714_v8 = vpop.f32.mrf.mxu0 }
 0x6f4   : > { %v2846_v53 = vpop.f32.mrf.mxu1 }
 0x6f5   : > { %v2886_v13 = vpop.f32.mrf.mxu0  ;;  %v2847_v38 = vadd.f32 %v5680_v11, %v2846_v53 }
 0x6f6   : > { %v2887_v15 = vadd.f32 %v5656_v17, %v2886_v13  ;;  %v4723_v16 = vpop.f32.mrf.mxu1 }
 0x6f7   : > { %v4733_v19 = vpop.f32.mrf.mxu0  ;;  %v3094_v40 = vpack.c.bf16 %v2847_v38, %v2847_v38 }
 0x6f8   : > { %v3095_v20 = vpack.c.bf16 %v2887_v15, %v2887_v15  ;;  %v2849_v14 = vpop.f32.mrf.mxu1 }
 0x6f9   : > { %v2889_v26 = vpop.f32.mrf.mxu0 }
 0x6fa   : > { %v3102_v27 = vsel %vm2239_vm4, %v3095_v20, 0  ;;  %v4724_v25 = vpop.f32.mrf.mxu1 }
 0x6fb   : > { %v4734_v28 = vpop.f32.mrf.mxu0  ;;  %4786 = vmatpush3.bf16.xpose.msra.mxu0 %v3102_v27 }
 0x6fc   : > { %4791 = vmatprep.subr.bf16.mxu0 %v5041_v37 }
 0x700   : > { %v2926_v10 = vpop.f32.mrf.mxu1 }
 0x701   : > { %v2927_v18 = vadd.f32 %v5666_v31, %v2926_v10  ;;  %v2966_v46 = vpop.f32.mrf.mxu0  ;;  %v2807_v31 = vadd.f32 %v5677_v9, %v2806_v2 }
 0x702   : > { %v2967_v17 = vadd.f32 %v5669_v32, %v2966_v46  ;;  %4788 = vmatmul.mubr.msk.bf16.vlgmr.msra.gmra.mxu0 %vm2239_vm4, %v3092_v42  ;;  %v4743_v21 = vpop.f32.mrf.mxu1 }
 0x703   : > { %v3096_v45 = vpack.c.bf16 %v2927_v18, %v2927_v18  ;;  %v4753_v48 = vpop.f32.mrf.mxu0  ;;  %4793 = vmatprep.mubr.msk.bf16.mxu0 %vm5042_vm3, %v5041_v37  ;;  %v3093_v39 = vpack.c.bf16 %v2807_v31, %v2807_v31 }
 0x704   : > { %v3097_v50 = vpack.c.bf16 %v2967_v17, %v2967_v17  ;;  %v2929_v47 = vpop.f32.mrf.mxu1 }
 0x705   : > { %v3148_v24 = vsel %vm2239_vm4, %v3096_v45, 0  ;;  %v2969_v35 = vpop.f32.mrf.mxu0 }
 0x706   : > { %v3194_v49 = vsel %vm2239_vm4, %v3097_v50, 0  ;;  %v4744_v36 = vpop.f32.mrf.mxu1  ;;  %4792 = vmatpush3.bf16.xpose.msra.mxu0 %v3148_v24 }
 0x707   : > { %v4754_v32 = vpop.f32.mrf.mxu0  ;;  %4798 = vmatpush3.bf16.xpose.msra.mxu1 %v3194_v49  ;;  %4803 = vmatprep.subr.bf16.mxu0 %v5041_v37 }
 0x708   : > { %4809 = vmatprep.subr.bf16.mxu1 %v5041_v37 }
 0x70c   : > { %v3006_v41 = vpop.f32.mrf.mxu1 }
 0x70d   : > { %v3007_v51 = vadd.f32 %v5689_v22, %v3006_v41  ;;  %v3046_v52 = vpop.f32.mrf.mxu0  ;;  %4794 = vmatmul.mubr.msk.bf16.vlgmr.msra.gmra.mxu0 %vm2239_vm4, %v3093_v39 }
 0x70e   : > { %v3047_v54 = vadd.f32 %v5692_v23, %v3046_v52  ;;  %4800 = vmatmul.mubr.msk.bf16.vlgmr.msra.gmra.mxu1 %vm2239_vm4, %v3094_v40  ;;  %v4763_v9 = vpop.f32.mrf.mxu1  ;;  %4805 = vmatprep.mubr.msk.bf16.mxu0 %vm5042_vm3, %v5041_v37 }
 0x70f   : > { %v3275_v55 = vpack.c.bf16 %v3007_v51, %v3007_v51  ;;  %v4773_v11 = vpop.f32.mrf.mxu0  ;;  %4811 = vmatprep.mubr.msk.bf16.mxu1 %vm5042_vm3, %v5041_v37 }
 0x710   : > { %v3276_v56 = vpack.c.bf16 %v3047_v54, %v3047_v54  ;;  %v3009_v57 = vpop.f32.mrf.mxu1 }
 0x711   : > { %v3282_v22 = vand.u32 %v3275_v55, %v5698_v33  ;;  %v3049_v58 = vpop.f32.mrf.mxu0 }
 0x712   : > { %v3328_v59 = vand.u32 %v3276_v56, %v5698_v33  ;;  %v4764_v61 = vpop.f32.mrf.mxu1 }
 0x713   : > { %v4774_v23 = vpop.f32.mrf.mxu0  ;;  %4804 = vmatpush3.bf16.msra.mxu0 %v3282_v22 }
 0x714   : > { %4810 = vmatpush3.bf16.msra.mxu1 %v3328_v59  ;;  %4815 = vmatprep.subr.bf16.mxu0 %v5041_v37 }
 0x715   : > { %4821 = vmatprep.subr.bf16.mxu1 %v5041_v37 }
 0x718   : > { %v3086_v62 = vpop.f32.mrf.mxu1 }
 0x719   : > { %v3087_v32 = vadd.f32 %v5719_v44, %v3086_v62 }
 0x71a   : > { %v4783_v63 = vpop.f32.mrf.mxu1 }
 0x71b   : > { %v3277_v41 = vpack.c.bf16 %v3087_v32, %v3087_v32 }
 0x71c   : > { %v3089_v0 = vpop.f32.mrf.mxu1 }
 0x71d   : > { %v3374_v54 = vand.u32 %v3277_v41, %v5698_v33  ;;  %v4979_v41 = vld [vmem:[%s5256_s13 + $0x8] sm:$0xff]  }
 0x71e   : > { %v4784_v1 = vpop.f32.mrf.mxu1 }
 0x7c2   : > { %v3138_v2 = vpop.f32.mrf.mxu0 }
 0x7c3   : > { %v3236_v3 = vmul.f32 0.25, %v3138_v2 }
 0x7c4   : > { %v4789_v4 = vpop.f32.mrf.mxu0 }
 0x7c5   : > { %v3239_v5 = vsel %vm2381_vm7, %v3236_v3, -inf }
 0x7c6   : > { %3240 = vmax.xlane.f32.xlu0 %v3239_v5  ;;  %v3141_v6 = vpop.f32.mrf.mxu0 }
 0x7c8   : > { %v4790_v7 = vpop.f32.mrf.mxu0 }
 0x7cd   : > { %v3184_v8 = vpop.f32.mrf.mxu0 }
 0x7ce   : > { %v3237_v53 = vmul.f32 0.25, %v3184_v8  ;;  %v3230_v13 = vpop.f32.mrf.mxu1 }
 0x7cf   : > { %v3238_v15 = vmul.f32 0.25, %v3230_v13  ;;  %v4795_v16 = vpop.f32.mrf.mxu0 }
 0x7d0   : > { %v4801_v19 = vpop.f32.mrf.mxu1  ;;  %v3242_v20 = vsel %vm2381_vm7, %v3237_v53, -inf }
 0x7d1   : > { %v3245_v14 = vsel %vm2381_vm7, %v3238_v15, -inf  ;;  %3243 = vmax.xlane.f32.xlu1 %v3242_v20  ;;  %v3187_v26 = vpop.f32.mrf.mxu0 }
 0x7d2   : > { %v3233_v27 = vpop.f32.mrf.mxu1  ;;  %3246 = vmax.xlane.f32.xlu0 %v3245_v14 }
 0x7d3   : > { %v4796_v25 = vpop.f32.mrf.mxu0 }
 0x7d4   : > { %v4802_v28 = vpop.f32.mrf.mxu1 }
 0x84f   : > { %v3241_v29 = vpop.xlane.xlu0 %3240 }
 0x850   : > { %v3248_v42 = vsub.f32 %v3236_v3, %v3241_v29 }
 0x852   : > { %v3251_v10 = vmul.f32 1.442695, %v3248_v42 }
 0x854   : > { %5003 = vpow2.f32 %v3251_v10  ;;  %v4329_v10 = vld [vmem:[%s6080_s26] ss:$0 sm:$0xff]  ;;  %s6085_s26 = sld [smem:[#allocation17_spill]] (!%p4345_p5) }
 0x85a   : > { %v3244_v18 = vpop.xlane.xlu1 %3243 }
 0x85b   : > { %v3247_v46 = vpop.xlane.xlu0 %3246  ;;  %v3249_v17 = vsub.f32 %v3237_v53, %v3244_v18 }
 0x85c   : > { %v3250_v21 = vsub.f32 %v3238_v15, %v3247_v46 }
 0x85d   : > { %v3253_v45 = vmul.f32 1.442695, %v3249_v17  ;;  %v5023_v17 = vld [vmem:[#allocation2] sm:$0xff] }
 0x85e   : > { %v3255_v48 = vmul.f32 1.442695, %v3250_v21 }
 0x85f   : > { %5005 = vpow2.f32 %v3253_v45 }
 0x860   : > { %5007 = vpow2.f32 %v3255_v48 }
 0x861   : > { %v5004_v50 = vpop.eup %5003 }
 0x862   : > { %v3257_v47 = vsel %vm2381_vm7, %v5004_v50, 0.0 }
 0x863   : > { %3258 = vadd.xlane.f32.xlu1 %v3257_v47 }
 0x86c   : > { %v5006_v24 = vpop.eup %5005 }
 0x86d   : > { %v5008_v35 = vpop.eup %5007  ;;  %v3260_v49 = vsel %vm2381_vm7, %v5006_v24, 0.0 }
 0x86e   : > { %v3263_v36 = vsel %vm2381_vm7, %v5008_v35, 0.0  ;;  %3261 = vadd.xlane.f32.xlu0 %v3260_v49 }
 0x86f   : > { %3264 = vadd.xlane.f32.xlu1 %v3263_v36 }
 0x8ec   : > { %v3259_v31 = vpop.xlane.xlu1 %3258 }
 0x8ed   : > { %5009 = vrcp.f32 %v3259_v31 }
 0x8f7   : > { %v3262_v38 = vpop.xlane.xlu0 %3261 }
 0x8f8   : > { %5011 = vrcp.f32 %v3262_v38  ;;  %v3265_v39 = vpop.xlane.xlu1 %3264 }
 0x8f9   : > { %5013 = vrcp.f32 %v3265_v39 }
 0x8fa   : > { %v5010_v40 = vpop.eup %5009 }
 0x8fb   : > { %v3269_v51 = vmul.f32 %v5010_v40, %v5004_v50  ;;  %v4978_v40 = vld [vmem:[%s5256_s13 + $0x10] sm:$0xff]  }
 0x8fd   : > { %v3272_v52 = vpack.c.bf16 %v3269_v51, %v3269_v51  ;;  %v4980_v51 = vld [vmem:[%s5256_s13] sm:$0xff]  }
 0x8ff   : > { %4806 = vmatmul.mubr.msk.bf16.vlgmr.msra.gmra.mxu0 %vm2421_vm9, %v3272_v52 }
 0x900   : > { %4816 = vmatpush3.bf16.msra.mxu0 %v3374_v54  ;;  %4817 = vmatprep.mubr.msk.bf16.mxu0 %vm5042_vm3, %v5041_v37 }
 0x901   : > { %4827 = vmatprep.subr.bf16.mxu0 %v5041_v37 }
 0x905   : > { %v5012_v9 = vpop.eup %5011 }
 0x906   : > { %v5014_v44 = vpop.eup %5013  ;;  %v3270_v55 = vmul.f32 %v5012_v9, %v5006_v24 }
 0x907   : > { %v3271_v11 = vmul.f32 %v5014_v44, %v5008_v35 }
 0x908   : > { %v3273_v56 = vpack.c.bf16 %v3270_v55, %v3270_v55 }
 0x909   : > { %v3274_v57 = vpack.c.bf16 %v3271_v11, %v3271_v11 }
 0x90a   : > { %4812 = vmatmul.mubr.msk.bf16.vlgmr.msra.gmra.mxu1 %vm2421_vm9, %v3273_v56 }
 0x90b   : > { %4818 = vmatmul.mubr.msk.bf16.vlgmr.msra.gmra.mxu0 %vm2421_vm9, %v3274_v57  ;;  %4822 = vmatpush3.bf16.msra.mxu1 %v5736_v43  ;;  %v4330_v57 = vld [vmem:[%s6082_s19] ss:$0 sm:$0xff] }
 0x90c   : > { %4823 = vmatprep.mubr.msk.bf16.mxu1 %vm5042_vm3, %v5041_v37  ;;  %4828 = vmatpush3.bf16.msra.mxu0 %v5741_v30 }
 0x90d   : > { %4833 = vmatprep.subr.bf16.mxu1 %v5041_v37  ;;  %4829 = vmatprep.mubr.msk.bf16.mxu0 %vm5042_vm3, %v5041_v37 }
 0x90e   : > { %4839 = vmatprep.subr.bf16.mxu0 %v5041_v37 }
 0x9bf   : > { %v3318_v33 = vpop.f32.mrf.mxu0 }
 0x9c0   : > { %v3416_v22 = vpack.c.bf16 %v3318_v33, %v3318_v33 }
 0x9c1   : > { %v4807_v58 = vpop.f32.mrf.mxu0 }
 0x9c2   : > { %4824 = vmatmul.mubr.msk.bf16.vlgmr.msra.gmra.mxu1 %vm2239_vm4, %v3416_v22 }
 0x9c3   : > { %v3321_v59 = vpop.f32.mrf.mxu0  ;;  %4834 = vmatpush3.bf16.msra.mxu1 %v5746_v12  ;;  %4835 = vmatprep.mubr.msk.bf16.mxu1 %vm5042_vm3, %v5041_v37 }
 0x9c4   : > { %4849 = vmatprep.subr.bf16.mxu1 %v5041_v37  ;;  %v4331_v59 = vld [vmem:[%s982_s27] ss:$0 sm:$0xff] }
 0x9c5   : > { %v4808_v43 = vpop.f32.mrf.mxu0 }
 0x9ca   : > { %v3364_v30 = vpop.f32.mrf.mxu1 }
 0x9cb   : > { %v3417_v61 = vpack.c.bf16 %v3364_v30, %v3364_v30  ;;  %v3410_v23 = vpop.f32.mrf.mxu0 }
 0x9cc   : > { %v3418_v62 = vpack.c.bf16 %v3410_v23, %v3410_v23  ;;  %v4813_v63 = vpop.f32.mrf.mxu1 }
 0x9cd   : > { %v4819_v0 = vpop.f32.mrf.mxu0  ;;  %4830 = vmatmul.mubr.msk.bf16.vlgmr.msra.gmra.mxu0 %vm2239_vm4, %v3417_v61  ;;  %v4981_v63 = vld [vmem:[%s5261_s24 + $0x28] sm:$0xff]  }
 0x9ce   : > { %4836 = vmatmul.mubr.msk.bf16.vlgmr.msra.gmra.mxu1 %vm2239_vm4, %v3418_v62  ;;  %v3367_v1 = vpop.f32.mrf.mxu1  ;;  %4845 = vmatprep.mubr.msk.bf16.mxu0 %vm5042_vm3, %v5041_v37  ;;  %v4982_v0 = vld [vmem:[%s5261_s24 + $0x20] sm:$0xff]  }
 0x9cf   : > { %v3413_v12 = vpop.f32.mrf.mxu0  ;;  %4861 = vmatprep.mubr.msk.bf16.mxu1 %vm5042_vm3, %v5041_v37  ;;  %4840 = vmatpush3.bf16.msra.mxu0 %v4978_v40  ;;  %v4983_v1 = vld [vmem:[%s5261_s24 + $0x18] sm:$0xff]  }
 0x9d0   : > { %v4814_v2 = vpop.f32.mrf.mxu1  ;;  %4841 = vmatprep.subr.bf16.mxu0 %v5041_v37  ;;  %4850 = vmatpush3.bf16.msra.mxu1 %v4981_v63  ;;  %v4984_v12 = vld [vmem:[%s5261_s24 + $0x10] sm:$0xff]  }
 0x9d1   : > { %v4820_v3 = vpop.f32.mrf.mxu0  ;;  %4851 = vmatprep.subr.bf16.mxu1 %v5041_v37  ;;  %v4985_v2 = vld [vmem:[%s5261_s24 + $0x8] sm:$0xff]  }
 0x9d2   : > { %v4986_v3 = vld [vmem:[%s5261_s24] sm:$0xff]  }
 0x9d3   : > { %4842 = vmatpush3.bf16.msra.mxu0 %v4979_v41 }
 0x9d4   : > { %4843 = vmatprep.subr.bf16.mxu0 %v5041_v37  ;;  %4852 = vmatpush3.bf16.msra.mxu1 %v4982_v0 }
 0x9d5   : > { %4853 = vmatprep.subr.bf16.mxu1 %v5041_v37 }
 0x9d7   : > { %4844 = vmatpush3.bf16.msra.mxu0 %v4980_v51 }
 0x9d8   : > { %4854 = vmatpush3.bf16.msra.mxu1 %v4983_v1 }
 0x9d9   : > { %4855 = vmatprep.subr.bf16.mxu1 %v5041_v37 }
 0x9dc   : > { %4856 = vmatpush3.bf16.msra.mxu1 %v4984_v12 }
 0x9dd   : > { %4857 = vmatprep.subr.bf16.mxu1 %v5041_v37 }
 0x9e0   : > { %4858 = vmatpush3.bf16.msra.mxu1 %v4985_v2 }
 0x9e1   : > { %4859 = vmatprep.subr.bf16.mxu1 %v5041_v37 }
 0x9e4   : > { %4860 = vmatpush3.bf16.msra.mxu1 %v4986_v3 }
 0xa82   : > { %v3456_v4 = vpop.f32.mrf.mxu1 }
 0xa83   : > { %v3548_v53 = vsel %vm2714_vm10, %v3456_v4, 0.0  ;;  %v4332_v4 = vld [vmem:[%s6083_s3] ss:$0 sm:$0xff] }
 0xa84   : > { %v4825_v5 = vpop.f32.mrf.mxu1 }
 0xa86   : > { %v3459_v6 = vpop.f32.mrf.mxu1 }
 0xa88   : > { %v4826_v7 = vpop.f32.mrf.mxu1 }
 0xa8d   : > { %v3499_v8 = vpop.f32.mrf.mxu0 }
 0xa8e   : > { %v3549_v13 = vsel %vm2714_vm10, %v3499_v8, 0.0  ;;  %v3542_v15 = vpop.f32.mrf.mxu1 }
 0xa8f   : > { %v3550_v16 = vadd.f32 %v3549_v13, %v3548_v53  ;;  %v4831_v19 = vpop.f32.mrf.mxu0  ;;  %v3551_v20 = vsel %vm2714_vm10, %v3542_v15, 0.0 }
 0xa90   : > { %v4837_v14 = vpop.f32.mrf.mxu1 }
 0xa91   : > { %v3552_v26 = vadd.f32 %v3551_v20, %v3550_v16  ;;  %v3502_v27 = vpop.f32.mrf.mxu0 }
 0xa92   : > { %v3545_v25 = vpop.f32.mrf.mxu1 }
 0xa93   : > { %v3554_v28 = vrot.slane %v3552_v26, 3  ;;  %v4832_v29 = vpop.f32.mrf.mxu0 }
 0xa94   : > { %v4838_v42 = vpop.f32.mrf.mxu1 }
 0xa95   : > { %v3557_v18 = vsel %vm3556_vm11, %v5846_v60, %v3554_v28  ;;  %v3559_v46 = vadd.f32 %v3554_v28, %v5712_v34 }
 0xa96   : > { %v3558_v21 = vadd.f32 %v5023_v17, %v3557_v18 }
 0xa97   : > { %v5918_v45 = vadd.f32 %v4329_v10, %v3559_v46 }
 0xa98   : > { %v5920_v48 = vadd.f32 %v4329_v10, %v3558_v21 }
 0xa99   : > { %v3574_v50 = vsel %vm1543_vm8, %v5918_v45, 0.0 }
 0xa9a   : > { %3575 = vadd.xlane.f32.xlu1 %v3574_v50  ;;  %v3571_v47 = vsel %vm1539_vm2, %v5920_v48, 0.0 }
 0xa9b   : > { %3572 = vadd.xlane.f32.xlu0 %v3571_v47 }
 0xb23   : > { %v3576_v24 = vpop.xlane.xlu1 %3575 }
 0xb24   : > { %v3578_v60 = vmul.f32 0.020833334, %v3576_v24  ;;  %v3573_v34 = vpop.xlane.xlu0 %3572 }
 0xb25   : > { %v3577_v35 = vmul.f32 0.020833334, %v3573_v34 }
 0xb26   : > { %v3580_v49 = vsub.f32 %v5918_v45, %v3578_v60  ;;  %v4344_v60 = vld [vmem:[%s998_s12] ss:$0 sm:$0xff] }
 0xb27   : > { %v3579_v36 = vsub.f32 %v5920_v48, %v3577_v35 }
 0xb28   : > { %v3582_v31 = vmul.f32 %v3580_v49, %v3580_v49 }
 0xb29   : > { %v3581_v32 = vmul.f32 %v3579_v36, %v3579_v36 }
 0xb2a   : > { %v3586_v38 = vsel %vm1543_vm8, %v3582_v31, 0.0 }
 0xb2b   : > { %3587 = vadd.xlane.f32.xlu1 %v3586_v38  ;;  %v3583_v39 = vsel %vm1539_vm2, %v3581_v32, 0.0 }
 0xb2c   : > { %3584 = vadd.xlane.f32.xlu0 %v3583_v39 }
 0xbb4   : > { %v3588_v52 = vpop.xlane.xlu1 %3587 }
 0xbb5   : > { %v3590_v54 = vmul.f32 0.020833334, %v3588_v52  ;;  %v3585_v9 = vpop.xlane.xlu0 %3584 }
 0xbb6   : > { %v3589_v44 = vmul.f32 0.020833334, %v3585_v9 }
 0xbb7   : > { %v3592_v55 = vadd.f32 1e-12, %v3590_v54 }
 0xbb8   : > { %v3591_v11 = vadd.f32 1e-12, %v3589_v44 }
 0xbb9   : > { %5015 = vrsqrt.f32 %v3592_v55 }
 0xbba   : > { %5017 = vrsqrt.f32 %v3591_v11 }
 0xbc6   : > { %v5016_v56 = vpop.eup %5015 }
 0xbc7   : > { %v5018_v33 = vpop.eup %5017  ;;  %v3596_v22 = vmul.f32 %v5016_v56, %v3580_v49 }
 0xbc8   : > { %v3595_v58 = vmul.f32 %v5018_v33, %v3579_v36 }
 0xbc9   : > { %v3604_v43 = vmul.f32 %v4330_v57, %v3596_v22 }
 0xbca   : > { %v3603_v30 = vmul.f32 %v4330_v57, %v3595_v58 }
 0xbcb   : > { %v3612_v61 = vadd.f32 %v4331_v59, %v3604_v43 }
 0xbcc   : > { %v3611_v23 = vadd.f32 %v4331_v59, %v3603_v30 }
 0xbce   : > { %v3619_v62 = vpack.c.bf16 %v3612_v61, %v3611_v23 }
 0xbd0   : > { %4846 = vmatmul.mubr.msk.bf16.vlgmr.msra.gmra.mxu0 %vm1539_vm2, %v3619_v62 }
 0xc90   : > { %v3682_v5 = vpop.f32.mrf.mxu0 }
 0xc91   : > { %v3683_v6 = vadd.f32 %v4332_v4, %v3682_v5 }
 0xc92   : > { %v4847_v7 = vpop.f32.mrf.mxu0 }
 0xc93   : > { %v3691_v8 = vmul.f32 0.044715, %v3683_v6  ;;  %v3689_v18 = vmul.f32 0.5, %v3683_v6 }
 0xc94   : > { %v3685_v53 = vpop.f32.mrf.mxu0 }
 0xc95   : > { %v3693_v13 = vmul.f32 %v3691_v8, %v3683_v6  ;;  %v3686_v15 = vadd.f32 %v4332_v4, %v3685_v53 }
 0xc96   : > { %v4848_v16 = vpop.f32.mrf.mxu0 }
 0xc97   : > { %v3695_v19 = vmul.f32 %v3693_v13, %v3683_v6  ;;  %v3692_v20 = vmul.f32 0.044715, %v3686_v15  ;;  %v3690_v46 = vmul.f32 0.5, %v3686_v15 }
 0xc99   : > { %v3697_v14 = vadd.f32 %v3695_v19, %v3683_v6  ;;  %v3694_v26 = vmul.f32 %v3692_v20, %v3686_v15 }
 0xc9b   : > { %v3699_v27 = vmul.f32 0.7978846, %v3697_v14  ;;  %v3696_v37 = vmul.f32 %v3694_v26, %v3686_v15 }
 0xc9d   : > { %5019 = vtanh.f32 %v3699_v27  ;;  %v3698_v25 = vadd.f32 %v3696_v37, %v3686_v15 }
 0xc9f   : > { %v3700_v28 = vmul.f32 0.7978846, %v3698_v25 }
 0xca1   : > { %5021 = vtanh.f32 %v3700_v28 }
 0xcaa   : > { %v5020_v29 = vpop.eup %5019 }
 0xcab   : > { %v3703_v42 = vadd.f32 1.0, %v5020_v29 }
 0xcad   : > { %v3705_v21 = vmul.f32 %v3703_v42, %v3689_v18 }
 0xcae   : > { %v5022_v10 = vpop.eup %5021 }
 0xcaf   : > { %v3704_v17 = vadd.f32 1.0, %v5022_v10 }
 0xcb1   : > { %v3706_v50 = vmul.f32 %v3704_v17, %v3690_v46 }
 0xcb3   : > { %v3719_v47 = vpack.c.bf16 %v3706_v50, %v3705_v21 }
 0xcb5   : > { %4862 = vmatmul.mubr.msk.bf16.vlgmr.msra.gmra.mxu1 %vm3756_vm12, %v3719_v47 }
 0xd75   : > { %v3794_v24 = vpop.f32.mrf.mxu1 }
 0xd76   : > { %v3801_v34 = vadd.f32 %v3794_v24, %v5920_v48 }
 0xd77   : > { %v4863_v35 = vpop.f32.mrf.mxu1 }
 0xd78   : > { %v3810_v49 = vadd.f32 %v4344_v60, %v3801_v34 }
 0xd79   : > { %v3797_v36 = vpop.f32.mrf.mxu1 }
 0xd7a   : > { %3812 = vst.msk [vmem:[#allocation2] sm:$0xff] %vm1539_vm2, %v3810_v49  ;;  %v3802_v31 = vadd.f32 %v3797_v36, %v5918_v45  ;;  %3817 = sbr.rel (%p4345_p5) target bundleno = 4192 (0x1060), region = 128 }
 0xd7b   : > { %v4864_v32 = vpop.f32.mrf.mxu1 }
 0xd7c   : > { %v3811_v38 = vadd.f32 %v4344_v60, %v3802_v31 }
 0xd7e   : > { %3813 = vst.msk [vmem:[#allocation2 + $0x8] sm:$0x3] %vm1543_vm8, %v3811_v38 }
 0xd7f   : > { %v3819_v39 = vrot.slane %v3810_v49, 4  ;;  %vm3821_vm13 = vcmask 1040384   ;;  %v5024_v45 = vld [vmem:[%s6084_s21 + $0x10] sm:$0xff]   ;;  %v5044_v44 = vmov 0.0   ;;  %vm5045_vm14 = vmmov 0   ;;  %v5025_v55 = vld [vmem:[%s6084_s21 + $0x8] sm:$0xff]  }
 0xd80   : > { %4865 = vmatprep.subr.bf16.mxu0 %v5044_v44  ;;  %4871 = vmatprep.mubr.msk.bf16.mxu0 %vm5045_vm14, %v5044_v44  ;;  %v5026_v11 = vld [vmem:[%s6084_s21] sm:$0xff]   ;;  %v5027_v62 = vld [vmem:[%s6087_s9 + $0x8] ss:$0 sps:$4 sm:$0xff]   ;;  %vm3960_vm15 = vcmask 1043456   ;;  %vm3956_vm0 = vcmask 195584   ;;  %vm4004_vm1 = vcmask 50176  }
 0xd81   : > { %v3822_v40 = vsel %vm3821_vm13, %v3810_v49, %v3819_v39  ;;  %4866 = vmatpush3.bf16.msra.mxu0 %v5024_v45  ;;  %4875 = vmatprep.subr.bf16.mxu1 %v5044_v44  ;;  %v4346_v58 = vld [vmem:[%s6085_s26] ss:$0 sm:$0xff]  ;;  %v3962_v63 = vsel %vm3960_vm15, %v5027_v62, 0 }
 0xd82   : > { %v3825_v41 = vsel %vm1543_vm8, %v3822_v40, 0.0  ;;  %4867 = vmatprep.subr.bf16.mxu0 %v5044_v44  ;;  %4879 = vmatprep.mubr.msk.bf16.mxu1 %vm5045_vm14, %v5044_v44  ;;  %v4347_v43 = vld [vmem:[%s6086_s5] ss:$0 sm:$0xff] }
 0xd83   : > { %3826 = vadd.xlane.f32.xlu0 %v3825_v41  ;;  %4876 = vmatpush3.bf16.msra.mxu1 %v3962_v63  ;;  %v5028_v0 = vld [vmem:[%s6087_s9] sm:$0xff]  }
 0xd84   : > { %4877 = vmatprep.subr.bf16.mxu1 %v5044_v44  ;;  %v4348_v1 = vld [vmem:[%s6088_s7] ss:$0 sm:$0xff] }
 0xd85   : > { %4868 = vmatpush3.bf16.msra.mxu0 %v5025_v55  ;;  %v4353_v26 = vld [vmem:[%s6089_s2] ss:$0 sm:$0xff] }
 0xd86   : > { %4869 = vmatprep.subr.bf16.mxu0 %v5044_v44 }
 0xd87   : > { %4878 = vmatpush3.bf16.msra.mxu1 %v5028_v0 }
 0xd89   : > { %4870 = vmatpush3.bf16.msra.mxu0 %v5026_v11 }
 0xe0c   : > { %v3827_v48 = vpop.xlane.xlu0 %3826 }
 0xe0d   : > { %v3828_v51 = vmul.f32 0.020833334, %v3827_v48 }
 0xe0f   : > { %v3829_v52 = vsub.f32 %v3822_v40, %v3828_v51 }
 0xe11   : > { %v3830_v54 = vmul.f32 %v3829_v52, %v3829_v52 }
 0xe13   : > { %v3831_v9 = vsel %vm1543_vm8, %v3830_v54, 0.0 }
 0xe14   : > { %3832 = vadd.xlane.f32.xlu0 %v3831_v9 }
 0xe9d   : > { %v3833_v56 = vpop.xlane.xlu0 %3832 }
 0xe9e   : > { %v3834_v57 = vmul.f32 0.020833334, %v3833_v56 }
 0xea0   : > { %v3835_v33 = vadd.f32 1e-12, %v3834_v57 }
 0xea2   : > { %5029 = vrsqrt.f32 %v3835_v33 }
 0xeaf   : > { %v5030_v22 = vpop.eup %5029 }
 0xeb0   : > { %v3837_v59 = vmul.f32 %v5030_v22, %v3829_v52 }
 0xeb2   : > { %v3844_v30 = vmul.f32 %v4346_v58, %v3837_v59 }
 0xeb4   : > { %v3851_v61 = vadd.f32 %v4347_v43, %v3844_v30 }
 0xeb6   : > { %v3858_v23 = vpack.c.bf16 %v3851_v61, %v3851_v61 }
 0xeb8   : > { %4872 = vmatmul.mubr.msk.bf16.vlgmr.msra.gmra.mxu0 %vm1539_vm2, %v3858_v23 }
 0xf78   : > { %v3921_v12 = vpop.f32.mrf.mxu0 }
 0xf79   : > { %v3922_v2 = vadd.f32 %v4348_v1, %v3921_v12 }
 0xf7a   : > { %v4873_v3 = vpop.f32.mrf.mxu0 }
 0xf7b   : > { %v3928_v4 = vmul.f32 0.044715, %v3922_v2  ;;  %v3927_v16 = vmul.f32 0.5, %v3922_v2 }
 0xf7c   : > { %v3924_v5 = vpop.f32.mrf.mxu0 }
 0xf7d   : > { %v3929_v6 = vmul.f32 %v3928_v4, %v3922_v2 }
 0xf7e   : > { %v4874_v7 = vpop.f32.mrf.mxu0 }
 0xf7f   : > { %v3930_v8 = vmul.f32 %v3929_v6, %v3922_v2 }
 0xf81   : > { %v3931_v53 = vadd.f32 %v3930_v8, %v3922_v2 }
 0xf83   : > { %v3932_v13 = vmul.f32 0.7978846, %v3931_v53 }
 0xf85   : > { %5031 = vtanh.f32 %v3932_v13 }
 0xf92   : > { %v5032_v15 = vpop.eup %5031 }
 0xf93   : > { %v3934_v19 = vadd.f32 1.0, %v5032_v15 }
 0xf95   : > { %v3935_v20 = vmul.f32 %v3934_v19, %v3927_v16 }
 0xf97   : > { %v3939_v14 = vpack.c.bf16 %v3935_v20, %v3935_v20 }
 0xf99   : > { %4880 = vmatmul.mubr.msk.bf16.vlgmr.msra.gmra.mxu1 %vm3956_vm0, %v3939_v14 }
0x1059   : > { %v3998_v27 = vpop.f32.mrf.mxu1 }
0x105a   : > { %v3999_v37 = vadd.f32 %v4353_v26, %v3998_v27 }
0x105b   : > { %v4881_v25 = vpop.f32.mrf.mxu1 }
0x105c   : > { %4005 = vst.msk [vmem:[%s6090_s8] sm:$0x3] %vm4004_vm1, %v3999_v37 }
0x105d   : > { %v4001_v28 = vpop.f32.mrf.mxu1 }
0x105f   : > { %v4882_v29 = vpop.f32.mrf.mxu1 }
0x1060 PF: > { %s6091_s29 = sld [smem:[#allocation3_spill]] }
0x1066   : > { %s35_s29 = sadd.s32 1, %s6091_s29  }
0x1067   : > { %p32_p6 = scmp.ge.s32.totalorder %s35_s29, 4  }
0x1069   :  { %34 = sbr.rel (!%p32_p6) target bundleno = 20 (0x14), region = 199 }

</bundles_post_ra>
